<compile_context>
chip_gen: v5e
topology: v5e:2x2
jax: 0.10.0
libtpu: 0.0.40
codegen_flags: <defaults>
</compile_context>

<pallas_src>
import numpy as np
import jax
import jax.numpy as jnp
from jax.experimental import pallas as pl
from jax.experimental.pallas import tpu as pltpu

BN_EPS = 1e-5
# Shift order shared by the weight expansion, the boundary masks and the kernel.
SHIFTS = tuple((dp, dq) for dp in (-1, 0, 1) for dq in (-1, 0, 1))


# ----------------------- host-side layout / weight prep -----------------------

def _space_to_depth(x, f):
    """(N, C, H, W) -> (f*f*C, N*(H//f)*(W//f)).

    Row index = (a*f + b)*C + c where (a, b) = (H%f, W%f) phase; lane index =
    n*(Hb*Wb) + p*Wb + q with (p, q) the base-grid position."""
    n, c, h, w = x.shape
    hb, wb = h // f, w // f
    x = x.reshape(n, c, hb, f, wb, f)            # n c p a q b
    x = x.transpose(3, 5, 1, 0, 2, 4)            # a b c n p q
    return x.reshape(f * f * c, n * hb * wb)


def _depth_to_space(y, f, n, c, hb, wb):
    """Inverse of _space_to_depth (used once at the output boundary)."""
    y = y.reshape(f, f, c, n, hb, wb)            # A B c n p q
    y = y.transpose(3, 2, 4, 0, 5, 1)            # n c p A q B
    return y.reshape(n, c, hb * f, wb * f)


def _expand_conv_weight(w, stride, pad, fi, fo, transposed):
    """Rewrite a (transposed) conv as one dense matrix acting on the 9-shift
    stack of base-grid activations.

    Input lives on the base grid with fi*fi phases, output with fo*fo phases.
    Returns W_exp of shape (fo*fo*C_out, 9*fi*fi*C_in) with
      row = (A*fo + B)*C_out + co,
      col = t*(fi*fi*C_in) + (a*fi + b)*C_in + ci,   t = (dp+1)*3 + (dq+1).
    """
    w = np.asarray(w, np.float32)
    if transposed:
        c_in, c_out, kh, kw = w.shape            # ConvTranspose2d: (Cin, Cout, kh, kw)
    else:
        c_out, c_in, kh, kw = w.shape            # Conv2d: (Cout, Cin, kh, kw)
    cin_exp = fi * fi * c_in
    cout_exp = fo * fo * c_out
    we = np.zeros((cout_exp, 9 * cin_exp), np.float32)
    p0 = q0 = 4  # any interior base position (mapping is translation invariant)
    for A in range(fo):
        for B in range(fo):
            uo, vo = fo * p0 + A, fo * q0 + B    # original-resolution output pos
            for i in range(kh):
                for j in range(kw):
                    if not transposed:
                        # out[uo] += w[i] * in[stride*uo + i - pad]
                        ui, vi = stride * uo + i - pad, stride * vo + j - pad
                    else:
                        # out[uo] += w[i] * in[ui]  iff  stride*ui + i - pad == uo
                        nu, nv = uo + pad - i, vo + pad - j
                        if nu % stride or nv % stride:
                            continue
                        ui, vi = nu // stride, nv // stride
                    pi, a = divmod(ui, fi)
                    qi, b = divmod(vi, fi)
                    dp, dq = pi - p0, qi - q0
                    assert -1 <= dp <= 1 and -1 <= dq <= 1
                    t = (dp + 1) * 3 + (dq + 1)
                    tap = w[:, :, i, j] if not transposed else w[:, :, i, j].T
                    r0 = (A * fo + B) * c_out
                    c0 = t * cin_exp + (a * fi + b) * c_in
                    we[r0:r0 + c_out, c0:c0 + c_in] += tap
    return we


def _build_shift_masks(n, hb, wb):
    """(9, 1, L) 0/1 masks: mask[t, 0, l] = 1 iff the SHIFTS[t]-shifted source
    base-grid position of lane l is inside the (hb, wb) grid.  The zeros both
    implement the convs' zero padding and kill the lanes where the in-kernel
    lane roll wraps across base-grid rows / batch samples."""
    L = n * hb * wb
    m = np.zeros((9, 1, L), np.float32)
    for t, (dp, dq) in enumerate(SHIFTS):
        for ni in range(n):
            for p in range(hb):
                for q in range(wb):
                    if 0 <= p + dp < hb and 0 <= q + dq < wb:
                        m[t, 0, ni * hb * wb + p * wb + q] = 1.0
    return m


def prepare_generator_params(params):
    """One-time host-side prep: expand PyTorch-layout weights into per-shift
    dense matrices of shape (9, Cout_exp, Cin_exp), stored in bf16 (MXU-native
    operands); BN scale/shift stay f32."""
    def expand(w, stride, pad, fi, fo, transposed):
        we = _expand_conv_weight(w, stride, pad, fi, fo, transposed)
        cout_exp, ncin = we.shape
        cin_exp = ncin // 9
        we = we.reshape(cout_exp, 9, cin_exp).transpose(1, 0, 2)   # (9, Cout_exp, Cin_exp)
        return jnp.asarray(we, jnp.bfloat16)

    def rep(v, k):
        return jnp.asarray(np.tile(np.asarray(v, np.float32), k).reshape(-1, 1))

    return {
        "w1": expand(params["conv1_w"], 2, 1, fi=4, fo=2, transposed=False),
        "g1": rep(params["bn1_g"], 4), "b1": rep(params["bn1_b"], 4),
        "w2": expand(params["conv2_w"], 2, 1, fi=2, fo=1, transposed=False),
        "g2": rep(params["bn2_g"], 1), "b2": rep(params["bn2_b"], 1),
        "w3": expand(params["res_w"], 1, 1, fi=1, fo=1, transposed=False),
        "g3": rep(params["bnr_g"], 1), "b3": rep(params["bnr_b"], 1),
        "w4": expand(params["deconv1_w"], 2, 1, fi=1, fo=2, transposed=True),
        "g4": rep(params["bn3_g"], 4), "b4": rep(params["bn3_b"], 4),
        "w5": expand(params["deconv2_w"], 2, 1, fi=2, fo=4, transposed=True),
    }


# ------------------------------- fused kernel --------------------------------

def _make_generator_kernel(L, wb):
    """Builds the fused forward kernel (all operands are single VMEM blocks)."""

    def shifted(x, mask_ref, t):
        # x shifted by SHIFTS[t] on the base grid, zeros at the grid boundary.
        # Lane axis = n*Hb*Wb + p*Wb + q, so a (dp, dq) shift is a lane roll by
        # -(dp*Wb + dq).  Roll runs on the XLU, the mask multiply on the VPU;
        # neither competes with the MXU.
        dp, dq = SHIFTS[t]
        if (dp, dq) == (0, 0):
            return x
        d = dp * wb + dq
        xr = pltpu.roll(x, shift=(-d) % L, axis=1)
        return xr * mask_ref[t]                   # (1, L) mask broadcast over channels

    def conv(x, w_ref, mask_ref):
        # 9 small (Cout_exp, Cin_exp) @ (Cin_exp, L) bf16 MXU dots accumulated
        # in f32 — no concatenated (9*Cin_exp, L) stack, no VMEM spill traffic.
        acc = None
        for t in range(9):
            xs = shifted(x, mask_ref, t).astype(jnp.bfloat16)
            term = jnp.dot(w_ref[t], xs, preferred_element_type=jnp.float32)
            acc = term if acc is None else acc + term
        return acc

    def bn(y, g_ref, b_ref, n_phase):
        # Training-mode BatchNorm (biased variance, eps=1e-5), one-pass stats:
        # s1 = sum(y), s2 = sum(y*y), var = E[y^2] - E[y]^2.  For phase-
        # expanded outputs (n_phase=4) the statistics pool the phase row blocks,
        # matching PyTorch's per-channel (N, H, W) batch statistics.
        cexp = y.shape[0]
        c = cexp // n_phase
        cnt = float(n_phase * L)
        s1 = jnp.sum(y, axis=1, keepdims=True)            # (cexp, 1)
        s2 = jnp.sum(y * y, axis=1, keepdims=True)        # (cexp, 1)
        if n_phase > 1:
            p1, p2 = s1[0:c], s2[0:c]
            for ph in range(1, n_phase):
                p1 = p1 + s1[ph * c:(ph + 1) * c]
                p2 = p2 + s2[ph * c:(ph + 1) * c]
            mean = jnp.concatenate([p1 / cnt] * n_phase, axis=0)
            msq = jnp.concatenate([p2 / cnt] * n_phase, axis=0)
        else:
            mean = s1 / cnt
            msq = s2 / cnt
        var = msq - mean * mean
        scale = g_ref[...] * jax.lax.rsqrt(var + BN_EPS)  # EUP; single FMA epilogue
        return (y - mean) * scale + b_ref[...]

    def kernel(x_ref, noise_ref, mask_ref,
               w1_ref, g1_ref, b1_ref,
               w2_ref, g2_ref, b2_ref,
               w3_ref, g3_ref, b3_ref,
               w4_ref, g4_ref, b4_ref,
               w5_ref, o_ref):
        h = jnp.maximum(bn(conv(x_ref[...], w1_ref, mask_ref), g1_ref, b1_ref, 4), 0.0)
        h = jnp.maximum(bn(conv(h, w2_ref, mask_ref), g2_ref, b2_ref, 1), 0.0)
        h = jnp.maximum(h + bn(conv(h, w3_ref, mask_ref), g3_ref, b3_ref, 1), 0.0)
        h = jnp.concatenate([h, noise_ref[...]], axis=0)   # torch.cat([out, noise], 1)
        h = jnp.maximum(bn(conv(h, w4_ref, mask_ref), g4_ref, b4_ref, 4), 0.0)
        o_ref[...] = jnp.tanh(conv(h, w5_ref, mask_ref))

    return kernel


# ------------------------------ public forward -------------------------------

@jax.jit
def cycle_generator_forward(x, eparams, noise):
    """x: (N, 3, H, W) f32; noise: (N, noise_dim, H//4, W//4) f32 (uniform in
    [-1, 1), i.e. the module's sample_noise). Returns (N, 3, H, W) f32."""
    n, c_in, h, w = x.shape
    assert c_in == 3 and h % 4 == 0 and w % 4 == 0
    hb, wb = h // 4, w // 4
    L = n * hb * wb
    nd = noise.shape[1]
    assert noise.shape == (n, nd, hb, wb)

    x_exp = _space_to_depth(x, 4)                               # (48, L)
    noise_exp = noise.transpose(1, 0, 2, 3).reshape(nd, L)      # (nd, L)
    masks = jnp.asarray(_build_shift_masks(n, hb, wb))          # (9, 1, L) constants

    c_out_exp = eparams["w5"].shape[1]                          # 16 phases * 3 ch
    args = (x_exp, noise_exp, masks,
            eparams["w1"], eparams["g1"], eparams["b1"],
            eparams["w2"], eparams["g2"], eparams["b2"],
            eparams["w3"], eparams["g3"], eparams["b3"],
            eparams["w4"], eparams["g4"], eparams["b4"],
            eparams["w5"])

    wkeys = ("w1", "w2", "w3", "w4", "w5")
    mm_flops = sum(2 * L * int(np.prod(eparams[k].shape)) for k in wkeys)
    ew_flops = 5 * 9 * 2 * 64 * L + 4 * 6 * 64 * L              # masks + BN epilogue (rough)
    cost = pl.CostEstimate(
        flops=int(mm_flops + ew_flops),
        transcendentals=int(c_out_exp * L + 4 * 64),
        bytes_accessed=int(sum(a.size * a.dtype.itemsize for a in args)
                           + c_out_exp * L * 4),
    )

    out_exp = pl.pallas_call(
        _make_generator_kernel(L, wb),
        out_shape=jax.ShapeDtypeStruct((c_out_exp, L), jnp.float32),
        in_specs=[pl.BlockSpec(memory_space=pltpu.MemorySpace.VMEM)] * len(args),
        out_specs=pl.BlockSpec(memory_space=pltpu.MemorySpace.VMEM),
        compiler_params=pltpu.CompilerParams(vmem_limit_bytes=32 * 1024 * 1024),
        cost_estimate=cost,
    )(*args)

    return _depth_to_space(out_exp, 4, n, 3, hb, wb)


# --------------------- pure-XLA reference (self-check only) -------------------

def _reference_forward(x, params, noise):
    hi = jax.lax.Precision.HIGHEST

    def conv2d(x, w, stride, pad):
        return jax.lax.conv_general_dilated(
            x, w, (stride, stride), [(pad, pad), (pad, pad)],
            dimension_numbers=("NCHW", "OIHW", "NCHW"), precision=hi)

    def deconv2d(x, wt, stride, pad):
        k = wt.shape[2]
        w = jnp.flip(wt, (2, 3)).transpose(1, 0, 2, 3)          # (Cout, Cin, kh, kw)
        e = k - 1 - pad
        return jax.lax.conv_general_dilated(
            x, w, (1, 1), [(e, e), (e, e)], lhs_dilation=(stride, stride),
            dimension_numbers=("NCHW", "OIHW", "NCHW"), precision=hi)

    def bn(x, g, b):
        m = jnp.mean(x, axis=(0, 2, 3), keepdims=True)
        v = jnp.mean((x - m) ** 2, axis=(0, 2, 3), keepdims=True)
        return ((x - m) * jax.lax.rsqrt(v + BN_EPS) * g.reshape(1, -1, 1, 1)
                + b.reshape(1, -1, 1, 1))

    h = jax.nn.relu(bn(conv2d(x, params["conv1_w"], 2, 1),
                       params["bn1_g"], params["bn1_b"]))
    h = jax.nn.relu(bn(conv2d(h, params["conv2_w"], 2, 1),
                       params["bn2_g"], params["bn2_b"]))
    h = jax.nn.relu(h + bn(conv2d(h, params["res_w"], 1, 1),
                           params["bnr_g"], params["bnr_b"]))
    h = jnp.concatenate([h, noise], axis=1)
    h = jax.nn.relu(bn(deconv2d(h, params["deconv1_w"], 2, 1),
                       params["bn3_g"], params["bn3_b"]))
    return jnp.tanh(deconv2d(h, params["deconv2_w"], 2, 1))


# ------------------------------------ main -----------------------------------

if __name__ == "__main__":
    # Small but architecture-consistent sizes.
    conv_dim, noise_dim = 16, 8
    B, H, W = 2, 32, 32

    key = jax.random.PRNGKey(0)
    ks = jax.random.split(key, 8)

    def w_init(k, shape):
        return jax.random.normal(k, shape, jnp.float32) * 0.05

    params = {
        # Conv2d weights: (Cout, Cin, kh, kw); ConvTranspose2d: (Cin, Cout, kh, kw)
        "conv1_w": w_init(ks[0], (conv_dim, 3, 4, 4)),
        "bn1_g": jnp.ones((conv_dim,), jnp.float32),
        "bn1_b": jnp.zeros((conv_dim,), jnp.float32),
        "conv2_w": w_init(ks[1], (conv_dim * 2, conv_dim, 4, 4)),
        "bn2_g": jnp.ones((conv_dim * 2,), jnp.float32),
        "bn2_b": jnp.zeros((conv_dim * 2,), jnp.float32),
        "res_w": w_init(ks[2], (conv_dim * 2, conv_dim * 2, 3, 3)),
        "bnr_g": jnp.ones((conv_dim * 2,), jnp.float32),
        "bnr_b": jnp.zeros((conv_dim * 2,), jnp.float32),
        "deconv1_w": w_init(ks[3], (conv_dim * 2 + noise_dim, conv_dim, 4, 4)),
        "bn3_g": jnp.ones((conv_dim,), jnp.float32),
        "bn3_b": jnp.zeros((conv_dim,), jnp.float32),
        "deconv2_w": w_init(ks[4], (conv_dim, 3, 4, 4)),
    }

    x = jax.random.normal(ks[5], (B, 3, H, W), jnp.float32)
    # sample_noise: torch.rand * 2 - 1  ~  U[-1, 1).
    # TODO(synk): distributionally equivalent to the torch RNG, not bit-exact.
    noise = jax.random.uniform(ks[6], (B, noise_dim, H // 4, W // 4),
                               jnp.float32, minval=-1.0, maxval=1.0)

    eparams = prepare_generator_params(params)
    out = cycle_generator_forward(x, eparams, noise)
    out = jax.block_until_ready(out)

    assert out.shape == (B, 3, H, W), out.shape
    assert out.dtype == jnp.float32
    assert bool(jnp.all(jnp.isfinite(out)))
    assert bool(jnp.all(jnp.abs(out) <= 1.0 + 1e-6))     # tanh output range

    # Numerical self-check against a plain-XLA f32 reference of the same module.
    # Tolerance re-derived for bf16 matmul operands (was 2e-2 with f32 matmuls);
    # a roll/mask/layout bug would produce O(1) errors and still be caught.
    ref = _reference_forward(x, params, noise)
    err = float(jnp.max(jnp.abs(out - ref)))
    assert err < 5e-2, f"mismatch vs XLA reference: max abs err = {err}"

    print("KERNEL_OK")
</pallas_src>

<mosaic_0001>
module attributes {stable_mosaic.version = 11 : i64} {
  func.func @kernel(%arg0: memref<48x128xf32, #tpu.memory_space<vmem>>, %arg1: memref<8x128xf32, #tpu.memory_space<vmem>>, %arg2: memref<9x1x128xf32, #tpu.memory_space<vmem>>, %arg3: memref<9x64x48xbf16, #tpu.memory_space<vmem>>, %arg4: memref<64x1xf32, #tpu.memory_space<vmem>>, %arg5: memref<64x1xf32, #tpu.memory_space<vmem>>, %arg6: memref<9x32x64xbf16, #tpu.memory_space<vmem>>, %arg7: memref<32x1xf32, #tpu.memory_space<vmem>>, %arg8: memref<32x1xf32, #tpu.memory_space<vmem>>, %arg9: memref<9x32x32xbf16, #tpu.memory_space<vmem>>, %arg10: memref<32x1xf32, #tpu.memory_space<vmem>>, %arg11: memref<32x1xf32, #tpu.memory_space<vmem>>, %arg12: memref<9x64x40xbf16, #tpu.memory_space<vmem>>, %arg13: memref<64x1xf32, #tpu.memory_space<vmem>>, %arg14: memref<64x1xf32, #tpu.memory_space<vmem>>, %arg15: memref<9x48x64xbf16, #tpu.memory_space<vmem>>, %arg16: memref<48x128xf32, #tpu.memory_space<vmem>>) attributes {dimension_semantics = [], scalar_prefetch = 0 : i64, scratch_operands = 0 : i64, tpu.core_type = #tpu.core_type<tc>} {
    %c0 = arith.constant 0 : index
    %c0_0 = arith.constant 0 : index
    %0 = vector.load %arg0[%c0, %c0_0] : memref<48x128xf32, #tpu.memory_space<vmem>>, vector<48x128xf32>
    %c9_i32 = arith.constant 9 : i32
    %1 = tpu.dynamic_rotate %0 by %c9_i32 dim 1 : vector<48x128xf32>, i32 -> vector<48x128xf32>
    %c0_1 = arith.constant 0 : index
    %c0_2 = arith.constant 0 : index
    %c0_3 = arith.constant 0 : index
    %2 = vector.load %arg2[%c0_1, %c0_2, %c0_3] : memref<9x1x128xf32, #tpu.memory_space<vmem>>, vector<1x1x128xf32>
    %3 = vector.shape_cast %2 : vector<1x1x128xf32> to vector<1x128xf32>
    %4 = vector.broadcast %3 : vector<1x128xf32> to vector<48x128xf32>
    %5 = arith.mulf %1, %4 : vector<48x128xf32>
    %6 = arith.truncf %5 : vector<48x128xf32> to vector<48x128xbf16>
    %c0_4 = arith.constant 0 : index
    %c0_5 = arith.constant 0 : index
    %c0_6 = arith.constant 0 : index
    %7 = vector.load %arg3[%c0_4, %c0_5, %c0_6] : memref<9x64x48xbf16, #tpu.memory_space<vmem>>, vector<1x64x48xbf16>
    %8 = vector.shape_cast %7 : vector<1x64x48xbf16> to vector<64x48xbf16>
    %cst = arith.constant dense<0.000000e+00> : vector<64x128xf32>
    %9 = tpu.matmul %8, %6, %cst {dimension_numbers = #tpu.dot_dimension_numbers<[1], [0], [0], [1], [0, 0, 1, 1], [], []>} : vector<64x48xbf16>, vector<48x128xbf16>, vector<64x128xf32> -> vector<64x128xf32>
    %c8_i32 = arith.constant 8 : i32
    %10 = tpu.dynamic_rotate %0 by %c8_i32 dim 1 : vector<48x128xf32>, i32 -> vector<48x128xf32>
    %c1 = arith.constant 1 : index
    %c0_7 = arith.constant 0 : index
    %c0_8 = arith.constant 0 : index
    %11 = vector.load %arg2[%c1, %c0_7, %c0_8] : memref<9x1x128xf32, #tpu.memory_space<vmem>>, vector<1x1x128xf32>
    %12 = vector.shape_cast %11 : vector<1x1x128xf32> to vector<1x128xf32>
    %13 = vector.broadcast %12 : vector<1x128xf32> to vector<48x128xf32>
    %14 = arith.mulf %10, %13 : vector<48x128xf32>
    %15 = arith.truncf %14 : vector<48x128xf32> to vector<48x128xbf16>
    %c1_9 = arith.constant 1 : index
    %c0_10 = arith.constant 0 : index
    %c0_11 = arith.constant 0 : index
    %16 = vector.load %arg3[%c1_9, %c0_10, %c0_11] : memref<9x64x48xbf16, #tpu.memory_space<vmem>>, vector<1x64x48xbf16>
    %17 = vector.shape_cast %16 : vector<1x64x48xbf16> to vector<64x48xbf16>
    %cst_12 = arith.constant dense<0.000000e+00> : vector<64x128xf32>
    %18 = tpu.matmul %17, %15, %cst_12 {dimension_numbers = #tpu.dot_dimension_numbers<[1], [0], [0], [1], [0, 0, 1, 1], [], []>} : vector<64x48xbf16>, vector<48x128xbf16>, vector<64x128xf32> -> vector<64x128xf32>
    %19 = arith.addf %9, %18 : vector<64x128xf32>
    %c7_i32 = arith.constant 7 : i32
    %20 = tpu.dynamic_rotate %0 by %c7_i32 dim 1 : vector<48x128xf32>, i32 -> vector<48x128xf32>
    %c2 = arith.constant 2 : index
    %c0_13 = arith.constant 0 : index
    %c0_14 = arith.constant 0 : index
    %21 = vector.load %arg2[%c2, %c0_13, %c0_14] : memref<9x1x128xf32, #tpu.memory_space<vmem>>, vector<1x1x128xf32>
    %22 = vector.shape_cast %21 : vector<1x1x128xf32> to vector<1x128xf32>
    %23 = vector.broadcast %22 : vector<1x128xf32> to vector<48x128xf32>
    %24 = arith.mulf %20, %23 : vector<48x128xf32>
    %25 = arith.truncf %24 : vector<48x128xf32> to vector<48x128xbf16>
    %c2_15 = arith.constant 2 : index
    %c0_16 = arith.constant 0 : index
    %c0_17 = arith.constant 0 : index
    %26 = vector.load %arg3[%c2_15, %c0_16, %c0_17] : memref<9x64x48xbf16, #tpu.memory_space<vmem>>, vector<1x64x48xbf16>
    %27 = vector.shape_cast %26 : vector<1x64x48xbf16> to vector<64x48xbf16>
    %cst_18 = arith.constant dense<0.000000e+00> : vector<64x128xf32>
    %28 = tpu.matmul %27, %25, %cst_18 {dimension_numbers = #tpu.dot_dimension_numbers<[1], [0], [0], [1], [0, 0, 1, 1], [], []>} : vector<64x48xbf16>, vector<48x128xbf16>, vector<64x128xf32> -> vector<64x128xf32>
    %29 = arith.addf %19, %28 : vector<64x128xf32>
    %c1_i32 = arith.constant 1 : i32
    %30 = tpu.dynamic_rotate %0 by %c1_i32 dim 1 : vector<48x128xf32>, i32 -> vector<48x128xf32>
    %c3 = arith.constant 3 : index
    %c0_19 = arith.constant 0 : index
    %c0_20 = arith.constant 0 : index
    %31 = vector.load %arg2[%c3, %c0_19, %c0_20] : memref<9x1x128xf32, #tpu.memory_space<vmem>>, vector<1x1x128xf32>
    %32 = vector.shape_cast %31 : vector<1x1x128xf32> to vector<1x128xf32>
    %33 = vector.broadcast %32 : vector<1x128xf32> to vector<48x128xf32>
    %34 = arith.mulf %30, %33 : vector<48x128xf32>
    %35 = arith.truncf %34 : vector<48x128xf32> to vector<48x128xbf16>
    %c3_21 = arith.constant 3 : index
    %c0_22 = arith.constant 0 : index
    %c0_23 = arith.constant 0 : index
    %36 = vector.load %arg3[%c3_21, %c0_22, %c0_23] : memref<9x64x48xbf16, #tpu.memory_space<vmem>>, vector<1x64x48xbf16>
    %37 = vector.shape_cast %36 : vector<1x64x48xbf16> to vector<64x48xbf16>
    %cst_24 = arith.constant dense<0.000000e+00> : vector<64x128xf32>
    %38 = tpu.matmul %37, %35, %cst_24 {dimension_numbers = #tpu.dot_dimension_numbers<[1], [0], [0], [1], [0, 0, 1, 1], [], []>} : vector<64x48xbf16>, vector<48x128xbf16>, vector<64x128xf32> -> vector<64x128xf32>
    %39 = arith.addf %29, %38 : vector<64x128xf32>
    %40 = arith.truncf %0 : vector<48x128xf32> to vector<48x128xbf16>
    %c4 = arith.constant 4 : index
    %c0_25 = arith.constant 0 : index
    %c0_26 = arith.constant 0 : index
    %41 = vector.load %arg3[%c4, %c0_25, %c0_26] : memref<9x64x48xbf16, #tpu.memory_space<vmem>>, vector<1x64x48xbf16>
    %42 = vector.shape_cast %41 : vector<1x64x48xbf16> to vector<64x48xbf16>
    %cst_27 = arith.constant dense<0.000000e+00> : vector<64x128xf32>
    %43 = tpu.matmul %42, %40, %cst_27 {dimension_numbers = #tpu.dot_dimension_numbers<[1], [0], [0], [1], [0, 0, 1, 1], [], []>} : vector<64x48xbf16>, vector<48x128xbf16>, vector<64x128xf32> -> vector<64x128xf32>
    %44 = arith.addf %39, %43 : vector<64x128xf32>
    %c127_i32 = arith.constant 127 : i32
    %45 = tpu.dynamic_rotate %0 by %c127_i32 dim 1 : vector<48x128xf32>, i32 -> vector<48x128xf32>
    %c5 = arith.constant 5 : index
    %c0_28 = arith.constant 0 : index
    %c0_29 = arith.constant 0 : index
    %46 = vector.load %arg2[%c5, %c0_28, %c0_29] : memref<9x1x128xf32, #tpu.memory_space<vmem>>, vector<1x1x128xf32>
    %47 = vector.shape_cast %46 : vector<1x1x128xf32> to vector<1x128xf32>
    %48 = vector.broadcast %47 : vector<1x128xf32> to vector<48x128xf32>
    %49 = arith.mulf %45, %48 : vector<48x128xf32>
    %50 = arith.truncf %49 : vector<48x128xf32> to vector<48x128xbf16>
    %c5_30 = arith.constant 5 : index
    %c0_31 = arith.constant 0 : index
    %c0_32 = arith.constant 0 : index
    %51 = vector.load %arg3[%c5_30, %c0_31, %c0_32] : memref<9x64x48xbf16, #tpu.memory_space<vmem>>, vector<1x64x48xbf16>
    %52 = vector.shape_cast %51 : vector<1x64x48xbf16> to vector<64x48xbf16>
    %cst_33 = arith.constant dense<0.000000e+00> : vector<64x128xf32>
    %53 = tpu.matmul %52, %50, %cst_33 {dimension_numbers = #tpu.dot_dimension_numbers<[1], [0], [0], [1], [0, 0, 1, 1], [], []>} : vector<64x48xbf16>, vector<48x128xbf16>, vector<64x128xf32> -> vector<64x128xf32>
    %54 = arith.addf %44, %53 : vector<64x128xf32>
    %c121_i32 = arith.constant 121 : i32
    %55 = tpu.dynamic_rotate %0 by %c121_i32 dim 1 : vector<48x128xf32>, i32 -> vector<48x128xf32>
    %c6 = arith.constant 6 : index
    %c0_34 = arith.constant 0 : index
    %c0_35 = arith.constant 0 : index
    %56 = vector.load %arg2[%c6, %c0_34, %c0_35] : memref<9x1x128xf32, #tpu.memory_space<vmem>>, vector<1x1x128xf32>
    %57 = vector.shape_cast %56 : vector<1x1x128xf32> to vector<1x128xf32>
    %58 = vector.broadcast %57 : vector<1x128xf32> to vector<48x128xf32>
    %59 = arith.mulf %55, %58 : vector<48x128xf32>
    %60 = arith.truncf %59 : vector<48x128xf32> to vector<48x128xbf16>
    %c6_36 = arith.constant 6 : index
    %c0_37 = arith.constant 0 : index
    %c0_38 = arith.constant 0 : index
    %61 = vector.load %arg3[%c6_36, %c0_37, %c0_38] : memref<9x64x48xbf16, #tpu.memory_space<vmem>>, vector<1x64x48xbf16>
    %62 = vector.shape_cast %61 : vector<1x64x48xbf16> to vector<64x48xbf16>
    %cst_39 = arith.constant dense<0.000000e+00> : vector<64x128xf32>
    %63 = tpu.matmul %62, %60, %cst_39 {dimension_numbers = #tpu.dot_dimension_numbers<[1], [0], [0], [1], [0, 0, 1, 1], [], []>} : vector<64x48xbf16>, vector<48x128xbf16>, vector<64x128xf32> -> vector<64x128xf32>
    %64 = arith.addf %54, %63 : vector<64x128xf32>
    %c120_i32 = arith.constant 120 : i32
    %65 = tpu.dynamic_rotate %0 by %c120_i32 dim 1 : vector<48x128xf32>, i32 -> vector<48x128xf32>
    %c7 = arith.constant 7 : index
    %c0_40 = arith.constant 0 : index
    %c0_41 = arith.constant 0 : index
    %66 = vector.load %arg2[%c7, %c0_40, %c0_41] : memref<9x1x128xf32, #tpu.memory_space<vmem>>, vector<1x1x128xf32>
    %67 = vector.shape_cast %66 : vector<1x1x128xf32> to vector<1x128xf32>
    %68 = vector.broadcast %67 : vector<1x128xf32> to vector<48x128xf32>
    %69 = arith.mulf %65, %68 : vector<48x128xf32>
    %70 = arith.truncf %69 : vector<48x128xf32> to vector<48x128xbf16>
    %c7_42 = arith.constant 7 : index
    %c0_43 = arith.constant 0 : index
    %c0_44 = arith.constant 0 : index
    %71 = vector.load %arg3[%c7_42, %c0_43, %c0_44] : memref<9x64x48xbf16, #tpu.memory_space<vmem>>, vector<1x64x48xbf16>
    %72 = vector.shape_cast %71 : vector<1x64x48xbf16> to vector<64x48xbf16>
    %cst_45 = arith.constant dense<0.000000e+00> : vector<64x128xf32>
    %73 = tpu.matmul %72, %70, %cst_45 {dimension_numbers = #tpu.dot_dimension_numbers<[1], [0], [0], [1], [0, 0, 1, 1], [], []>} : vector<64x48xbf16>, vector<48x128xbf16>, vector<64x128xf32> -> vector<64x128xf32>
    %74 = arith.addf %64, %73 : vector<64x128xf32>
    %c119_i32 = arith.constant 119 : i32
    %75 = tpu.dynamic_rotate %0 by %c119_i32 dim 1 : vector<48x128xf32>, i32 -> vector<48x128xf32>
    %c8 = arith.constant 8 : index
    %c0_46 = arith.constant 0 : index
    %c0_47 = arith.constant 0 : index
    %76 = vector.load %arg2[%c8, %c0_46, %c0_47] : memref<9x1x128xf32, #tpu.memory_space<vmem>>, vector<1x1x128xf32>
    %77 = vector.shape_cast %76 : vector<1x1x128xf32> to vector<1x128xf32>
    %78 = vector.broadcast %77 : vector<1x128xf32> to vector<48x128xf32>
    %79 = arith.mulf %75, %78 : vector<48x128xf32>
    %80 = arith.truncf %79 : vector<48x128xf32> to vector<48x128xbf16>
    %c8_48 = arith.constant 8 : index
    %c0_49 = arith.constant 0 : index
    %c0_50 = arith.constant 0 : index
    %81 = vector.load %arg3[%c8_48, %c0_49, %c0_50] : memref<9x64x48xbf16, #tpu.memory_space<vmem>>, vector<1x64x48xbf16>
    %82 = vector.shape_cast %81 : vector<1x64x48xbf16> to vector<64x48xbf16>
    %cst_51 = arith.constant dense<0.000000e+00> : vector<64x128xf32>
    %83 = tpu.matmul %82, %80, %cst_51 {dimension_numbers = #tpu.dot_dimension_numbers<[1], [0], [0], [1], [0, 0, 1, 1], [], []>} : vector<64x48xbf16>, vector<48x128xbf16>, vector<64x128xf32> -> vector<64x128xf32>
    %84 = arith.addf %74, %83 : vector<64x128xf32>
    %cst_52 = arith.constant dense<0.000000e+00> : vector<64xf32>
    %85 = vector.multi_reduction <add>, %84, %cst_52 [1] : vector<64x128xf32> to vector<64xf32>
    %86 = vector.shape_cast %85 : vector<64xf32> to vector<64x1xf32>
    %87 = arith.mulf %84, %84 : vector<64x128xf32>
    %cst_53 = arith.constant dense<0.000000e+00> : vector<64xf32>
    %88 = vector.multi_reduction <add>, %87, %cst_53 [1] : vector<64x128xf32> to vector<64xf32>
    %89 = vector.shape_cast %88 : vector<64xf32> to vector<64x1xf32>
    %90 = vector.extract_strided_slice %86 {offsets = [0, 0], sizes = [16, 1], strides = [1, 1]} : vector<64x1xf32> to vector<16x1xf32>
    %91 = vector.extract_strided_slice %89 {offsets = [0, 0], sizes = [16, 1], strides = [1, 1]} : vector<64x1xf32> to vector<16x1xf32>
    %92 = vector.extract_strided_slice %86 {offsets = [16, 0], sizes = [16, 1], strides = [1, 1]} : vector<64x1xf32> to vector<16x1xf32>
    %93 = arith.addf %90, %92 : vector<16x1xf32>
    %94 = vector.extract_strided_slice %89 {offsets = [16, 0], sizes = [16, 1], strides = [1, 1]} : vector<64x1xf32> to vector<16x1xf32>
    %95 = arith.addf %91, %94 : vector<16x1xf32>
    %96 = vector.extract_strided_slice %86 {offsets = [32, 0], sizes = [16, 1], strides = [1, 1]} : vector<64x1xf32> to vector<16x1xf32>
    %97 = arith.addf %93, %96 : vector<16x1xf32>
    %98 = vector.extract_strided_slice %89 {offsets = [32, 0], sizes = [16, 1], strides = [1, 1]} : vector<64x1xf32> to vector<16x1xf32>
    %99 = arith.addf %95, %98 : vector<16x1xf32>
    %100 = vector.extract_strided_slice %86 {offsets = [48, 0], sizes = [16, 1], strides = [1, 1]} : vector<64x1xf32> to vector<16x1xf32>
    %101 = arith.addf %97, %100 : vector<16x1xf32>
    %102 = vector.extract_strided_slice %89 {offsets = [48, 0], sizes = [16, 1], strides = [1, 1]} : vector<64x1xf32> to vector<16x1xf32>
    %103 = arith.addf %99, %102 : vector<16x1xf32>
    %cst_54 = arith.constant 5.120000e+02 : f32
    %104 = vector.broadcast %cst_54 : f32 to vector<16x1xf32>
    %105 = arith.divf %101, %104 : vector<16x1xf32>
    %106 = tpu.concatenate %105, %105, %105, %105 in 0 : vector<16x1xf32>, vector<16x1xf32>, vector<16x1xf32>, vector<16x1xf32> -> vector<64x1xf32>
    %cst_55 = arith.constant 5.120000e+02 : f32
    %107 = vector.broadcast %cst_55 : f32 to vector<16x1xf32>
    %108 = arith.divf %103, %107 : vector<16x1xf32>
    %109 = tpu.concatenate %108, %108, %108, %108 in 0 : vector<16x1xf32>, vector<16x1xf32>, vector<16x1xf32>, vector<16x1xf32> -> vector<64x1xf32>
    %110 = arith.mulf %106, %106 : vector<64x1xf32>
    %111 = arith.subf %109, %110 : vector<64x1xf32>
    %c0_56 = arith.constant 0 : index
    %c0_57 = arith.constant 0 : index
    %112 = vector.load %arg4[%c0_56, %c0_57] : memref<64x1xf32, #tpu.memory_space<vmem>>, vector<64x1xf32>
    %cst_58 = arith.constant 9.99999974E-6 : f32
    %113 = vector.broadcast %cst_58 : f32 to vector<64x1xf32>
    %114 = arith.addf %111, %113 : vector<64x1xf32>
    %115 = math.rsqrt %114 : vector<64x1xf32>
    %116 = arith.mulf %112, %115 : vector<64x1xf32>
    %117 = vector.broadcast %106 : vector<64x1xf32> to vector<64x128xf32>
    %118 = arith.subf %84, %117 : vector<64x128xf32>
    %119 = vector.broadcast %116 : vector<64x1xf32> to vector<64x128xf32>
    %120 = arith.mulf %118, %119 : vector<64x128xf32>
    %c0_59 = arith.constant 0 : index
    %c0_60 = arith.constant 0 : index
    %121 = vector.load %arg5[%c0_59, %c0_60] : memref<64x1xf32, #tpu.memory_space<vmem>>, vector<64x1xf32>
    %122 = vector.broadcast %121 : vector<64x1xf32> to vector<64x128xf32>
    %123 = arith.addf %120, %122 : vector<64x128xf32>
    %cst_61 = arith.constant 0.000000e+00 : f32
    %124 = vector.broadcast %cst_61 : f32 to vector<64x128xf32>
    %125 = arith.maximumf %123, %124 : vector<64x128xf32>
    %c9_i32_62 = arith.constant 9 : i32
    %126 = tpu.dynamic_rotate %125 by %c9_i32_62 dim 1 : vector<64x128xf32>, i32 -> vector<64x128xf32>
    %c0_63 = arith.constant 0 : index
    %c0_64 = arith.constant 0 : index
    %c0_65 = arith.constant 0 : index
    %127 = vector.load %arg2[%c0_63, %c0_64, %c0_65] : memref<9x1x128xf32, #tpu.memory_space<vmem>>, vector<1x1x128xf32>
    %128 = vector.shape_cast %127 : vector<1x1x128xf32> to vector<1x128xf32>
    %129 = vector.broadcast %128 : vector<1x128xf32> to vector<64x128xf32>
    %130 = arith.mulf %126, %129 : vector<64x128xf32>
    %131 = arith.truncf %130 : vector<64x128xf32> to vector<64x128xbf16>
    %c0_66 = arith.constant 0 : index
    %c0_67 = arith.constant 0 : index
    %c0_68 = arith.constant 0 : index
    %132 = vector.load %arg6[%c0_66, %c0_67, %c0_68] : memref<9x32x64xbf16, #tpu.memory_space<vmem>>, vector<1x32x64xbf16>
    %133 = vector.shape_cast %132 : vector<1x32x64xbf16> to vector<32x64xbf16>
    %cst_69 = arith.constant dense<0.000000e+00> : vector<32x128xf32>
    %134 = tpu.matmul %133, %131, %cst_69 {dimension_numbers = #tpu.dot_dimension_numbers<[1], [0], [0], [1], [0, 0, 1, 1], [], []>} : vector<32x64xbf16>, vector<64x128xbf16>, vector<32x128xf32> -> vector<32x128xf32>
    %c8_i32_70 = arith.constant 8 : i32
    %135 = tpu.dynamic_rotate %125 by %c8_i32_70 dim 1 : vector<64x128xf32>, i32 -> vector<64x128xf32>
    %c1_71 = arith.constant 1 : index
    %c0_72 = arith.constant 0 : index
    %c0_73 = arith.constant 0 : index
    %136 = vector.load %arg2[%c1_71, %c0_72, %c0_73] : memref<9x1x128xf32, #tpu.memory_space<vmem>>, vector<1x1x128xf32>
    %137 = vector.shape_cast %136 : vector<1x1x128xf32> to vector<1x128xf32>
    %138 = vector.broadcast %137 : vector<1x128xf32> to vector<64x128xf32>
    %139 = arith.mulf %135, %138 : vector<64x128xf32>
    %140 = arith.truncf %139 : vector<64x128xf32> to vector<64x128xbf16>
    %c1_74 = arith.constant 1 : index
    %c0_75 = arith.constant 0 : index
    %c0_76 = arith.constant 0 : index
    %141 = vector.load %arg6[%c1_74, %c0_75, %c0_76] : memref<9x32x64xbf16, #tpu.memory_space<vmem>>, vector<1x32x64xbf16>
    %142 = vector.shape_cast %141 : vector<1x32x64xbf16> to vector<32x64xbf16>
    %cst_77 = arith.constant dense<0.000000e+00> : vector<32x128xf32>
    %143 = tpu.matmul %142, %140, %cst_77 {dimension_numbers = #tpu.dot_dimension_numbers<[1], [0], [0], [1], [0, 0, 1, 1], [], []>} : vector<32x64xbf16>, vector<64x128xbf16>, vector<32x128xf32> -> vector<32x128xf32>
    %144 = arith.addf %134, %143 : vector<32x128xf32>
    %c7_i32_78 = arith.constant 7 : i32
    %145 = tpu.dynamic_rotate %125 by %c7_i32_78 dim 1 : vector<64x128xf32>, i32 -> vector<64x128xf32>
    %c2_79 = arith.constant 2 : index
    %c0_80 = arith.constant 0 : index
    %c0_81 = arith.constant 0 : index
    %146 = vector.load %arg2[%c2_79, %c0_80, %c0_81] : memref<9x1x128xf32, #tpu.memory_space<vmem>>, vector<1x1x128xf32>
    %147 = vector.shape_cast %146 : vector<1x1x128xf32> to vector<1x128xf32>
    %148 = vector.broadcast %147 : vector<1x128xf32> to vector<64x128xf32>
    %149 = arith.mulf %145, %148 : vector<64x128xf32>
    %150 = arith.truncf %149 : vector<64x128xf32> to vector<64x128xbf16>
    %c2_82 = arith.constant 2 : index
    %c0_83 = arith.constant 0 : index
    %c0_84 = arith.constant 0 : index
    %151 = vector.load %arg6[%c2_82, %c0_83, %c0_84] : memref<9x32x64xbf16, #tpu.memory_space<vmem>>, vector<1x32x64xbf16>
    %152 = vector.shape_cast %151 : vector<1x32x64xbf16> to vector<32x64xbf16>
    %cst_85 = arith.constant dense<0.000000e+00> : vector<32x128xf32>
    %153 = tpu.matmul %152, %150, %cst_85 {dimension_numbers = #tpu.dot_dimension_numbers<[1], [0], [0], [1], [0, 0, 1, 1], [], []>} : vector<32x64xbf16>, vector<64x128xbf16>, vector<32x128xf32> -> vector<32x128xf32>
    %154 = arith.addf %144, %153 : vector<32x128xf32>
    %c1_i32_86 = arith.constant 1 : i32
    %155 = tpu.dynamic_rotate %125 by %c1_i32_86 dim 1 : vector<64x128xf32>, i32 -> vector<64x128xf32>
    %c3_87 = arith.constant 3 : index
    %c0_88 = arith.constant 0 : index
    %c0_89 = arith.constant 0 : index
    %156 = vector.load %arg2[%c3_87, %c0_88, %c0_89] : memref<9x1x128xf32, #tpu.memory_space<vmem>>, vector<1x1x128xf32>
    %157 = vector.shape_cast %156 : vector<1x1x128xf32> to vector<1x128xf32>
    %158 = vector.broadcast %157 : vector<1x128xf32> to vector<64x128xf32>
    %159 = arith.mulf %155, %158 : vector<64x128xf32>
    %160 = arith.truncf %159 : vector<64x128xf32> to vector<64x128xbf16>
    %c3_90 = arith.constant 3 : index
    %c0_91 = arith.constant 0 : index
    %c0_92 = arith.constant 0 : index
    %161 = vector.load %arg6[%c3_90, %c0_91, %c0_92] : memref<9x32x64xbf16, #tpu.memory_space<vmem>>, vector<1x32x64xbf16>
    %162 = vector.shape_cast %161 : vector<1x32x64xbf16> to vector<32x64xbf16>
    %cst_93 = arith.constant dense<0.000000e+00> : vector<32x128xf32>
    %163 = tpu.matmul %162, %160, %cst_93 {dimension_numbers = #tpu.dot_dimension_numbers<[1], [0], [0], [1], [0, 0, 1, 1], [], []>} : vector<32x64xbf16>, vector<64x128xbf16>, vector<32x128xf32> -> vector<32x128xf32>
    %164 = arith.addf %154, %163 : vector<32x128xf32>
    %165 = arith.truncf %125 : vector<64x128xf32> to vector<64x128xbf16>
    %c4_94 = arith.constant 4 : index
    %c0_95 = arith.constant 0 : index
    %c0_96 = arith.constant 0 : index
    %166 = vector.load %arg6[%c4_94, %c0_95, %c0_96] : memref<9x32x64xbf16, #tpu.memory_space<vmem>>, vector<1x32x64xbf16>
    %167 = vector.shape_cast %166 : vector<1x32x64xbf16> to vector<32x64xbf16>
    %cst_97 = arith.constant dense<0.000000e+00> : vector<32x128xf32>
    %168 = tpu.matmul %167, %165, %cst_97 {dimension_numbers = #tpu.dot_dimension_numbers<[1], [0], [0], [1], [0, 0, 1, 1], [], []>} : vector<32x64xbf16>, vector<64x128xbf16>, vector<32x128xf32> -> vector<32x128xf32>
    %169 = arith.addf %164, %168 : vector<32x128xf32>
    %c127_i32_98 = arith.constant 127 : i32
    %170 = tpu.dynamic_rotate %125 by %c127_i32_98 dim 1 : vector<64x128xf32>, i32 -> vector<64x128xf32>
    %c5_99 = arith.constant 5 : index
    %c0_100 = arith.constant 0 : index
    %c0_101 = arith.constant 0 : index
    %171 = vector.load %arg2[%c5_99, %c0_100, %c0_101] : memref<9x1x128xf32, #tpu.memory_space<vmem>>, vector<1x1x128xf32>
    %172 = vector.shape_cast %171 : vector<1x1x128xf32> to vector<1x128xf32>
    %173 = vector.broadcast %172 : vector<1x128xf32> to vector<64x128xf32>
    %174 = arith.mulf %170, %173 : vector<64x128xf32>
    %175 = arith.truncf %174 : vector<64x128xf32> to vector<64x128xbf16>
    %c5_102 = arith.constant 5 : index
    %c0_103 = arith.constant 0 : index
    %c0_104 = arith.constant 0 : index
    %176 = vector.load %arg6[%c5_102, %c0_103, %c0_104] : memref<9x32x64xbf16, #tpu.memory_space<vmem>>, vector<1x32x64xbf16>
    %177 = vector.shape_cast %176 : vector<1x32x64xbf16> to vector<32x64xbf16>
    %cst_105 = arith.constant dense<0.000000e+00> : vector<32x128xf32>
    %178 = tpu.matmul %177, %175, %cst_105 {dimension_numbers = #tpu.dot_dimension_numbers<[1], [0], [0], [1], [0, 0, 1, 1], [], []>} : vector<32x64xbf16>, vector<64x128xbf16>, vector<32x128xf32> -> vector<32x128xf32>
    %179 = arith.addf %169, %178 : vector<32x128xf32>
    %c121_i32_106 = arith.constant 121 : i32
    %180 = tpu.dynamic_rotate %125 by %c121_i32_106 dim 1 : vector<64x128xf32>, i32 -> vector<64x128xf32>
    %c6_107 = arith.constant 6 : index
    %c0_108 = arith.constant 0 : index
    %c0_109 = arith.constant 0 : index
    %181 = vector.load %arg2[%c6_107, %c0_108, %c0_109] : memref<9x1x128xf32, #tpu.memory_space<vmem>>, vector<1x1x128xf32>
    %182 = vector.shape_cast %181 : vector<1x1x128xf32> to vector<1x128xf32>
    %183 = vector.broadcast %182 : vector<1x128xf32> to vector<64x128xf32>
    %184 = arith.mulf %180, %183 : vector<64x128xf32>
    %185 = arith.truncf %184 : vector<64x128xf32> to vector<64x128xbf16>
    %c6_110 = arith.constant 6 : index
    %c0_111 = arith.constant 0 : index
    %c0_112 = arith.constant 0 : index
    %186 = vector.load %arg6[%c6_110, %c0_111, %c0_112] : memref<9x32x64xbf16, #tpu.memory_space<vmem>>, vector<1x32x64xbf16>
    %187 = vector.shape_cast %186 : vector<1x32x64xbf16> to vector<32x64xbf16>
    %cst_113 = arith.constant dense<0.000000e+00> : vector<32x128xf32>
    %188 = tpu.matmul %187, %185, %cst_113 {dimension_numbers = #tpu.dot_dimension_numbers<[1], [0], [0], [1], [0, 0, 1, 1], [], []>} : vector<32x64xbf16>, vector<64x128xbf16>, vector<32x128xf32> -> vector<32x128xf32>
    %189 = arith.addf %179, %188 : vector<32x128xf32>
    %c120_i32_114 = arith.constant 120 : i32
    %190 = tpu.dynamic_rotate %125 by %c120_i32_114 dim 1 : vector<64x128xf32>, i32 -> vector<64x128xf32>
    %c7_115 = arith.constant 7 : index
    %c0_116 = arith.constant 0 : index
    %c0_117 = arith.constant 0 : index
    %191 = vector.load %arg2[%c7_115, %c0_116, %c0_117] : memref<9x1x128xf32, #tpu.memory_space<vmem>>, vector<1x1x128xf32>
    %192 = vector.shape_cast %191 : vector<1x1x128xf32> to vector<1x128xf32>
    %193 = vector.broadcast %192 : vector<1x128xf32> to vector<64x128xf32>
    %194 = arith.mulf %190, %193 : vector<64x128xf32>
    %195 = arith.truncf %194 : vector<64x128xf32> to vector<64x128xbf16>
    %c7_118 = arith.constant 7 : index
    %c0_119 = arith.constant 0 : index
    %c0_120 = arith.constant 0 : index
    %196 = vector.load %arg6[%c7_118, %c0_119, %c0_120] : memref<9x32x64xbf16, #tpu.memory_space<vmem>>, vector<1x32x64xbf16>
    %197 = vector.shape_cast %196 : vector<1x32x64xbf16> to vector<32x64xbf16>
    %cst_121 = arith.constant dense<0.000000e+00> : vector<32x128xf32>
    %198 = tpu.matmul %197, %195, %cst_121 {dimension_numbers = #tpu.dot_dimension_numbers<[1], [0], [0], [1], [0, 0, 1, 1], [], []>} : vector<32x64xbf16>, vector<64x128xbf16>, vector<32x128xf32> -> vector<32x128xf32>
    %199 = arith.addf %189, %198 : vector<32x128xf32>
    %c119_i32_122 = arith.constant 119 : i32
    %200 = tpu.dynamic_rotate %125 by %c119_i32_122 dim 1 : vector<64x128xf32>, i32 -> vector<64x128xf32>
    %c8_123 = arith.constant 8 : index
    %c0_124 = arith.constant 0 : index
    %c0_125 = arith.constant 0 : index
    %201 = vector.load %arg2[%c8_123, %c0_124, %c0_125] : memref<9x1x128xf32, #tpu.memory_space<vmem>>, vector<1x1x128xf32>
    %202 = vector.shape_cast %201 : vector<1x1x128xf32> to vector<1x128xf32>
    %203 = vector.broadcast %202 : vector<1x128xf32> to vector<64x128xf32>
    %204 = arith.mulf %200, %203 : vector<64x128xf32>
    %205 = arith.truncf %204 : vector<64x128xf32> to vector<64x128xbf16>
    %c8_126 = arith.constant 8 : index
    %c0_127 = arith.constant 0 : index
    %c0_128 = arith.constant 0 : index
    %206 = vector.load %arg6[%c8_126, %c0_127, %c0_128] : memref<9x32x64xbf16, #tpu.memory_space<vmem>>, vector<1x32x64xbf16>
    %207 = vector.shape_cast %206 : vector<1x32x64xbf16> to vector<32x64xbf16>
    %cst_129 = arith.constant dense<0.000000e+00> : vector<32x128xf32>
    %208 = tpu.matmul %207, %205, %cst_129 {dimension_numbers = #tpu.dot_dimension_numbers<[1], [0], [0], [1], [0, 0, 1, 1], [], []>} : vector<32x64xbf16>, vector<64x128xbf16>, vector<32x128xf32> -> vector<32x128xf32>
    %209 = arith.addf %199, %208 : vector<32x128xf32>
    %cst_130 = arith.constant dense<0.000000e+00> : vector<32xf32>
    %210 = vector.multi_reduction <add>, %209, %cst_130 [1] : vector<32x128xf32> to vector<32xf32>
    %211 = vector.shape_cast %210 : vector<32xf32> to vector<32x1xf32>
    %212 = arith.mulf %209, %209 : vector<32x128xf32>
    %cst_131 = arith.constant dense<0.000000e+00> : vector<32xf32>
    %213 = vector.multi_reduction <add>, %212, %cst_131 [1] : vector<32x128xf32> to vector<32xf32>
    %214 = vector.shape_cast %213 : vector<32xf32> to vector<32x1xf32>
    %cst_132 = arith.constant 1.280000e+02 : f32
    %215 = vector.broadcast %cst_132 : f32 to vector<32x1xf32>
    %216 = arith.divf %211, %215 : vector<32x1xf32>
    %cst_133 = arith.constant 1.280000e+02 : f32
    %217 = vector.broadcast %cst_133 : f32 to vector<32x1xf32>
    %218 = arith.divf %214, %217 : vector<32x1xf32>
    %219 = arith.mulf %216, %216 : vector<32x1xf32>
    %220 = arith.subf %218, %219 : vector<32x1xf32>
    %c0_134 = arith.constant 0 : index
    %c0_135 = arith.constant 0 : index
    %221 = vector.load %arg7[%c0_134, %c0_135] : memref<32x1xf32, #tpu.memory_space<vmem>>, vector<32x1xf32>
    %cst_136 = arith.constant 9.99999974E-6 : f32
    %222 = vector.broadcast %cst_136 : f32 to vector<32x1xf32>
    %223 = arith.addf %220, %222 : vector<32x1xf32>
    %224 = math.rsqrt %223 : vector<32x1xf32>
    %225 = arith.mulf %221, %224 : vector<32x1xf32>
    %226 = vector.broadcast %216 : vector<32x1xf32> to vector<32x128xf32>
    %227 = arith.subf %209, %226 : vector<32x128xf32>
    %228 = vector.broadcast %225 : vector<32x1xf32> to vector<32x128xf32>
    %229 = arith.mulf %227, %228 : vector<32x128xf32>
    %c0_137 = arith.constant 0 : index
    %c0_138 = arith.constant 0 : index
    %230 = vector.load %arg8[%c0_137, %c0_138] : memref<32x1xf32, #tpu.memory_space<vmem>>, vector<32x1xf32>
    %231 = vector.broadcast %230 : vector<32x1xf32> to vector<32x128xf32>
    %232 = arith.addf %229, %231 : vector<32x128xf32>
    %cst_139 = arith.constant 0.000000e+00 : f32
    %233 = vector.broadcast %cst_139 : f32 to vector<32x128xf32>
    %234 = arith.maximumf %232, %233 : vector<32x128xf32>
    %c9_i32_140 = arith.constant 9 : i32
    %235 = tpu.dynamic_rotate %234 by %c9_i32_140 dim 1 : vector<32x128xf32>, i32 -> vector<32x128xf32>
    %c0_141 = arith.constant 0 : index
    %c0_142 = arith.constant 0 : index
    %c0_143 = arith.constant 0 : index
    %236 = vector.load %arg2[%c0_141, %c0_142, %c0_143] : memref<9x1x128xf32, #tpu.memory_space<vmem>>, vector<1x1x128xf32>
    %237 = vector.shape_cast %236 : vector<1x1x128xf32> to vector<1x128xf32>
    %238 = vector.broadcast %237 : vector<1x128xf32> to vector<32x128xf32>
    %239 = arith.mulf %235, %238 : vector<32x128xf32>
    %240 = arith.truncf %239 : vector<32x128xf32> to vector<32x128xbf16>
    %c0_144 = arith.constant 0 : index
    %c0_145 = arith.constant 0 : index
    %c0_146 = arith.constant 0 : index
    %241 = vector.load %arg9[%c0_144, %c0_145, %c0_146] : memref<9x32x32xbf16, #tpu.memory_space<vmem>>, vector<1x32x32xbf16>
    %242 = vector.shape_cast %241 : vector<1x32x32xbf16> to vector<32x32xbf16>
    %cst_147 = arith.constant dense<0.000000e+00> : vector<32x128xf32>
    %243 = tpu.matmul %242, %240, %cst_147 {dimension_numbers = #tpu.dot_dimension_numbers<[1], [0], [0], [1], [0, 0, 1, 1], [], []>} : vector<32x32xbf16>, vector<32x128xbf16>, vector<32x128xf32> -> vector<32x128xf32>
    %c8_i32_148 = arith.constant 8 : i32
    %244 = tpu.dynamic_rotate %234 by %c8_i32_148 dim 1 : vector<32x128xf32>, i32 -> vector<32x128xf32>
    %c1_149 = arith.constant 1 : index
    %c0_150 = arith.constant 0 : index
    %c0_151 = arith.constant 0 : index
    %245 = vector.load %arg2[%c1_149, %c0_150, %c0_151] : memref<9x1x128xf32, #tpu.memory_space<vmem>>, vector<1x1x128xf32>
    %246 = vector.shape_cast %245 : vector<1x1x128xf32> to vector<1x128xf32>
    %247 = vector.broadcast %246 : vector<1x128xf32> to vector<32x128xf32>
    %248 = arith.mulf %244, %247 : vector<32x128xf32>
    %249 = arith.truncf %248 : vector<32x128xf32> to vector<32x128xbf16>
    %c1_152 = arith.constant 1 : index
    %c0_153 = arith.constant 0 : index
    %c0_154 = arith.constant 0 : index
    %250 = vector.load %arg9[%c1_152, %c0_153, %c0_154] : memref<9x32x32xbf16, #tpu.memory_space<vmem>>, vector<1x32x32xbf16>
    %251 = vector.shape_cast %250 : vector<1x32x32xbf16> to vector<32x32xbf16>
    %cst_155 = arith.constant dense<0.000000e+00> : vector<32x128xf32>
    %252 = tpu.matmul %251, %249, %cst_155 {dimension_numbers = #tpu.dot_dimension_numbers<[1], [0], [0], [1], [0, 0, 1, 1], [], []>} : vector<32x32xbf16>, vector<32x128xbf16>, vector<32x128xf32> -> vector<32x128xf32>
    %253 = arith.addf %243, %252 : vector<32x128xf32>
    %c7_i32_156 = arith.constant 7 : i32
    %254 = tpu.dynamic_rotate %234 by %c7_i32_156 dim 1 : vector<32x128xf32>, i32 -> vector<32x128xf32>
    %c2_157 = arith.constant 2 : index
    %c0_158 = arith.constant 0 : index
    %c0_159 = arith.constant 0 : index
    %255 = vector.load %arg2[%c2_157, %c0_158, %c0_159] : memref<9x1x128xf32, #tpu.memory_space<vmem>>, vector<1x1x128xf32>
    %256 = vector.shape_cast %255 : vector<1x1x128xf32> to vector<1x128xf32>
    %257 = vector.broadcast %256 : vector<1x128xf32> to vector<32x128xf32>
    %258 = arith.mulf %254, %257 : vector<32x128xf32>
    %259 = arith.truncf %258 : vector<32x128xf32> to vector<32x128xbf16>
    %c2_160 = arith.constant 2 : index
    %c0_161 = arith.constant 0 : index
    %c0_162 = arith.constant 0 : index
    %260 = vector.load %arg9[%c2_160, %c0_161, %c0_162] : memref<9x32x32xbf16, #tpu.memory_space<vmem>>, vector<1x32x32xbf16>
    %261 = vector.shape_cast %260 : vector<1x32x32xbf16> to vector<32x32xbf16>
    %cst_163 = arith.constant dense<0.000000e+00> : vector<32x128xf32>
    %262 = tpu.matmul %261, %259, %cst_163 {dimension_numbers = #tpu.dot_dimension_numbers<[1], [0], [0], [1], [0, 0, 1, 1], [], []>} : vector<32x32xbf16>, vector<32x128xbf16>, vector<32x128xf32> -> vector<32x128xf32>
    %263 = arith.addf %253, %262 : vector<32x128xf32>
    %c1_i32_164 = arith.constant 1 : i32
    %264 = tpu.dynamic_rotate %234 by %c1_i32_164 dim 1 : vector<32x128xf32>, i32 -> vector<32x128xf32>
    %c3_165 = arith.constant 3 : index
    %c0_166 = arith.constant 0 : index
    %c0_167 = arith.constant 0 : index
    %265 = vector.load %arg2[%c3_165, %c0_166, %c0_167] : memref<9x1x128xf32, #tpu.memory_space<vmem>>, vector<1x1x128xf32>
    %266 = vector.shape_cast %265 : vector<1x1x128xf32> to vector<1x128xf32>
    %267 = vector.broadcast %266 : vector<1x128xf32> to vector<32x128xf32>
    %268 = arith.mulf %264, %267 : vector<32x128xf32>
    %269 = arith.truncf %268 : vector<32x128xf32> to vector<32x128xbf16>
    %c3_168 = arith.constant 3 : index
    %c0_169 = arith.constant 0 : index
    %c0_170 = arith.constant 0 : index
    %270 = vector.load %arg9[%c3_168, %c0_169, %c0_170] : memref<9x32x32xbf16, #tpu.memory_space<vmem>>, vector<1x32x32xbf16>
    %271 = vector.shape_cast %270 : vector<1x32x32xbf16> to vector<32x32xbf16>
    %cst_171 = arith.constant dense<0.000000e+00> : vector<32x128xf32>
    %272 = tpu.matmul %271, %269, %cst_171 {dimension_numbers = #tpu.dot_dimension_numbers<[1], [0], [0], [1], [0, 0, 1, 1], [], []>} : vector<32x32xbf16>, vector<32x128xbf16>, vector<32x128xf32> -> vector<32x128xf32>
    %273 = arith.addf %263, %272 : vector<32x128xf32>
    %274 = arith.truncf %234 : vector<32x128xf32> to vector<32x128xbf16>
    %c4_172 = arith.constant 4 : index
    %c0_173 = arith.constant 0 : index
    %c0_174 = arith.constant 0 : index
    %275 = vector.load %arg9[%c4_172, %c0_173, %c0_174] : memref<9x32x32xbf16, #tpu.memory_space<vmem>>, vector<1x32x32xbf16>
    %276 = vector.shape_cast %275 : vector<1x32x32xbf16> to vector<32x32xbf16>
    %cst_175 = arith.constant dense<0.000000e+00> : vector<32x128xf32>
    %277 = tpu.matmul %276, %274, %cst_175 {dimension_numbers = #tpu.dot_dimension_numbers<[1], [0], [0], [1], [0, 0, 1, 1], [], []>} : vector<32x32xbf16>, vector<32x128xbf16>, vector<32x128xf32> -> vector<32x128xf32>
    %278 = arith.addf %273, %277 : vector<32x128xf32>
    %c127_i32_176 = arith.constant 127 : i32
    %279 = tpu.dynamic_rotate %234 by %c127_i32_176 dim 1 : vector<32x128xf32>, i32 -> vector<32x128xf32>
    %c5_177 = arith.constant 5 : index
    %c0_178 = arith.constant 0 : index
    %c0_179 = arith.constant 0 : index
    %280 = vector.load %arg2[%c5_177, %c0_178, %c0_179] : memref<9x1x128xf32, #tpu.memory_space<vmem>>, vector<1x1x128xf32>
    %281 = vector.shape_cast %280 : vector<1x1x128xf32> to vector<1x128xf32>
    %282 = vector.broadcast %281 : vector<1x128xf32> to vector<32x128xf32>
    %283 = arith.mulf %279, %282 : vector<32x128xf32>
    %284 = arith.truncf %283 : vector<32x128xf32> to vector<32x128xbf16>
    %c5_180 = arith.constant 5 : index
    %c0_181 = arith.constant 0 : index
    %c0_182 = arith.constant 0 : index
    %285 = vector.load %arg9[%c5_180, %c0_181, %c0_182] : memref<9x32x32xbf16, #tpu.memory_space<vmem>>, vector<1x32x32xbf16>
    %286 = vector.shape_cast %285 : vector<1x32x32xbf16> to vector<32x32xbf16>
    %cst_183 = arith.constant dense<0.000000e+00> : vector<32x128xf32>
    %287 = tpu.matmul %286, %284, %cst_183 {dimension_numbers = #tpu.dot_dimension_numbers<[1], [0], [0], [1], [0, 0, 1, 1], [], []>} : vector<32x32xbf16>, vector<32x128xbf16>, vector<32x128xf32> -> vector<32x128xf32>
    %288 = arith.addf %278, %287 : vector<32x128xf32>
    %c121_i32_184 = arith.constant 121 : i32
    %289 = tpu.dynamic_rotate %234 by %c121_i32_184 dim 1 : vector<32x128xf32>, i32 -> vector<32x128xf32>
    %c6_185 = arith.constant 6 : index
    %c0_186 = arith.constant 0 : index
    %c0_187 = arith.constant 0 : index
    %290 = vector.load %arg2[%c6_185, %c0_186, %c0_187] : memref<9x1x128xf32, #tpu.memory_space<vmem>>, vector<1x1x128xf32>
    %291 = vector.shape_cast %290 : vector<1x1x128xf32> to vector<1x128xf32>
    %292 = vector.broadcast %291 : vector<1x128xf32> to vector<32x128xf32>
    %293 = arith.mulf %289, %292 : vector<32x128xf32>
    %294 = arith.truncf %293 : vector<32x128xf32> to vector<32x128xbf16>
    %c6_188 = arith.constant 6 : index
    %c0_189 = arith.constant 0 : index
    %c0_190 = arith.constant 0 : index
    %295 = vector.load %arg9[%c6_188, %c0_189, %c0_190] : memref<9x32x32xbf16, #tpu.memory_space<vmem>>, vector<1x32x32xbf16>
    %296 = vector.shape_cast %295 : vector<1x32x32xbf16> to vector<32x32xbf16>
    %cst_191 = arith.constant dense<0.000000e+00> : vector<32x128xf32>
    %297 = tpu.matmul %296, %294, %cst_191 {dimension_numbers = #tpu.dot_dimension_numbers<[1], [0], [0], [1], [0, 0, 1, 1], [], []>} : vector<32x32xbf16>, vector<32x128xbf16>, vector<32x128xf32> -> vector<32x128xf32>
    %298 = arith.addf %288, %297 : vector<32x128xf32>
    %c120_i32_192 = arith.constant 120 : i32
    %299 = tpu.dynamic_rotate %234 by %c120_i32_192 dim 1 : vector<32x128xf32>, i32 -> vector<32x128xf32>
    %c7_193 = arith.constant 7 : index
    %c0_194 = arith.constant 0 : index
    %c0_195 = arith.constant 0 : index
    %300 = vector.load %arg2[%c7_193, %c0_194, %c0_195] : memref<9x1x128xf32, #tpu.memory_space<vmem>>, vector<1x1x128xf32>
    %301 = vector.shape_cast %300 : vector<1x1x128xf32> to vector<1x128xf32>
    %302 = vector.broadcast %301 : vector<1x128xf32> to vector<32x128xf32>
    %303 = arith.mulf %299, %302 : vector<32x128xf32>
    %304 = arith.truncf %303 : vector<32x128xf32> to vector<32x128xbf16>
    %c7_196 = arith.constant 7 : index
    %c0_197 = arith.constant 0 : index
    %c0_198 = arith.constant 0 : index
    %305 = vector.load %arg9[%c7_196, %c0_197, %c0_198] : memref<9x32x32xbf16, #tpu.memory_space<vmem>>, vector<1x32x32xbf16>
    %306 = vector.shape_cast %305 : vector<1x32x32xbf16> to vector<32x32xbf16>
    %cst_199 = arith.constant dense<0.000000e+00> : vector<32x128xf32>
    %307 = tpu.matmul %306, %304, %cst_199 {dimension_numbers = #tpu.dot_dimension_numbers<[1], [0], [0], [1], [0, 0, 1, 1], [], []>} : vector<32x32xbf16>, vector<32x128xbf16>, vector<32x128xf32> -> vector<32x128xf32>
    %308 = arith.addf %298, %307 : vector<32x128xf32>
    %c119_i32_200 = arith.constant 119 : i32
    %309 = tpu.dynamic_rotate %234 by %c119_i32_200 dim 1 : vector<32x128xf32>, i32 -> vector<32x128xf32>
    %c8_201 = arith.constant 8 : index
    %c0_202 = arith.constant 0 : index
    %c0_203 = arith.constant 0 : index
    %310 = vector.load %arg2[%c8_201, %c0_202, %c0_203] : memref<9x1x128xf32, #tpu.memory_space<vmem>>, vector<1x1x128xf32>
    %311 = vector.shape_cast %310 : vector<1x1x128xf32> to vector<1x128xf32>
    %312 = vector.broadcast %311 : vector<1x128xf32> to vector<32x128xf32>
    %313 = arith.mulf %309, %312 : vector<32x128xf32>
    %314 = arith.truncf %313 : vector<32x128xf32> to vector<32x128xbf16>
    %c8_204 = arith.constant 8 : index
    %c0_205 = arith.constant 0 : index
    %c0_206 = arith.constant 0 : index
    %315 = vector.load %arg9[%c8_204, %c0_205, %c0_206] : memref<9x32x32xbf16, #tpu.memory_space<vmem>>, vector<1x32x32xbf16>
    %316 = vector.shape_cast %315 : vector<1x32x32xbf16> to vector<32x32xbf16>
    %cst_207 = arith.constant dense<0.000000e+00> : vector<32x128xf32>
    %317 = tpu.matmul %316, %314, %cst_207 {dimension_numbers = #tpu.dot_dimension_numbers<[1], [0], [0], [1], [0, 0, 1, 1], [], []>} : vector<32x32xbf16>, vector<32x128xbf16>, vector<32x128xf32> -> vector<32x128xf32>
    %318 = arith.addf %308, %317 : vector<32x128xf32>
    %cst_208 = arith.constant dense<0.000000e+00> : vector<32xf32>
    %319 = vector.multi_reduction <add>, %318, %cst_208 [1] : vector<32x128xf32> to vector<32xf32>
    %320 = vector.shape_cast %319 : vector<32xf32> to vector<32x1xf32>
    %321 = arith.mulf %318, %318 : vector<32x128xf32>
    %cst_209 = arith.constant dense<0.000000e+00> : vector<32xf32>
    %322 = vector.multi_reduction <add>, %321, %cst_209 [1] : vector<32x128xf32> to vector<32xf32>
    %323 = vector.shape_cast %322 : vector<32xf32> to vector<32x1xf32>
    %cst_210 = arith.constant 1.280000e+02 : f32
    %324 = vector.broadcast %cst_210 : f32 to vector<32x1xf32>
    %325 = arith.divf %320, %324 : vector<32x1xf32>
    %cst_211 = arith.constant 1.280000e+02 : f32
    %326 = vector.broadcast %cst_211 : f32 to vector<32x1xf32>
    %327 = arith.divf %323, %326 : vector<32x1xf32>
    %328 = arith.mulf %325, %325 : vector<32x1xf32>
    %329 = arith.subf %327, %328 : vector<32x1xf32>
    %c0_212 = arith.constant 0 : index
    %c0_213 = arith.constant 0 : index
    %330 = vector.load %arg10[%c0_212, %c0_213] : memref<32x1xf32, #tpu.memory_space<vmem>>, vector<32x1xf32>
    %cst_214 = arith.constant 9.99999974E-6 : f32
    %331 = vector.broadcast %cst_214 : f32 to vector<32x1xf32>
    %332 = arith.addf %329, %331 : vector<32x1xf32>
    %333 = math.rsqrt %332 : vector<32x1xf32>
    %334 = arith.mulf %330, %333 : vector<32x1xf32>
    %335 = vector.broadcast %325 : vector<32x1xf32> to vector<32x128xf32>
    %336 = arith.subf %318, %335 : vector<32x128xf32>
    %337 = vector.broadcast %334 : vector<32x1xf32> to vector<32x128xf32>
    %338 = arith.mulf %336, %337 : vector<32x128xf32>
    %c0_215 = arith.constant 0 : index
    %c0_216 = arith.constant 0 : index
    %339 = vector.load %arg11[%c0_215, %c0_216] : memref<32x1xf32, #tpu.memory_space<vmem>>, vector<32x1xf32>
    %340 = vector.broadcast %339 : vector<32x1xf32> to vector<32x128xf32>
    %341 = arith.addf %338, %340 : vector<32x128xf32>
    %342 = arith.addf %234, %341 : vector<32x128xf32>
    %cst_217 = arith.constant 0.000000e+00 : f32
    %343 = vector.broadcast %cst_217 : f32 to vector<32x128xf32>
    %344 = arith.maximumf %342, %343 : vector<32x128xf32>
    %c0_218 = arith.constant 0 : index
    %c0_219 = arith.constant 0 : index
    %345 = vector.load %arg1[%c0_218, %c0_219] : memref<8x128xf32, #tpu.memory_space<vmem>>, vector<8x128xf32>
    %346 = tpu.concatenate %344, %345 in 0 : vector<32x128xf32>, vector<8x128xf32> -> vector<40x128xf32>
    %c9_i32_220 = arith.constant 9 : i32
    %347 = tpu.dynamic_rotate %346 by %c9_i32_220 dim 1 : vector<40x128xf32>, i32 -> vector<40x128xf32>
    %c0_221 = arith.constant 0 : index
    %c0_222 = arith.constant 0 : index
    %c0_223 = arith.constant 0 : index
    %348 = vector.load %arg2[%c0_221, %c0_222, %c0_223] : memref<9x1x128xf32, #tpu.memory_space<vmem>>, vector<1x1x128xf32>
    %349 = vector.shape_cast %348 : vector<1x1x128xf32> to vector<1x128xf32>
    %350 = vector.broadcast %349 : vector<1x128xf32> to vector<40x128xf32>
    %351 = arith.mulf %347, %350 : vector<40x128xf32>
    %352 = arith.truncf %351 : vector<40x128xf32> to vector<40x128xbf16>
    %c0_224 = arith.constant 0 : index
    %c0_225 = arith.constant 0 : index
    %c0_226 = arith.constant 0 : index
    %353 = vector.load %arg12[%c0_224, %c0_225, %c0_226] : memref<9x64x40xbf16, #tpu.memory_space<vmem>>, vector<1x64x40xbf16>
    %354 = vector.shape_cast %353 : vector<1x64x40xbf16> to vector<64x40xbf16>
    %cst_227 = arith.constant dense<0.000000e+00> : vector<64x128xf32>
    %355 = tpu.matmul %354, %352, %cst_227 {dimension_numbers = #tpu.dot_dimension_numbers<[1], [0], [0], [1], [0, 0, 1, 1], [], []>} : vector<64x40xbf16>, vector<40x128xbf16>, vector<64x128xf32> -> vector<64x128xf32>
    %c8_i32_228 = arith.constant 8 : i32
    %356 = tpu.dynamic_rotate %346 by %c8_i32_228 dim 1 : vector<40x128xf32>, i32 -> vector<40x128xf32>
    %c1_229 = arith.constant 1 : index
    %c0_230 = arith.constant 0 : index
    %c0_231 = arith.constant 0 : index
    %357 = vector.load %arg2[%c1_229, %c0_230, %c0_231] : memref<9x1x128xf32, #tpu.memory_space<vmem>>, vector<1x1x128xf32>
    %358 = vector.shape_cast %357 : vector<1x1x128xf32> to vector<1x128xf32>
    %359 = vector.broadcast %358 : vector<1x128xf32> to vector<40x128xf32>
    %360 = arith.mulf %356, %359 : vector<40x128xf32>
    %361 = arith.truncf %360 : vector<40x128xf32> to vector<40x128xbf16>
    %c1_232 = arith.constant 1 : index
    %c0_233 = arith.constant 0 : index
    %c0_234 = arith.constant 0 : index
    %362 = vector.load %arg12[%c1_232, %c0_233, %c0_234] : memref<9x64x40xbf16, #tpu.memory_space<vmem>>, vector<1x64x40xbf16>
    %363 = vector.shape_cast %362 : vector<1x64x40xbf16> to vector<64x40xbf16>
    %cst_235 = arith.constant dense<0.000000e+00> : vector<64x128xf32>
    %364 = tpu.matmul %363, %361, %cst_235 {dimension_numbers = #tpu.dot_dimension_numbers<[1], [0], [0], [1], [0, 0, 1, 1], [], []>} : vector<64x40xbf16>, vector<40x128xbf16>, vector<64x128xf32> -> vector<64x128xf32>
    %365 = arith.addf %355, %364 : vector<64x128xf32>
    %c7_i32_236 = arith.constant 7 : i32
    %366 = tpu.dynamic_rotate %346 by %c7_i32_236 dim 1 : vector<40x128xf32>, i32 -> vector<40x128xf32>
    %c2_237 = arith.constant 2 : index
    %c0_238 = arith.constant 0 : index
    %c0_239 = arith.constant 0 : index
    %367 = vector.load %arg2[%c2_237, %c0_238, %c0_239] : memref<9x1x128xf32, #tpu.memory_space<vmem>>, vector<1x1x128xf32>
    %368 = vector.shape_cast %367 : vector<1x1x128xf32> to vector<1x128xf32>
    %369 = vector.broadcast %368 : vector<1x128xf32> to vector<40x128xf32>
    %370 = arith.mulf %366, %369 : vector<40x128xf32>
    %371 = arith.truncf %370 : vector<40x128xf32> to vector<40x128xbf16>
    %c2_240 = arith.constant 2 : index
    %c0_241 = arith.constant 0 : index
    %c0_242 = arith.constant 0 : index
    %372 = vector.load %arg12[%c2_240, %c0_241, %c0_242] : memref<9x64x40xbf16, #tpu.memory_space<vmem>>, vector<1x64x40xbf16>
    %373 = vector.shape_cast %372 : vector<1x64x40xbf16> to vector<64x40xbf16>
    %cst_243 = arith.constant dense<0.000000e+00> : vector<64x128xf32>
    %374 = tpu.matmul %373, %371, %cst_243 {dimension_numbers = #tpu.dot_dimension_numbers<[1], [0], [0], [1], [0, 0, 1, 1], [], []>} : vector<64x40xbf16>, vector<40x128xbf16>, vector<64x128xf32> -> vector<64x128xf32>
    %375 = arith.addf %365, %374 : vector<64x128xf32>
    %c1_i32_244 = arith.constant 1 : i32
    %376 = tpu.dynamic_rotate %346 by %c1_i32_244 dim 1 : vector<40x128xf32>, i32 -> vector<40x128xf32>
    %c3_245 = arith.constant 3 : index
    %c0_246 = arith.constant 0 : index
    %c0_247 = arith.constant 0 : index
    %377 = vector.load %arg2[%c3_245, %c0_246, %c0_247] : memref<9x1x128xf32, #tpu.memory_space<vmem>>, vector<1x1x128xf32>
    %378 = vector.shape_cast %377 : vector<1x1x128xf32> to vector<1x128xf32>
    %379 = vector.broadcast %378 : vector<1x128xf32> to vector<40x128xf32>
    %380 = arith.mulf %376, %379 : vector<40x128xf32>
    %381 = arith.truncf %380 : vector<40x128xf32> to vector<40x128xbf16>
    %c3_248 = arith.constant 3 : index
    %c0_249 = arith.constant 0 : index
    %c0_250 = arith.constant 0 : index
    %382 = vector.load %arg12[%c3_248, %c0_249, %c0_250] : memref<9x64x40xbf16, #tpu.memory_space<vmem>>, vector<1x64x40xbf16>
    %383 = vector.shape_cast %382 : vector<1x64x40xbf16> to vector<64x40xbf16>
    %cst_251 = arith.constant dense<0.000000e+00> : vector<64x128xf32>
    %384 = tpu.matmul %383, %381, %cst_251 {dimension_numbers = #tpu.dot_dimension_numbers<[1], [0], [0], [1], [0, 0, 1, 1], [], []>} : vector<64x40xbf16>, vector<40x128xbf16>, vector<64x128xf32> -> vector<64x128xf32>
    %385 = arith.addf %375, %384 : vector<64x128xf32>
    %386 = arith.truncf %346 : vector<40x128xf32> to vector<40x128xbf16>
    %c4_252 = arith.constant 4 : index
    %c0_253 = arith.constant 0 : index
    %c0_254 = arith.constant 0 : index
    %387 = vector.load %arg12[%c4_252, %c0_253, %c0_254] : memref<9x64x40xbf16, #tpu.memory_space<vmem>>, vector<1x64x40xbf16>
    %388 = vector.shape_cast %387 : vector<1x64x40xbf16> to vector<64x40xbf16>
    %cst_255 = arith.constant dense<0.000000e+00> : vector<64x128xf32>
    %389 = tpu.matmul %388, %386, %cst_255 {dimension_numbers = #tpu.dot_dimension_numbers<[1], [0], [0], [1], [0, 0, 1, 1], [], []>} : vector<64x40xbf16>, vector<40x128xbf16>, vector<64x128xf32> -> vector<64x128xf32>
    %390 = arith.addf %385, %389 : vector<64x128xf32>
    %c127_i32_256 = arith.constant 127 : i32
    %391 = tpu.dynamic_rotate %346 by %c127_i32_256 dim 1 : vector<40x128xf32>, i32 -> vector<40x128xf32>
    %c5_257 = arith.constant 5 : index
    %c0_258 = arith.constant 0 : index
    %c0_259 = arith.constant 0 : index
    %392 = vector.load %arg2[%c5_257, %c0_258, %c0_259] : memref<9x1x128xf32, #tpu.memory_space<vmem>>, vector<1x1x128xf32>
    %393 = vector.shape_cast %392 : vector<1x1x128xf32> to vector<1x128xf32>
    %394 = vector.broadcast %393 : vector<1x128xf32> to vector<40x128xf32>
    %395 = arith.mulf %391, %394 : vector<40x128xf32>
    %396 = arith.truncf %395 : vector<40x128xf32> to vector<40x128xbf16>
    %c5_260 = arith.constant 5 : index
    %c0_261 = arith.constant 0 : index
    %c0_262 = arith.constant 0 : index
    %397 = vector.load %arg12[%c5_260, %c0_261, %c0_262] : memref<9x64x40xbf16, #tpu.memory_space<vmem>>, vector<1x64x40xbf16>
    %398 = vector.shape_cast %397 : vector<1x64x40xbf16> to vector<64x40xbf16>
    %cst_263 = arith.constant dense<0.000000e+00> : vector<64x128xf32>
    %399 = tpu.matmul %398, %396, %cst_263 {dimension_numbers = #tpu.dot_dimension_numbers<[1], [0], [0], [1], [0, 0, 1, 1], [], []>} : vector<64x40xbf16>, vector<40x128xbf16>, vector<64x128xf32> -> vector<64x128xf32>
    %400 = arith.addf %390, %399 : vector<64x128xf32>
    %c121_i32_264 = arith.constant 121 : i32
    %401 = tpu.dynamic_rotate %346 by %c121_i32_264 dim 1 : vector<40x128xf32>, i32 -> vector<40x128xf32>
    %c6_265 = arith.constant 6 : index
    %c0_266 = arith.constant 0 : index
    %c0_267 = arith.constant 0 : index
    %402 = vector.load %arg2[%c6_265, %c0_266, %c0_267] : memref<9x1x128xf32, #tpu.memory_space<vmem>>, vector<1x1x128xf32>
    %403 = vector.shape_cast %402 : vector<1x1x128xf32> to vector<1x128xf32>
    %404 = vector.broadcast %403 : vector<1x128xf32> to vector<40x128xf32>
    %405 = arith.mulf %401, %404 : vector<40x128xf32>
    %406 = arith.truncf %405 : vector<40x128xf32> to vector<40x128xbf16>
    %c6_268 = arith.constant 6 : index
    %c0_269 = arith.constant 0 : index
    %c0_270 = arith.constant 0 : index
    %407 = vector.load %arg12[%c6_268, %c0_269, %c0_270] : memref<9x64x40xbf16, #tpu.memory_space<vmem>>, vector<1x64x40xbf16>
    %408 = vector.shape_cast %407 : vector<1x64x40xbf16> to vector<64x40xbf16>
    %cst_271 = arith.constant dense<0.000000e+00> : vector<64x128xf32>
    %409 = tpu.matmul %408, %406, %cst_271 {dimension_numbers = #tpu.dot_dimension_numbers<[1], [0], [0], [1], [0, 0, 1, 1], [], []>} : vector<64x40xbf16>, vector<40x128xbf16>, vector<64x128xf32> -> vector<64x128xf32>
    %410 = arith.addf %400, %409 : vector<64x128xf32>
    %c120_i32_272 = arith.constant 120 : i32
    %411 = tpu.dynamic_rotate %346 by %c120_i32_272 dim 1 : vector<40x128xf32>, i32 -> vector<40x128xf32>
    %c7_273 = arith.constant 7 : index
    %c0_274 = arith.constant 0 : index
    %c0_275 = arith.constant 0 : index
    %412 = vector.load %arg2[%c7_273, %c0_274, %c0_275] : memref<9x1x128xf32, #tpu.memory_space<vmem>>, vector<1x1x128xf32>
    %413 = vector.shape_cast %412 : vector<1x1x128xf32> to vector<1x128xf32>
    %414 = vector.broadcast %413 : vector<1x128xf32> to vector<40x128xf32>
    %415 = arith.mulf %411, %414 : vector<40x128xf32>
    %416 = arith.truncf %415 : vector<40x128xf32> to vector<40x128xbf16>
    %c7_276 = arith.constant 7 : index
    %c0_277 = arith.constant 0 : index
    %c0_278 = arith.constant 0 : index
    %417 = vector.load %arg12[%c7_276, %c0_277, %c0_278] : memref<9x64x40xbf16, #tpu.memory_space<vmem>>, vector<1x64x40xbf16>
    %418 = vector.shape_cast %417 : vector<1x64x40xbf16> to vector<64x40xbf16>
    %cst_279 = arith.constant dense<0.000000e+00> : vector<64x128xf32>
    %419 = tpu.matmul %418, %416, %cst_279 {dimension_numbers = #tpu.dot_dimension_numbers<[1], [0], [0], [1], [0, 0, 1, 1], [], []>} : vector<64x40xbf16>, vector<40x128xbf16>, vector<64x128xf32> -> vector<64x128xf32>
    %420 = arith.addf %410, %419 : vector<64x128xf32>
    %c119_i32_280 = arith.constant 119 : i32
    %421 = tpu.dynamic_rotate %346 by %c119_i32_280 dim 1 : vector<40x128xf32>, i32 -> vector<40x128xf32>
    %c8_281 = arith.constant 8 : index
    %c0_282 = arith.constant 0 : index
    %c0_283 = arith.constant 0 : index
    %422 = vector.load %arg2[%c8_281, %c0_282, %c0_283] : memref<9x1x128xf32, #tpu.memory_space<vmem>>, vector<1x1x128xf32>
    %423 = vector.shape_cast %422 : vector<1x1x128xf32> to vector<1x128xf32>
    %424 = vector.broadcast %423 : vector<1x128xf32> to vector<40x128xf32>
    %425 = arith.mulf %421, %424 : vector<40x128xf32>
    %426 = arith.truncf %425 : vector<40x128xf32> to vector<40x128xbf16>
    %c8_284 = arith.constant 8 : index
    %c0_285 = arith.constant 0 : index
    %c0_286 = arith.constant 0 : index
    %427 = vector.load %arg12[%c8_284, %c0_285, %c0_286] : memref<9x64x40xbf16, #tpu.memory_space<vmem>>, vector<1x64x40xbf16>
    %428 = vector.shape_cast %427 : vector<1x64x40xbf16> to vector<64x40xbf16>
    %cst_287 = arith.constant dense<0.000000e+00> : vector<64x128xf32>
    %429 = tpu.matmul %428, %426, %cst_287 {dimension_numbers = #tpu.dot_dimension_numbers<[1], [0], [0], [1], [0, 0, 1, 1], [], []>} : vector<64x40xbf16>, vector<40x128xbf16>, vector<64x128xf32> -> vector<64x128xf32>
    %430 = arith.addf %420, %429 : vector<64x128xf32>
    %cst_288 = arith.constant dense<0.000000e+00> : vector<64xf32>
    %431 = vector.multi_reduction <add>, %430, %cst_288 [1] : vector<64x128xf32> to vector<64xf32>
    %432 = vector.shape_cast %431 : vector<64xf32> to vector<64x1xf32>
    %433 = arith.mulf %430, %430 : vector<64x128xf32>
    %cst_289 = arith.constant dense<0.000000e+00> : vector<64xf32>
    %434 = vector.multi_reduction <add>, %433, %cst_289 [1] : vector<64x128xf32> to vector<64xf32>
    %435 = vector.shape_cast %434 : vector<64xf32> to vector<64x1xf32>
    %436 = vector.extract_strided_slice %432 {offsets = [0, 0], sizes = [16, 1], strides = [1, 1]} : vector<64x1xf32> to vector<16x1xf32>
    %437 = vector.extract_strided_slice %435 {offsets = [0, 0], sizes = [16, 1], strides = [1, 1]} : vector<64x1xf32> to vector<16x1xf32>
    %438 = vector.extract_strided_slice %432 {offsets = [16, 0], sizes = [16, 1], strides = [1, 1]} : vector<64x1xf32> to vector<16x1xf32>
    %439 = arith.addf %436, %438 : vector<16x1xf32>
    %440 = vector.extract_strided_slice %435 {offsets = [16, 0], sizes = [16, 1], strides = [1, 1]} : vector<64x1xf32> to vector<16x1xf32>
    %441 = arith.addf %437, %440 : vector<16x1xf32>
    %442 = vector.extract_strided_slice %432 {offsets = [32, 0], sizes = [16, 1], strides = [1, 1]} : vector<64x1xf32> to vector<16x1xf32>
    %443 = arith.addf %439, %442 : vector<16x1xf32>
    %444 = vector.extract_strided_slice %435 {offsets = [32, 0], sizes = [16, 1], strides = [1, 1]} : vector<64x1xf32> to vector<16x1xf32>
    %445 = arith.addf %441, %444 : vector<16x1xf32>
    %446 = vector.extract_strided_slice %432 {offsets = [48, 0], sizes = [16, 1], strides = [1, 1]} : vector<64x1xf32> to vector<16x1xf32>
    %447 = arith.addf %443, %446 : vector<16x1xf32>
    %448 = vector.extract_strided_slice %435 {offsets = [48, 0], sizes = [16, 1], strides = [1, 1]} : vector<64x1xf32> to vector<16x1xf32>
    %449 = arith.addf %445, %448 : vector<16x1xf32>
    %cst_290 = arith.constant 5.120000e+02 : f32
    %450 = vector.broadcast %cst_290 : f32 to vector<16x1xf32>
    %451 = arith.divf %447, %450 : vector<16x1xf32>
    %452 = tpu.concatenate %451, %451, %451, %451 in 0 : vector<16x1xf32>, vector<16x1xf32>, vector<16x1xf32>, vector<16x1xf32> -> vector<64x1xf32>
    %cst_291 = arith.constant 5.120000e+02 : f32
    %453 = vector.broadcast %cst_291 : f32 to vector<16x1xf32>
    %454 = arith.divf %449, %453 : vector<16x1xf32>
    %455 = tpu.concatenate %454, %454, %454, %454 in 0 : vector<16x1xf32>, vector<16x1xf32>, vector<16x1xf32>, vector<16x1xf32> -> vector<64x1xf32>
    %456 = arith.mulf %452, %452 : vector<64x1xf32>
    %457 = arith.subf %455, %456 : vector<64x1xf32>
    %c0_292 = arith.constant 0 : index
    %c0_293 = arith.constant 0 : index
    %458 = vector.load %arg13[%c0_292, %c0_293] : memref<64x1xf32, #tpu.memory_space<vmem>>, vector<64x1xf32>
    %cst_294 = arith.constant 9.99999974E-6 : f32
    %459 = vector.broadcast %cst_294 : f32 to vector<64x1xf32>
    %460 = arith.addf %457, %459 : vector<64x1xf32>
    %461 = math.rsqrt %460 : vector<64x1xf32>
    %462 = arith.mulf %458, %461 : vector<64x1xf32>
    %463 = vector.broadcast %452 : vector<64x1xf32> to vector<64x128xf32>
    %464 = arith.subf %430, %463 : vector<64x128xf32>
    %465 = vector.broadcast %462 : vector<64x1xf32> to vector<64x128xf32>
    %466 = arith.mulf %464, %465 : vector<64x128xf32>
    %c0_295 = arith.constant 0 : index
    %c0_296 = arith.constant 0 : index
    %467 = vector.load %arg14[%c0_295, %c0_296] : memref<64x1xf32, #tpu.memory_space<vmem>>, vector<64x1xf32>
    %468 = vector.broadcast %467 : vector<64x1xf32> to vector<64x128xf32>
    %469 = arith.addf %466, %468 : vector<64x128xf32>
    %cst_297 = arith.constant 0.000000e+00 : f32
    %470 = vector.broadcast %cst_297 : f32 to vector<64x128xf32>
    %471 = arith.maximumf %469, %470 : vector<64x128xf32>
    %c9_i32_298 = arith.constant 9 : i32
    %472 = tpu.dynamic_rotate %471 by %c9_i32_298 dim 1 : vector<64x128xf32>, i32 -> vector<64x128xf32>
    %c0_299 = arith.constant 0 : index
    %c0_300 = arith.constant 0 : index
    %c0_301 = arith.constant 0 : index
    %473 = vector.load %arg2[%c0_299, %c0_300, %c0_301] : memref<9x1x128xf32, #tpu.memory_space<vmem>>, vector<1x1x128xf32>
    %474 = vector.shape_cast %473 : vector<1x1x128xf32> to vector<1x128xf32>
    %475 = vector.broadcast %474 : vector<1x128xf32> to vector<64x128xf32>
    %476 = arith.mulf %472, %475 : vector<64x128xf32>
    %477 = arith.truncf %476 : vector<64x128xf32> to vector<64x128xbf16>
    %c0_302 = arith.constant 0 : index
    %c0_303 = arith.constant 0 : index
    %c0_304 = arith.constant 0 : index
    %478 = vector.load %arg15[%c0_302, %c0_303, %c0_304] : memref<9x48x64xbf16, #tpu.memory_space<vmem>>, vector<1x48x64xbf16>
    %479 = vector.shape_cast %478 : vector<1x48x64xbf16> to vector<48x64xbf16>
    %cst_305 = arith.constant dense<0.000000e+00> : vector<48x128xf32>
    %480 = tpu.matmul %479, %477, %cst_305 {dimension_numbers = #tpu.dot_dimension_numbers<[1], [0], [0], [1], [0, 0, 1, 1], [], []>} : vector<48x64xbf16>, vector<64x128xbf16>, vector<48x128xf32> -> vector<48x128xf32>
    %c8_i32_306 = arith.constant 8 : i32
    %481 = tpu.dynamic_rotate %471 by %c8_i32_306 dim 1 : vector<64x128xf32>, i32 -> vector<64x128xf32>
    %c1_307 = arith.constant 1 : index
    %c0_308 = arith.constant 0 : index
    %c0_309 = arith.constant 0 : index
    %482 = vector.load %arg2[%c1_307, %c0_308, %c0_309] : memref<9x1x128xf32, #tpu.memory_space<vmem>>, vector<1x1x128xf32>
    %483 = vector.shape_cast %482 : vector<1x1x128xf32> to vector<1x128xf32>
    %484 = vector.broadcast %483 : vector<1x128xf32> to vector<64x128xf32>
    %485 = arith.mulf %481, %484 : vector<64x128xf32>
    %486 = arith.truncf %485 : vector<64x128xf32> to vector<64x128xbf16>
    %c1_310 = arith.constant 1 : index
    %c0_311 = arith.constant 0 : index
    %c0_312 = arith.constant 0 : index
    %487 = vector.load %arg15[%c1_310, %c0_311, %c0_312] : memref<9x48x64xbf16, #tpu.memory_space<vmem>>, vector<1x48x64xbf16>
    %488 = vector.shape_cast %487 : vector<1x48x64xbf16> to vector<48x64xbf16>
    %cst_313 = arith.constant dense<0.000000e+00> : vector<48x128xf32>
    %489 = tpu.matmul %488, %486, %cst_313 {dimension_numbers = #tpu.dot_dimension_numbers<[1], [0], [0], [1], [0, 0, 1, 1], [], []>} : vector<48x64xbf16>, vector<64x128xbf16>, vector<48x128xf32> -> vector<48x128xf32>
    %490 = arith.addf %480, %489 : vector<48x128xf32>
    %c7_i32_314 = arith.constant 7 : i32
    %491 = tpu.dynamic_rotate %471 by %c7_i32_314 dim 1 : vector<64x128xf32>, i32 -> vector<64x128xf32>
    %c2_315 = arith.constant 2 : index
    %c0_316 = arith.constant 0 : index
    %c0_317 = arith.constant 0 : index
    %492 = vector.load %arg2[%c2_315, %c0_316, %c0_317] : memref<9x1x128xf32, #tpu.memory_space<vmem>>, vector<1x1x128xf32>
    %493 = vector.shape_cast %492 : vector<1x1x128xf32> to vector<1x128xf32>
    %494 = vector.broadcast %493 : vector<1x128xf32> to vector<64x128xf32>
    %495 = arith.mulf %491, %494 : vector<64x128xf32>
    %496 = arith.truncf %495 : vector<64x128xf32> to vector<64x128xbf16>
    %c2_318 = arith.constant 2 : index
    %c0_319 = arith.constant 0 : index
    %c0_320 = arith.constant 0 : index
    %497 = vector.load %arg15[%c2_318, %c0_319, %c0_320] : memref<9x48x64xbf16, #tpu.memory_space<vmem>>, vector<1x48x64xbf16>
    %498 = vector.shape_cast %497 : vector<1x48x64xbf16> to vector<48x64xbf16>
    %cst_321 = arith.constant dense<0.000000e+00> : vector<48x128xf32>
    %499 = tpu.matmul %498, %496, %cst_321 {dimension_numbers = #tpu.dot_dimension_numbers<[1], [0], [0], [1], [0, 0, 1, 1], [], []>} : vector<48x64xbf16>, vector<64x128xbf16>, vector<48x128xf32> -> vector<48x128xf32>
    %500 = arith.addf %490, %499 : vector<48x128xf32>
    %c1_i32_322 = arith.constant 1 : i32
    %501 = tpu.dynamic_rotate %471 by %c1_i32_322 dim 1 : vector<64x128xf32>, i32 -> vector<64x128xf32>
    %c3_323 = arith.constant 3 : index
    %c0_324 = arith.constant 0 : index
    %c0_325 = arith.constant 0 : index
    %502 = vector.load %arg2[%c3_323, %c0_324, %c0_325] : memref<9x1x128xf32, #tpu.memory_space<vmem>>, vector<1x1x128xf32>
    %503 = vector.shape_cast %502 : vector<1x1x128xf32> to vector<1x128xf32>
    %504 = vector.broadcast %503 : vector<1x128xf32> to vector<64x128xf32>
    %505 = arith.mulf %501, %504 : vector<64x128xf32>
    %506 = arith.truncf %505 : vector<64x128xf32> to vector<64x128xbf16>
    %c3_326 = arith.constant 3 : index
    %c0_327 = arith.constant 0 : index
    %c0_328 = arith.constant 0 : index
    %507 = vector.load %arg15[%c3_326, %c0_327, %c0_328] : memref<9x48x64xbf16, #tpu.memory_space<vmem>>, vector<1x48x64xbf16>
    %508 = vector.shape_cast %507 : vector<1x48x64xbf16> to vector<48x64xbf16>
    %cst_329 = arith.constant dense<0.000000e+00> : vector<48x128xf32>
    %509 = tpu.matmul %508, %506, %cst_329 {dimension_numbers = #tpu.dot_dimension_numbers<[1], [0], [0], [1], [0, 0, 1, 1], [], []>} : vector<48x64xbf16>, vector<64x128xbf16>, vector<48x128xf32> -> vector<48x128xf32>
    %510 = arith.addf %500, %509 : vector<48x128xf32>
    %511 = arith.truncf %471 : vector<64x128xf32> to vector<64x128xbf16>
    %c4_330 = arith.constant 4 : index
    %c0_331 = arith.constant 0 : index
    %c0_332 = arith.constant 0 : index
    %512 = vector.load %arg15[%c4_330, %c0_331, %c0_332] : memref<9x48x64xbf16, #tpu.memory_space<vmem>>, vector<1x48x64xbf16>
    %513 = vector.shape_cast %512 : vector<1x48x64xbf16> to vector<48x64xbf16>
    %cst_333 = arith.constant dense<0.000000e+00> : vector<48x128xf32>
    %514 = tpu.matmul %513, %511, %cst_333 {dimension_numbers = #tpu.dot_dimension_numbers<[1], [0], [0], [1], [0, 0, 1, 1], [], []>} : vector<48x64xbf16>, vector<64x128xbf16>, vector<48x128xf32> -> vector<48x128xf32>
    %515 = arith.addf %510, %514 : vector<48x128xf32>
    %c127_i32_334 = arith.constant 127 : i32
    %516 = tpu.dynamic_rotate %471 by %c127_i32_334 dim 1 : vector<64x128xf32>, i32 -> vector<64x128xf32>
    %c5_335 = arith.constant 5 : index
    %c0_336 = arith.constant 0 : index
    %c0_337 = arith.constant 0 : index
    %517 = vector.load %arg2[%c5_335, %c0_336, %c0_337] : memref<9x1x128xf32, #tpu.memory_space<vmem>>, vector<1x1x128xf32>
    %518 = vector.shape_cast %517 : vector<1x1x128xf32> to vector<1x128xf32>
    %519 = vector.broadcast %518 : vector<1x128xf32> to vector<64x128xf32>
    %520 = arith.mulf %516, %519 : vector<64x128xf32>
    %521 = arith.truncf %520 : vector<64x128xf32> to vector<64x128xbf16>
    %c5_338 = arith.constant 5 : index
    %c0_339 = arith.constant 0 : index
    %c0_340 = arith.constant 0 : index
    %522 = vector.load %arg15[%c5_338, %c0_339, %c0_340] : memref<9x48x64xbf16, #tpu.memory_space<vmem>>, vector<1x48x64xbf16>
    %523 = vector.shape_cast %522 : vector<1x48x64xbf16> to vector<48x64xbf16>
    %cst_341 = arith.constant dense<0.000000e+00> : vector<48x128xf32>
    %524 = tpu.matmul %523, %521, %cst_341 {dimension_numbers = #tpu.dot_dimension_numbers<[1], [0], [0], [1], [0, 0, 1, 1], [], []>} : vector<48x64xbf16>, vector<64x128xbf16>, vector<48x128xf32> -> vector<48x128xf32>
    %525 = arith.addf %515, %524 : vector<48x128xf32>
    %c121_i32_342 = arith.constant 121 : i32
    %526 = tpu.dynamic_rotate %471 by %c121_i32_342 dim 1 : vector<64x128xf32>, i32 -> vector<64x128xf32>
    %c6_343 = arith.constant 6 : index
    %c0_344 = arith.constant 0 : index
    %c0_345 = arith.constant 0 : index
    %527 = vector.load %arg2[%c6_343, %c0_344, %c0_345] : memref<9x1x128xf32, #tpu.memory_space<vmem>>, vector<1x1x128xf32>
    %528 = vector.shape_cast %527 : vector<1x1x128xf32> to vector<1x128xf32>
    %529 = vector.broadcast %528 : vector<1x128xf32> to vector<64x128xf32>
    %530 = arith.mulf %526, %529 : vector<64x128xf32>
    %531 = arith.truncf %530 : vector<64x128xf32> to vector<64x128xbf16>
    %c6_346 = arith.constant 6 : index
    %c0_347 = arith.constant 0 : index
    %c0_348 = arith.constant 0 : index
    %532 = vector.load %arg15[%c6_346, %c0_347, %c0_348] : memref<9x48x64xbf16, #tpu.memory_space<vmem>>, vector<1x48x64xbf16>
    %533 = vector.shape_cast %532 : vector<1x48x64xbf16> to vector<48x64xbf16>
    %cst_349 = arith.constant dense<0.000000e+00> : vector<48x128xf32>
    %534 = tpu.matmul %533, %531, %cst_349 {dimension_numbers = #tpu.dot_dimension_numbers<[1], [0], [0], [1], [0, 0, 1, 1], [], []>} : vector<48x64xbf16>, vector<64x128xbf16>, vector<48x128xf32> -> vector<48x128xf32>
    %535 = arith.addf %525, %534 : vector<48x128xf32>
    %c120_i32_350 = arith.constant 120 : i32
    %536 = tpu.dynamic_rotate %471 by %c120_i32_350 dim 1 : vector<64x128xf32>, i32 -> vector<64x128xf32>
    %c7_351 = arith.constant 7 : index
    %c0_352 = arith.constant 0 : index
    %c0_353 = arith.constant 0 : index
    %537 = vector.load %arg2[%c7_351, %c0_352, %c0_353] : memref<9x1x128xf32, #tpu.memory_space<vmem>>, vector<1x1x128xf32>
    %538 = vector.shape_cast %537 : vector<1x1x128xf32> to vector<1x128xf32>
    %539 = vector.broadcast %538 : vector<1x128xf32> to vector<64x128xf32>
    %540 = arith.mulf %536, %539 : vector<64x128xf32>
    %541 = arith.truncf %540 : vector<64x128xf32> to vector<64x128xbf16>
    %c7_354 = arith.constant 7 : index
    %c0_355 = arith.constant 0 : index
    %c0_356 = arith.constant 0 : index
    %542 = vector.load %arg15[%c7_354, %c0_355, %c0_356] : memref<9x48x64xbf16, #tpu.memory_space<vmem>>, vector<1x48x64xbf16>
    %543 = vector.shape_cast %542 : vector<1x48x64xbf16> to vector<48x64xbf16>
    %cst_357 = arith.constant dense<0.000000e+00> : vector<48x128xf32>
    %544 = tpu.matmul %543, %541, %cst_357 {dimension_numbers = #tpu.dot_dimension_numbers<[1], [0], [0], [1], [0, 0, 1, 1], [], []>} : vector<48x64xbf16>, vector<64x128xbf16>, vector<48x128xf32> -> vector<48x128xf32>
    %545 = arith.addf %535, %544 : vector<48x128xf32>
    %c119_i32_358 = arith.constant 119 : i32
    %546 = tpu.dynamic_rotate %471 by %c119_i32_358 dim 1 : vector<64x128xf32>, i32 -> vector<64x128xf32>
    %c8_359 = arith.constant 8 : index
    %c0_360 = arith.constant 0 : index
    %c0_361 = arith.constant 0 : index
    %547 = vector.load %arg2[%c8_359, %c0_360, %c0_361] : memref<9x1x128xf32, #tpu.memory_space<vmem>>, vector<1x1x128xf32>
    %548 = vector.shape_cast %547 : vector<1x1x128xf32> to vector<1x128xf32>
    %549 = vector.broadcast %548 : vector<1x128xf32> to vector<64x128xf32>
    %550 = arith.mulf %546, %549 : vector<64x128xf32>
    %551 = arith.truncf %550 : vector<64x128xf32> to vector<64x128xbf16>
    %c8_362 = arith.constant 8 : index
    %c0_363 = arith.constant 0 : index
    %c0_364 = arith.constant 0 : index
    %552 = vector.load %arg15[%c8_362, %c0_363, %c0_364] : memref<9x48x64xbf16, #tpu.memory_space<vmem>>, vector<1x48x64xbf16>
    %553 = vector.shape_cast %552 : vector<1x48x64xbf16> to vector<48x64xbf16>
    %cst_365 = arith.constant dense<0.000000e+00> : vector<48x128xf32>
    %554 = tpu.matmul %553, %551, %cst_365 {dimension_numbers = #tpu.dot_dimension_numbers<[1], [0], [0], [1], [0, 0, 1, 1], [], []>} : vector<48x64xbf16>, vector<64x128xbf16>, vector<48x128xf32> -> vector<48x128xf32>
    %555 = arith.addf %545, %554 : vector<48x128xf32>
    %556 = math.tanh %555 : vector<48x128xf32>
    %c0_366 = arith.constant 0 : index
    %c0_367 = arith.constant 0 : index
    %557 = vector.load %arg16[%c0_366, %c0_367] : memref<48x128xf32, #tpu.memory_space<vmem>>, vector<48x128xf32>
    tpu.vector_store %arg16[%c0_366, %c0_367], %556 {strides = array<i32>} : memref<48x128xf32, #tpu.memory_space<vmem>>, vector<48x128xf32>,
    return
  }
}

</mosaic_0001>

<bundles_post_ra>
// kernel: cycle_generator_forward.1
= control target key start
LH: loop header
LB: loop body
LE: loop exit
PB: predicated region body
PF: predicated region fallthrough
CT: control target
= control target key end

     0   :  { %s5635_s26 = smov 8   ;;  %s5636_s20 = smov 9   ;;  %vm148_vm0 = vcmask 392192   ;;  %vm1266_vm8 = vcmask 523264   ;;  %s7896_s0 = inlined_call_operand.vmem [shape: f32[48,128], index: 0, kind: input, shape index: {}]   ;;  %s7897_s2 = inlined_call_operand.vmem [shape: f32[9,1,128], index: 2, kind: input, shape index: {}]   ;;  %s7898_s3 = inlined_call_operand.vmem [shape: bf16[9,64,48], index: 3, kind: input, shape index: {}]   ;;  %s7899_s5 = inlined_call_operand.vmem [shape: f32[64,1], index: 5, kind: input, shape index: {}]   ;;  %s7900_s4 = inlined_call_operand.vmem [shape: f32[64,1], index: 4, kind: input, shape index: {}]   ;;  %s7901_s6 = inlined_call_operand.vmem [shape: bf16[9,32,64], index: 6, kind: input, shape index: {}]   ;;  %s7902_s8 = inlined_call_operand.vmem [shape: f32[32,1], index: 8, kind: input, shape index: {}]   ;;  %s7903_s7 = inlined_call_operand.vmem [shape: f32[32,1], index: 7, kind: input, shape index: {}]   ;;  %s7904_s9 = inlined_call_operand.vmem [shape: bf16[9,32,32], index: 9, kind: input, shape index: {}]   ;;  %s7905_s11 = inlined_call_operand.vmem [shape: f32[32,1], index: 11, kind: input, shape index: {}]   ;;  %s7906_s10 = inlined_call_operand.vmem [shape: f32[32,1], index: 10, kind: input, shape index: {}]   ;;  %s7907_s1 = inlined_call_operand.vmem [shape: f32[8,128], index: 1, kind: input, shape index: {}]   ;;  %s7908_s14 = inlined_call_operand.vmem [shape: f32[64,1], index: 14, kind: input, shape index: {}]   ;;  %s7909_s12 = inlined_call_operand.vmem [shape: bf16[9,64,40], index: 12, kind: input, shape index: {}]   ;;  %s7910_s13 = inlined_call_operand.vmem [shape: f32[64,1], index: 13, kind: input, shape index: {}]   ;;  %s7911_s15 = inlined_call_operand.vmem [shape: bf16[9,48,64], index: 15, kind: input, shape index: {}]   ;;  %s7912_s16 = inlined_call_operand.vmem [shape: f32[48,128], index: 16, kind: output, shape index: {}]  }
   0x1   :  { %7916 = sst [smem:[#allocation2_spill]] %s7896_s0  ;;  %s5637_s21 = smov 7   ;;  %v5563_v11 = vld [vmem:[%s7897_s2 + $0x1] ss:$0 sm:$0xff]  ;;  %v5564_v20 = vld [vmem:[%s7897_s2] ss:$0 sm:$0xff] }
   0x2   :  { %s7917_s23 = sld [smem:[#allocation2_spill]]  ;;  %s5638_s22 = smov 1   ;;  %v5412_v31 = vld [vmem:[%s7898_s3 + $0x20] sm:$0xff]  ;;  %v5411_v45 = vld [vmem:[%s7898_s3 + $0x18] sm:$0xff]  ;;  %v5413_v50 = vld [vmem:[%s7898_s3 + $0x28] sm:$0xff] }
   0x3   :  { %s7914_s24 = smov 120   ;;  %s5641_s25 = smov 127   ;;  %v5565_v40 = vld [vmem:[%s7897_s2 + $0x2] ss:$0 sm:$0xff]  ;;  %v5566_v58 = vld [vmem:[%s7897_s2 + $0x3] ss:$0 sm:$0xff] }
   0x4   :  { %s5642_s27 = smov 119   ;;  %v5408_v44 = vld [vmem:[%s7898_s3] sm:$0xff]  ;;  %v5409_v63 = vld [vmem:[%s7898_s3 + $0x8] sm:$0xff] }
   0x8   :  { %v5734_v0 = vld [vmem:[%s7917_s23 + $0x20] sm:$0xff]  ;;  %v5739_v1 = vld [vmem:[%s7917_s23 + $0x10] sm:$0xff]  ;;  %v5755_v3 = vld [vmem:[%s7917_s23 + $0x28] sm:$0xff] }
   0x9   :  { %101 = vrot.lane.b32.xlu0 %v5734_v0, %s5635_s26  ;;  %97 = vrot.lane.b32.xlu1 %v5739_v1, %s5635_s26  ;;  %v5748_v2 = vld [vmem:[%s7917_s23] sm:$0xff]  ;;  %v5760_v4 = vld [vmem:[%s7917_s23 + $0x18] sm:$0xff] }
   0xa   :  { %93 = vrot.lane.b32.xlu2 %v5748_v2, %s5635_s26  ;;  %v5765_v5 = vld [vmem:[%s7917_s23 + $0x8] sm:$0xff]  ;;  %s5639_s23 = smov 121  }
  0x11   :  { %103 = vrot.lane.b32.xlu0 %v5755_v3, %s5635_s26  ;;  %99 = vrot.lane.b32.xlu1 %v5760_v4, %s5635_s26 }
  0x12   :  { %95 = vrot.lane.b32.xlu2 %v5765_v5, %s5635_s26 }
  0x19   :  { %68 = vrot.lane.b32.xlu0 %v5734_v0, %s5636_s20  ;;  %70 = vrot.lane.b32.xlu1 %v5755_v3, %s5636_s20 }
  0x1a   :  { %64 = vrot.lane.b32.xlu2 %v5739_v1, %s5636_s20 }
  0x21   :  { %66 = vrot.lane.b32.xlu0 %v5760_v4, %s5636_s20  ;;  %60 = vrot.lane.b32.xlu1 %v5748_v2, %s5636_s20 }
  0x22   :  { %62 = vrot.lane.b32.xlu2 %v5765_v5, %s5636_s20 }
  0x29   :  { %259 = vrot.lane.b32.xlu0 %v5734_v0, %s5637_s21  ;;  %261 = vrot.lane.b32.xlu1 %v5755_v3, %s5637_s21 }
  0x2a   :  { %255 = vrot.lane.b32.xlu2 %v5739_v1, %s5637_s21 }
  0x31   :  { %257 = vrot.lane.b32.xlu0 %v5760_v4, %s5637_s21  ;;  %251 = vrot.lane.b32.xlu1 %v5748_v2, %s5637_s21 }
  0x32   :  { %253 = vrot.lane.b32.xlu2 %v5765_v5, %s5637_s21 }
  0x39   :  { %363 = vrot.lane.b32.xlu0 %v5734_v0, %s5638_s22  ;;  %365 = vrot.lane.b32.xlu1 %v5755_v3, %s5638_s22 }
  0x3a   :  { %359 = vrot.lane.b32.xlu2 %v5739_v1, %s5638_s22 }
  0x41   :  { %361 = vrot.lane.b32.xlu0 %v5760_v4, %s5638_s22  ;;  %355 = vrot.lane.b32.xlu1 %v5748_v2, %s5638_s22 }
  0x42   :  { %357 = vrot.lane.b32.xlu2 %v5765_v5, %s5638_s22 }
  0x49   :  { %652 = vrot.lane.b32.xlu0 %v5734_v0, %s5639_s23  ;;  %654 = vrot.lane.b32.xlu1 %v5755_v3, %s5639_s23 }
  0x4a   :  { %756 = vrot.lane.b32.xlu2 %v5734_v0, %s7914_s24 }
  0x51   :  { %758 = vrot.lane.b32.xlu0 %v5755_v3, %s7914_s24  ;;  %548 = vrot.lane.b32.xlu1 %v5734_v0, %s5641_s25 }
  0x52   :  { %550 = vrot.lane.b32.xlu2 %v5755_v3, %s5641_s25 }
  0x59   :  { %648 = vrot.lane.b32.xlu0 %v5739_v1, %s5639_s23  ;;  %650 = vrot.lane.b32.xlu1 %v5760_v4, %s5639_s23 }
  0x5a   :  { %752 = vrot.lane.b32.xlu2 %v5739_v1, %s7914_s24 }
  0x61   :  { %754 = vrot.lane.b32.xlu0 %v5760_v4, %s7914_s24  ;;  %544 = vrot.lane.b32.xlu1 %v5739_v1, %s5641_s25 }
  0x62   :  { %546 = vrot.lane.b32.xlu2 %v5760_v4, %s5641_s25 }
  0x64   :  { %v94_v6 = vpop.permute.xlu2 %93 }
  0x65   :  { %v110_v21 = vmul.f32 %v5563_v11, %v94_v6  ;;  %v5417_v6 = vld [vmem:[%s7898_s3 + $0x48] sm:$0xff] }
  0x69   :  { %644 = vrot.lane.b32.xlu0 %v5748_v2, %s5639_s23  ;;  %646 = vrot.lane.b32.xlu1 %v5765_v5, %s5639_s23 }
  0x6a   :  { %748 = vrot.lane.b32.xlu2 %v5748_v2, %s7914_s24 }
  0x6c   :  { %v96_v7 = vpop.permute.xlu2 %95 }
  0x6d   :  { %v111_v22 = vmul.f32 %v5563_v11, %v96_v7 }
  0x6f   :  { %v116_v29 = vpack.c.bf16 %v111_v22, %v110_v21  ;;  %v5567_v22 = vld [vmem:[%s7897_s2 + $0x6] ss:$0 sm:$0xff] }
  0x71   :  { %750 = vrot.lane.b32.xlu0 %v5765_v5, %s7914_s24  ;;  %860 = vrot.lane.b32.xlu1 %v5734_v0, %s5642_s27 }
  0x72   :  { %862 = vrot.lane.b32.xlu2 %v5755_v3, %s5642_s27 }
  0x74   :  { %v65_v8 = vpop.permute.xlu2 %64 }
  0x75   :  { %v78_v32 = vmul.f32 %v5564_v20, %v65_v8 }
  0x79   :  { %540 = vrot.lane.b32.xlu0 %v5748_v2, %s5641_s25  ;;  %542 = vrot.lane.b32.xlu1 %v5765_v5, %s5641_s25 }
  0x7a   :  { %856 = vrot.lane.b32.xlu2 %v5739_v1, %s5642_s27 }
  0x7b   :  { %v102_v9 = vpop.permute.xlu0 %101  ;;  %v98_v10 = vpop.permute.xlu1 %97 }
  0x7c   :  { %v63_v12 = vpop.permute.xlu2 %62  ;;  %v114_v15 = vmul.f32 %v5563_v11, %v102_v9  ;;  %v112_v19 = vmul.f32 %v5563_v11, %v98_v10  ;;  %v5414_v10 = vld [vmem:[%s7898_s3 + $0x30] sm:$0xff] }
  0x7d   :  { %v77_v37 = vmul.f32 %v5564_v20, %v63_v12 }
  0x81   :  { %858 = vrot.lane.b32.xlu0 %v5760_v4, %s5642_s27  ;;  %852 = vrot.lane.b32.xlu1 %v5748_v2, %s5642_s27 }
  0x82   :  { %854 = vrot.lane.b32.xlu2 %v5765_v5, %s5642_s27 }
  0x83   :  { %v104_v13 = vpop.permute.xlu0 %103  ;;  %v100_v14 = vpop.permute.xlu1 %99 }
  0x84   :  { %v115_v16 = vmul.f32 %v5563_v11, %v104_v13  ;;  %v113_v17 = vmul.f32 %v5563_v11, %v100_v14  ;;  %v256_v24 = vpop.permute.xlu2 %255 }
  0x85   :  { %v270_v51 = vmul.f32 %v5565_v40, %v256_v24 }
  0x86   :  { %v118_v18 = vpack.c.bf16 %v115_v16, %v114_v15  ;;  %v117_v23 = vpack.c.bf16 %v113_v17, %v112_v19 }
  0x88   :  { %166 = vmatpush.bf16.msra.mxu0 %v118_v18  ;;  %v461_v18 = vpack.c.bf16 %v5755_v3, %v5734_v0  ;;  %v460_v0 = vpack.c.bf16 %v5760_v4, %v5739_v1  ;;  %v5420_v3 = vld [vmem:[%s7898_s3 + $0x60] sm:$0xff]  ;;  %v5415_v1 = vld [vmem:[%s7898_s3 + $0x38] sm:$0xff]  ;;  %v459_v4 = vpack.c.bf16 %v5765_v5, %v5748_v2 }
  0x8b   :  { %v69_v25 = vpop.permute.xlu0 %68  ;;  %v71_v26 = vpop.permute.xlu1 %70 }
  0x8c   :  { %v80_v27 = vmul.f32 %v5564_v20, %v69_v25  ;;  %v81_v28 = vmul.f32 %v5564_v20, %v71_v26  ;;  %167 = vmatpush.bf16.msra.mxu0 %v117_v23  ;;  %v254_v38 = vpop.permute.xlu2 %253  ;;  %v5410_v25 = vld [vmem:[%s7898_s3 + $0x10] sm:$0xff] }
  0x8d   :  { %v269_v56 = vmul.f32 %v5565_v40, %v254_v38  ;;  %v5418_v26 = vld [vmem:[%s7898_s3 + $0x50] sm:$0xff] }
  0x8e   :  { %v84_v30 = vpack.c.bf16 %v81_v28, %v80_v27  ;;  %v5916_v27 = vld [vmem:[%s7897_s2 + $0x7] ss:$0 sm:$0xff]  ;;  %v5921_v28 = vld [vmem:[%s7897_s2 + $0x5] ss:$0 sm:$0xff] }
  0x90   :  { %168 = vmatpush.bf16.msra.mxu0 %v116_v29  ;;  %227 = vmatpush.bf16.msra.mxu1 %v84_v30 }
  0x91   :  { %5543 = vmatpush.bf16.msra.mxu3 %v84_v30 }
  0x93   :  { %v67_v33 = vpop.permute.xlu0 %66  ;;  %v61_v34 = vpop.permute.xlu1 %60  ;;  %4511 = vmatmul.msk.bf16.vlgmr.msra.gmra.mxu0 %vm148_vm0, %v5412_v31 }
  0x94   :  { %v79_v35 = vmul.f32 %v5564_v20, %v67_v33  ;;  %v76_v36 = vmul.f32 %v5564_v20, %v61_v34  ;;  %v360_v49 = vpop.permute.xlu2 %359 }
  0x95   :  { %v374_v12 = vmul.f32 %v5566_v58, %v360_v49 }
  0x96   :  { %v83_v39 = vpack.c.bf16 %v79_v35, %v78_v32  ;;  %v82_v41 = vpack.c.bf16 %v77_v37, %v76_v36 }
  0x98   :  { %228 = vmatpush.bf16.msra.mxu1 %v83_v39  ;;  %5544 = vmatpush.bf16.msra.mxu3 %v83_v39 }
  0x9b   :  { %v260_v42 = vpop.permute.xlu0 %259  ;;  %v262_v43 = vpop.permute.xlu1 %261 }
  0x9c   :  { %v272_v46 = vmul.f32 %v5565_v40, %v260_v42  ;;  %v273_v47 = vmul.f32 %v5565_v40, %v262_v43  ;;  %229 = vmatpush.bf16.msra.mxu1 %v82_v41  ;;  %5545 = vmatpush.bf16.msra.mxu3 %v82_v41  ;;  %v358_v60 = vpop.permute.xlu2 %357  ;;  %v5419_v41 = vld [vmem:[%s7898_s3 + $0x58] sm:$0xff] }
  0x9d   :  { %v373_v17 = vmul.f32 %v5566_v58, %v358_v60  ;;  %v5422_v60 = vld [vmem:[%s7898_s3 + $0x70] sm:$0xff] }
  0x9e   :  { %v276_v48 = vpack.c.bf16 %v273_v47, %v272_v46  ;;  %v5416_v46 = vld [vmem:[%s7898_s3 + $0x40] sm:$0xff] }
  0x9f   :  { %4531 = vmatmul.msk.bf16.vlgmr.msra.gmra.mxu1 %vm148_vm0, %v5408_v44  ;;  %4534 = vmatmul.msk.bf16.vlgmr.msra.gmra.mxu3 %vm148_vm0, %v5411_v45  ;;  %v5421_v44 = vld [vmem:[%s7898_s3 + $0x68] sm:$0xff] }
  0xa0   :  { %5546 = vmatpush.bf16.msra.mxu2 %v276_v48  ;;  %323 = vmatpush.bf16.msrb.mxu0 %v276_v48 }
  0xa3   :  { %v258_v52 = vpop.permute.xlu0 %257  ;;  %v252_v53 = vpop.permute.xlu1 %251  ;;  %4512 = vmatmul.msk.bf16.gmra.mxu0 %vm148_vm0, %v5413_v50 }
  0xa4   :  { %v271_v54 = vmul.f32 %v5565_v40, %v258_v52  ;;  %v268_v55 = vmul.f32 %v5565_v40, %v252_v53  ;;  %v757_v11 = vpop.permute.xlu2 %756 }
  0xa5   :  { %v769_v31 = vmul.f32 %v5916_v27, %v757_v11 }
  0xa6   :  { %v275_v57 = vpack.c.bf16 %v271_v54, %v270_v51  ;;  %v274_v59 = vpack.c.bf16 %v269_v56, %v268_v55 }
  0xa8   :  { %5547 = vmatpush.bf16.msra.mxu2 %v275_v57  ;;  %324 = vmatpush.bf16.msrb.mxu0 %v275_v57 }
  0xab   :  { %v364_v61 = vpop.permute.xlu0 %363  ;;  %v366_v62 = vpop.permute.xlu1 %365 }
  0xac   :  { %v376_v7 = vmul.f32 %v5566_v58, %v364_v61  ;;  %v377_v8 = vmul.f32 %v5566_v58, %v366_v62  ;;  %5548 = vmatpush.bf16.msra.mxu2 %v274_v59  ;;  %325 = vmatpush.bf16.msrb.mxu0 %v274_v59  ;;  %v551_v21 = vpop.permute.xlu2 %550 }
  0xad   :  { %v562_v32 = vmul.f32 %v5921_v28, %v551_v21  ;;  %v5423_v21 = vld [vmem:[%s7898_s3 + $0x78] sm:$0xff] }
  0xae   :  { %v380_v9 = vpack.c.bf16 %v377_v8, %v376_v7  ;;  %v5570_v7 = vld [vmem:[%s7897_s2 + $0x8] ss:$0 sm:$0xff] }
  0xaf   :  { %4532 = vmatmul.msk.bf16.gmra.mxu1 %vm148_vm0, %v5409_v63  ;;  %4561 = vmatmul.msk.bf16.vlgmr.msra.gmra.mxu2 %vm148_vm0, %v5417_v6  ;;  %v5424_v63 = vld [vmem:[%s7898_s3 + $0x80] sm:$0xff] }
  0xb0   :  { %427 = vmatpush.bf16.msrb.mxu3 %v380_v9  ;;  %508 = vmatpush.bf16.msra.mxu0 %v461_v18  ;;  %v5432_v6 = vld [vmem:[%s7898_s3 + $0xc0] sm:$0xff] }
  0xb3   :  { %v362_v13 = vpop.permute.xlu0 %361  ;;  %v356_v14 = vpop.permute.xlu1 %355  ;;  %4513 = vmatmul.msk.bf16.gmra.mxu0 %vm148_vm0, %v5414_v10 }
  0xb4   :  { %v375_v15 = vmul.f32 %v5566_v58, %v362_v13  ;;  %v372_v16 = vmul.f32 %v5566_v58, %v356_v14  ;;  %509 = vmatpush.bf16.msra.mxu0 %v460_v0  ;;  %v753_v38 = vpop.permute.xlu2 %752 }
  0xb5   :  { %v767_v48 = vmul.f32 %v5916_v27, %v753_v38  ;;  %v5427_v38 = vld [vmem:[%s7898_s3 + $0x98] sm:$0xff] }
  0xb6   :  { %v379_v19 = vpack.c.bf16 %v375_v15, %v374_v12  ;;  %v378_v20 = vpack.c.bf16 %v373_v17, %v372_v16 }
  0xb8   :  { %428 = vmatpush.bf16.msrb.mxu3 %v379_v19  ;;  %510 = vmatpush.bf16.msra.mxu0 %v459_v4  ;;  %v5436_v4 = vld [vmem:[%s7898_s3 + $0xe0] sm:$0xff] }
  0xbb   :  { %v653_v23 = vpop.permute.xlu0 %652  ;;  %v655_v24 = vpop.permute.xlu1 %654 }
  0xbc   :  { %429 = vmatpush.bf16.msrb.mxu3 %v378_v20  ;;  %v665_v29 = vmul.f32 %v5567_v22, %v653_v23  ;;  %v666_v30 = vmul.f32 %v5567_v22, %v655_v24  ;;  %v547_v47 = vpop.permute.xlu2 %546  ;;  %v5425_v23 = vld [vmem:[%s7898_s3 + $0x88] sm:$0xff]  ;;  %v5428_v24 = vld [vmem:[%s7898_s3 + $0xa0] sm:$0xff] }
  0xbd   :  { %v560_v49 = vmul.f32 %v5921_v28, %v547_v47  ;;  %v5441_v47 = vld [vmem:[%s7898_s3 + $0x108] sm:$0xff] }
  0xbe   :  { %v669_v35 = vpack.c.bf16 %v666_v30, %v665_v29 }
  0xbf   :  { %4533 = vmatmul.msk.bf16.gmra.mxu1 %vm148_vm0, %v5410_v25  ;;  %4562 = vmatmul.msk.bf16.gmra.mxu2 %vm148_vm0, %v5418_v26  ;;  %v5433_v25 = vld [vmem:[%s7898_s3 + $0xc8] sm:$0xff] }
  0xc0   :  { %4589 = vmatmul.msk.bf16.vlgmr.msrb.gmra.mxu3 %vm148_vm0, %v5420_v3  ;;  %716 = vmatpush.bf16.msrb.mxu2 %v669_v35  ;;  %v5434_v35 = vld [vmem:[%s7898_s3 + $0xd0] sm:$0xff] }
  0xc3   :  { %v759_v33 = vpop.permute.xlu0 %758  ;;  %v549_v34 = vpop.permute.xlu1 %548  ;;  %4514 = vmatmul.msk.bf16.gmra.mxu0 %vm148_vm0, %v5415_v1 }
  0xc4   :  { %v770_v36 = vmul.f32 %v5916_v27, %v759_v33  ;;  %v561_v37 = vmul.f32 %v5921_v28, %v549_v34  ;;  %v749_v61 = vpop.permute.xlu2 %748  ;;  %v5426_v33 = vld [vmem:[%s7898_s3 + $0x90] sm:$0xff]  ;;  %v5429_v34 = vld [vmem:[%s7898_s3 + $0xa8] sm:$0xff] }
  0xc5   :  { %v765_v8 = vmul.f32 %v5916_v27, %v749_v61  ;;  %v5443_v61 = vld [vmem:[%s7898_s3 + $0x118] sm:$0xff] }
  0xc6   :  { %v773_v39 = vpack.c.bf16 %v770_v36, %v769_v31  ;;  %v565_v2 = vpack.c.bf16 %v562_v32, %v561_v37  ;;  %v5437_v36 = vld [vmem:[%s7898_s3 + $0xe8] sm:$0xff]  ;;  %v5430_v37 = vld [vmem:[%s7898_s3 + $0xb0] sm:$0xff] }
  0xc8   :  { %612 = vmatpush.bf16.msrb.mxu1 %v565_v2  ;;  %820 = vmatpush.bf16.msra.mxu3 %v773_v39  ;;  %v5435_v2 = vld [vmem:[%s7898_s3 + $0xd8] sm:$0xff] }
  0xcb   :  { %v649_v5 = vpop.permute.xlu0 %648  ;;  %v651_v40 = vpop.permute.xlu1 %650 }
  0xcc   :  { %v663_v42 = vmul.f32 %v5567_v22, %v649_v5  ;;  %v664_v43 = vmul.f32 %v5567_v22, %v651_v40  ;;  %v863_v13 = vpop.permute.xlu2 %862  ;;  %v5438_v40 = vld [vmem:[%s7898_s3 + $0xf0] sm:$0xff] }
  0xcd   :  { %v874_v14 = vmul.f32 %v5570_v7, %v863_v13  ;;  %v1127_v13 = vld [vmem:[%s7899_s5] sm:$0xff] }
  0xce   :  { %v668_v45 = vpack.c.bf16 %v664_v43, %v663_v42  ;;  %v5440_v42 = vld [vmem:[%s7898_s3 + $0x100] sm:$0xff] }
  0xcf   :  { %4563 = vmatmul.msk.bf16.gmra.mxu2 %vm148_vm0, %v5419_v41  ;;  %v5431_v41 = vld [vmem:[%s7898_s3 + $0xb8] sm:$0xff] }
  0xd0   :  { %4590 = vmatmul.msk.bf16.gmra.mxu3 %vm148_vm0, %v5421_v44  ;;  %717 = vmatpush.bf16.msrb.mxu2 %v668_v45  ;;  %v5439_v45 = vld [vmem:[%s7898_s3 + $0xf8] sm:$0xff] }
  0xd3   :  { %v755_v50 = vpop.permute.xlu0 %754  ;;  %v545_v51 = vpop.permute.xlu1 %544  ;;  %4560 = vmatmul.msk.bf16.vlgmr.msrb.gmra.mxu0 %vm148_vm0, %v5416_v46 }
  0xd4   :  { %v768_v52 = vmul.f32 %v5916_v27, %v755_v50  ;;  %v559_v53 = vmul.f32 %v5921_v28, %v545_v51  ;;  %v857_v0 = vpop.permute.xlu2 %856  ;;  %v5442_v51 = vld [vmem:[%s7898_s3 + $0x110] sm:$0xff] }
  0xd6   :  { %v772_v54 = vpack.c.bf16 %v768_v52, %v767_v48  ;;  %v564_v55 = vpack.c.bf16 %v560_v49, %v559_v53 }
  0xd8   :  { %613 = vmatpush.bf16.msrb.mxu1 %v564_v55  ;;  %821 = vmatpush.bf16.msra.mxu3 %v772_v54 }
  0xdb   :  { %v645_v56 = vpop.permute.xlu0 %644  ;;  %v647_v57 = vpop.permute.xlu1 %646 }
  0xdc   :  { %v661_v58 = vmul.f32 %v5567_v22, %v645_v56  ;;  %v662_v59 = vmul.f32 %v5567_v22, %v647_v57  ;;  %v855_v1 = vpop.permute.xlu2 %854 }
  0xdd   :  { %v870_v31 = vmul.f32 %v5570_v7, %v855_v1 }
  0xde   :  { %v667_v62 = vpack.c.bf16 %v662_v59, %v661_v58  ;;  %v5643_v58 = vmov 0   ;;  %v1133_v59 = vld [vmem:[%s7899_s5 + $0x30] sm:$0xff] }
  0xdf   :  { %5560 = vset.pattern.permute.xlu2 %v5643_v58  ;;  %5562 = vset.pattern.permute.xlu0 %v5643_v58 }
  0xe0   :  { %4591 = vmatmul.msk.bf16.gmra.mxu3 %vm148_vm0, %v5422_v60  ;;  %718 = vmatpush.bf16.msrb.mxu2 %v667_v62 }
  0xe1   :  { %1167 = vperm.xlu2 %5560, %v1133_v59   ;;  %5561 = vset.pattern.permute.xlu1 %v5643_v58 }
  0xe3   :  { %v751_v9 = vpop.permute.xlu0 %750  ;;  %v861_v10 = vpop.permute.xlu1 %860  ;;  %4617 = vmatmul.msk.bf16.vlgmr.msra.gmra.mxu0 %vm148_vm0, %v5424_v63  ;;  %4675 = vmatmul.msk.bf16.vlgmr.msrb.gmra.mxu2 %vm148_vm0, %v5432_v6 }
  0xe4   :  { %v766_v11 = vmul.f32 %v5916_v27, %v751_v9  ;;  %v873_v12 = vmul.f32 %v5570_v7, %v861_v10  ;;  %v871_v27 = vmul.f32 %v5570_v7, %v857_v0  ;;  %v1132_v10 = vld [vmem:[%s7899_s5 + $0x28] sm:$0xff] }
  0xe6   :  { %v771_v15 = vpack.c.bf16 %v766_v11, %v765_v8  ;;  %v877_v16 = vpack.c.bf16 %v874_v14, %v873_v12  ;;  %v1134_v8 = vld [vmem:[%s7899_s5 + $0x38] sm:$0xff]  ;;  %v1131_v14 = vld [vmem:[%s7899_s5 + $0x20] sm:$0xff] }
  0xe7   :  { %1172 = vperm.xlu1 %5561, %v1134_v8  }
  0xe8   :  { %822 = vmatpush.bf16.msra.mxu3 %v771_v15  ;;  %924 = vmatpush.bf16.msrb.mxu0 %v877_v16 }
  0xe9   :  { %1162 = vperm.xlu2 %5560, %v1132_v10  }
  0xeb   :  { %v541_v17 = vpop.permute.xlu0 %540  ;;  %v543_v18 = vpop.permute.xlu1 %542 }
  0xec   :  { %v557_v19 = vmul.f32 %v5921_v28, %v541_v17  ;;  %v558_v20 = vmul.f32 %v5921_v28, %v543_v18  ;;  %v1129_v17 = vld [vmem:[%s7899_s5 + $0x10] sm:$0xff] }
  0xee   :  { %v563_v22 = vpack.c.bf16 %v558_v20, %v557_v19  ;;  %v1128_v19 = vld [vmem:[%s7899_s5 + $0x8] sm:$0xff] }
  0xef   :  { %1157 = vperm.xlu1 %5561, %v1131_v14  }
  0xf0   :  { %4592 = vmatmul.msk.bf16.gmra.mxu3 %vm148_vm0, %v5423_v21  ;;  %614 = vmatpush.bf16.msrb.mxu1 %v563_v22 }
  0xf1   :  { %1147 = vperm.xlu2 %5560, %v1129_v17  }
  0xf3   :  { %4618 = vmatmul.msk.bf16.gmra.mxu0 %vm148_vm0, %v5425_v23  ;;  %4646 = vmatmul.msk.bf16.vlgmr.msrb.gmra.mxu1 %vm148_vm0, %v5428_v24  ;;  %v859_v26 = vpop.permute.xlu0 %858  ;;  %v853_v29 = vpop.permute.xlu1 %852 }
  0xf4   :  { %4676 = vmatmul.msk.bf16.gmra.mxu2 %vm148_vm0, %v5433_v25  ;;  %v872_v3 = vmul.f32 %v5570_v7, %v859_v26  ;;  %v869_v30 = vmul.f32 %v5570_v7, %v853_v29  ;;  %v1130_v7 = vld [vmem:[%s7899_s5 + $0x18] sm:$0xff] }
  0xf5   :  { %1152 = vperm.xlu0 %5562, %v1130_v7  }
  0xf6   :  { %v876_v28 = vpack.c.bf16 %v872_v3, %v871_v27  ;;  %v875_v32 = vpack.c.bf16 %v870_v31, %v869_v30 }
  0xf7   :  { %1142 = vperm.xlu1 %5561, %v1128_v19  }
  0xf8   :  { %925 = vmatpush.bf16.msrb.mxu0 %v876_v28 }
  0xfc   :  { %926 = vmatpush.bf16.msrb.mxu0 %v875_v32 }
  0xfd   :  { %1137 = vperm.xlu0 %5562, %v1127_v13  }
 0x100   :  { %4704 = vmatmul.msk.bf16.vlgmr.msra.gmra.mxu3 %vm148_vm0, %v5436_v4 }
 0x103   :  { %4619 = vmatmul.msk.bf16.gmra.mxu0 %vm148_vm0, %v5426_v33  ;;  %4647 = vmatmul.msk.bf16.gmra.mxu1 %vm148_vm0, %v5429_v34 }
 0x104   :  { %4677 = vmatmul.msk.bf16.gmra.mxu2 %vm148_vm0, %v5434_v35 }
 0x110   :  { %4705 = vmatmul.msk.bf16.gmra.mxu3 %vm148_vm0, %v5437_v36  ;;  %v170_v39 = vpop.f32.mrf.mxu0 }
 0x113   :  { %4648 = vmatmul.msk.bf16.gmra.mxu1 %vm148_vm0, %v5430_v37  ;;  %4620 = vmatmul.msk.bf16.gmra.mxu0 %vm148_vm0, %v5427_v38 }
 0x114   :  { %4678 = vmatmul.msk.bf16.gmra.mxu2 %vm148_vm0, %v5435_v2 }
 0x118   :  { %v6019_v5 = vpop.f32.mrf.mxu0 }
 0x11c   :  { %v231_v57 = vpop.f32.mrf.mxu1 }
 0x11d   :  { %v232_v60 = vadd.f32 %v231_v57, %v170_v39 }
 0x120   :  { %4706 = vmatmul.msk.bf16.gmra.mxu3 %vm148_vm0, %v5438_v40  ;;  %v6031_v43 = vpop.f32.mrf.mxu0 }
 0x122   :  { %v246_v46 = vpop.f32.mrf.mxu3 }
 0x123   :  { %4649 = vmatmul.msk.bf16.gmra.mxu1 %vm148_vm0, %v5431_v41  ;;  %4733 = vmatmul.msk.bf16.vlgmr.msrb.gmra.mxu0 %vm148_vm0, %v5440_v42 }
 0x124   :  { %v233_v11 = vpop.f32.mrf.mxu1 }
 0x125   :  { %v234_v2 = vadd.f32 %v233_v11, %v6019_v5 }
 0x128   :  { %v6035_v44 = vpop.f32.mrf.mxu0 }
 0x12a   :  { %v6049_v50 = vpop.f32.mrf.mxu3 }
 0x12c   :  { %v236_v20 = vpop.f32.mrf.mxu1 }
 0x130   :  { %4707 = vmatmul.msk.bf16.gmra.mxu3 %vm148_vm0, %v5439_v45  ;;  %v6044_v48 = vpop.f32.mrf.mxu0 }
 0x132   :  { %v6067_v63 = vpop.f32.mrf.mxu2 }
 0x133   :  { %4734 = vmatmul.msk.bf16.gmra.mxu0 %vm148_vm0, %v5441_v47 }
 0x134   :  { %v238_v24 = vpop.f32.mrf.mxu1 }
 0x138   :  { %v6047_v49 = vpop.f32.mrf.mxu0 }
 0x13a   :  { %v334_v15 = vpop.f32.mrf.mxu2 }
 0x13c   :  { %v241_v3 = vpop.f32.mrf.mxu1 }
 0x140   :  { %v185_v52 = vpop.f32.mrf.mxu0 }
 0x141   :  { %v6054_v53 = vadd.f32 %v246_v46, %v185_v52 }
 0x142   :  { %v6093_v21 = vpop.f32.mrf.mxu2 }
 0x143   :  { %v431_v54 = vpop.f32.mrf.mxu3  ;;  %4735 = vmatmul.msk.bf16.gmra.mxu0 %vm148_vm0, %v5442_v51 }
 0x144   :  { %v6105_v30 = vpop.f32.mrf.mxu1 }
 0x148   :  { %v6057_v55 = vpop.f32.mrf.mxu0 }
 0x14a   :  { %v6097_v25 = vpop.f32.mrf.mxu2 }
 0x14b   :  { %v6059_v56 = vpop.f32.mrf.mxu3 }
 0x150   :  { %v327_v62 = vpop.f32.mrf.mxu0 }
 0x151   :  { %v347_v6 = vadd.f32 %v327_v62, %v232_v60 }
 0x152   :  { %v6101_v28 = vpop.f32.mrf.mxu2 }
 0x153   :  { %v436_v9 = vpop.f32.mrf.mxu3  ;;  %4736 = vmatmul.msk.bf16.gmra.mxu0 %vm148_vm0, %v5443_v61  ;;  %v451_v38 = vadd.f32 %v431_v54, %v347_v6  ;;  %v237_v61 = vadd.f32 %v236_v20, %v6031_v43  ;;  %v239_v43 = vadd.f32 %v238_v24, %v6035_v44  ;;  %v242_v44 = vadd.f32 %v241_v3, %v6044_v48 }
 0x154   :  { %v244_v3 = vadd.f32 %v6105_v30, %v6047_v49 }
 0x155   :  { %v349_v6 = vadd.f32 %v6067_v63, %v237_v61  ;;  %v350_v19 = vadd.f32 %v334_v15, %v239_v43  ;;  %v351_v15 = vadd.f32 %v6093_v21, %v242_v44 }
 0x157   :  { %v453_v8 = vadd.f32 %v436_v9, %v349_v6 }
 0x158   :  { %v329_v12 = vpop.f32.mrf.mxu0 }
 0x159   :  { %v348_v45 = vadd.f32 %v329_v12, %v234_v2 }
 0x15a   :  { %v6109_v4 = vpop.f32.mrf.mxu2 }
 0x15b   :  { %v6085_v16 = vpop.f32.mrf.mxu3  ;;  %v452_v51 = vadd.f32 %v6059_v56, %v348_v45 }
 0x15c   :  { %v454_v9 = vadd.f32 %v6085_v16, %v350_v19 }
 0x160   :  { %v512_v18 = vpop.f32.mrf.mxu0 }
 0x161   :  { %v532_v40 = vadd.f32 %v512_v18, %v451_v38 }
 0x163   :  { %v6095_v22 = vpop.f32.mrf.mxu3 }
 0x164   :  { %v455_v16 = vadd.f32 %v6095_v22, %v351_v15 }
 0x166   :  { %v720_v34 = vpop.f32.mrf.mxu2 }
 0x167   :  { %v6191_v44 = vpop.permute.xlu0 %1152 }
 0x168   :  { %v514_v23 = vpop.f32.mrf.mxu0 }
 0x169   :  { %v533_v57 = vadd.f32 %v514_v23, %v452_v51 }
 0x16b   :  { %v6099_v26 = vpop.f32.mrf.mxu3 }
 0x16e   :  { %v722_v39 = vpop.f32.mrf.mxu2 }
 0x170   :  { %v517_v0 = vpop.f32.mrf.mxu0  ;;  %v616_v32 = vpop.f32.mrf.mxu1 }
 0x171   :  { %v636_v46 = vadd.f32 %v616_v32, %v532_v40  ;;  %v534_v11 = vadd.f32 %v517_v0, %v453_v8  ;;  %v249_v8 = vadd.f32 %v6049_v50, %v6057_v55 }
 0x173   :  { %v6103_v29 = vpop.f32.mrf.mxu3  ;;  %v740_v52 = vadd.f32 %v720_v34, %v636_v46 }
 0x177   :  { %v725_v59 = vpop.f32.mrf.mxu2 }
 0x178   :  { %v519_v27 = vpop.f32.mrf.mxu0  ;;  %v618_v37 = vpop.f32.mrf.mxu1 }
 0x179   :  { %v637_v54 = vadd.f32 %v618_v37, %v533_v57  ;;  %v535_v0 = vadd.f32 %v519_v27, %v454_v9 }
 0x17b   :  { %v6111_v31 = vpop.f32.mrf.mxu3  ;;  %v741_v56 = vadd.f32 %v722_v39, %v637_v54 }
 0x17f   :  { %v727_v18 = vpop.f32.mrf.mxu2 }
 0x180   :  { %v6107_v1 = vpop.f32.mrf.mxu0  ;;  %v621_v47 = vpop.f32.mrf.mxu1 }
 0x181   :  { %v638_v14 = vadd.f32 %v621_v47, %v534_v11  ;;  %v536_v40 = vadd.f32 %v6107_v1, %v455_v16  ;;  %v352_v47 = vadd.f32 %v6097_v25, %v244_v3  ;;  %v353_v25 = vadd.f32 %v6101_v28, %v6054_v53 }
 0x182   :  { %v354_v11 = vadd.f32 %v6109_v4, %v249_v8 }
 0x183   :  { %v824_v35 = vpop.f32.mrf.mxu3  ;;  %v742_v23 = vadd.f32 %v725_v59, %v638_v14  ;;  %v456_v22 = vadd.f32 %v6099_v26, %v352_v47  ;;  %v457_v30 = vadd.f32 %v6103_v29, %v353_v25 }
 0x184   :  { %v844_v58 = vadd.f32 %v824_v35, %v740_v52 }
 0x187   :  { %v730_v39 = vpop.f32.mrf.mxu2 }
 0x188   :  { %v6113_v33 = vpop.f32.mrf.mxu0  ;;  %v623_v10 = vpop.f32.mrf.mxu1 }
 0x189   :  { %v639_v24 = vadd.f32 %v623_v10, %v535_v0  ;;  %v537_v57 = vadd.f32 %v6113_v33, %v456_v22  ;;  %v6183_v0 = vpop.permute.xlu2 %1167 }
 0x18b   :  { %v826_v41 = vpop.f32.mrf.mxu3  ;;  %v743_v2 = vadd.f32 %v727_v18, %v639_v24 }
 0x18c   :  { %v845_v12 = vadd.f32 %v826_v41, %v741_v56 }
 0x18f   :  { %v732_v52 = vpop.f32.mrf.mxu2 }
 0x190   :  { %v6115_v36 = vpop.f32.mrf.mxu0  ;;  %v626_v34 = vpop.f32.mrf.mxu1 }
 0x191   :  { %v640_v45 = vadd.f32 %v626_v34, %v536_v40  ;;  %v538_v33 = vadd.f32 %v6115_v36, %v457_v30  ;;  %v458_v36 = vadd.f32 %v6111_v31, %v354_v11  ;;  %v6187_v34 = vpop.permute.xlu1 %1172  ;;  %v5644_v40 = vmov 512.0  }
 0x192   :  { %5571 = vrcp.f32 %v5644_v40  ;;  %v1025_v40 = vld [vmem:[%s7900_s4 + $0x10] sm:$0xff] }
 0x193   :  { %v829_v5 = vpop.f32.mrf.mxu3  ;;  %v744_v51 = vadd.f32 %v730_v39, %v640_v45 }
 0x194   :  { %v846_v32 = vadd.f32 %v829_v5, %v742_v23 }
 0x197   :  { %v735_v6 = vpop.f32.mrf.mxu2 }
 0x198   :  { %v6118_v42 = vpop.f32.mrf.mxu0  ;;  %v628_v46 = vpop.f32.mrf.mxu1 }
 0x199   :  { %v539_v55 = vadd.f32 %v6118_v42, %v458_v36  ;;  %v6193_v24 = vpop.permute.xlu1 %1157  ;;  %v5572_v3 = vpop.eup %5571 }
 0x19a   :  { %v1009_v47 = vmul.f32 512.0, %v5572_v3  ;;  %vm1013_vm1 = vweird.f32 %v5572_v3 }
 0x19b   :  { %v831_v20 = vpop.f32.mrf.mxu3 }
 0x19c   :  { %v847_v41 = vadd.f32 %v831_v20, %v743_v2 }
 0x19f   :  { %v737_v19 = vpop.f32.mrf.mxu2 }
 0x1a0   :  { %v928_v60 = vpop.f32.mrf.mxu0  ;;  %v631_v26 = vpop.f32.mrf.mxu1 }
 0x1a1   :  { %v6122_v62 = vadd.f32 %v928_v60, %v844_v58  ;;  %v641_v60 = vadd.f32 %v628_v46, %v537_v57  ;;  %v642_v56 = vadd.f32 %v631_v26, %v538_v33  ;;  %v6197_v16 = vpop.permute.xlu1 %1142 }
 0x1a3   :  { %956 = vadd.xlane.f32.xlu0 %v6122_v62  ;;  %v972_v7 = vmul.f32 %v6122_v62, %v6122_v62  ;;  %v834_v27 = vpop.f32.mrf.mxu3  ;;  %v745_v54 = vadd.f32 %v732_v52, %v641_v60 }
 0x1a4   :  { %v848_v1 = vadd.f32 %v834_v27, %v744_v51  ;;  %v1010_v51 = vsub.f32 1.0, %v1009_v47 }
 0x1a5   :  { %980 = vadd.xlane.f32.xlu2 %v972_v7 }
 0x1a8   :  { %v930_v13 = vpop.f32.mrf.mxu0  ;;  %v633_v50 = vpop.f32.mrf.mxu1 }
 0x1a9   :  { %v6129_v17 = vadd.f32 %v930_v13, %v845_v12  ;;  %v746_v12 = vadd.f32 %v735_v6, %v642_v56  ;;  %v643_v14 = vadd.f32 %v633_v50, %v539_v55 }
 0x1ab   :  { %958 = vadd.xlane.f32.xlu1 %v6129_v17  ;;  %v973_v63 = vmul.f32 %v6129_v17, %v6129_v17  ;;  %v836_v58 = vpop.f32.mrf.mxu3  ;;  %v747_v20 = vadd.f32 %v737_v19, %v643_v14 }
 0x1ac   :  { %v849_v5 = vadd.f32 %v836_v58, %v745_v54 }
 0x1ad   :  { %982 = vadd.xlane.f32.xlu0 %v973_v63 }
 0x1b0   :  { %v933_v35 = vpop.f32.mrf.mxu0 }
 0x1b1   :  { %v6136_v37 = vadd.f32 %v933_v35, %v846_v32  ;;  %v6185_v32 = vpop.permute.xlu2 %1162 }
 0x1b3   :  { %960 = vadd.xlane.f32.xlu2 %v6136_v37  ;;  %v974_v38 = vmul.f32 %v6136_v37, %v6136_v37  ;;  %v839_v28 = vpop.f32.mrf.mxu3 }
 0x1b4   :  { %v850_v13 = vadd.f32 %v839_v28, %v746_v12 }
 0x1b5   :  { %984 = vadd.xlane.f32.xlu1 %v974_v38  ;;  %v6195_v38 = vpop.permute.xlu0 %1137 }
 0x1b8   :  { %v935_v48 = vpop.f32.mrf.mxu0 }
 0x1b9   :  { %v6146_v21 = vadd.f32 %v935_v48, %v847_v41  ;;  %v6189_v35 = vpop.permute.xlu2 %1147 }
 0x1bb   :  { %962 = vadd.xlane.f32.xlu2 %v6146_v21  ;;  %v975_v49 = vmul.f32 %v6146_v21, %v6146_v21  ;;  %v841_v63 = vpop.f32.mrf.mxu3 }
 0x1bc   :  { %v851_v31 = vadd.f32 %v841_v63, %v747_v20 }
 0x1c0   :  { %v938_v59 = vpop.f32.mrf.mxu0 }
 0x1c1   :  { %v6152_v61 = vadd.f32 %v938_v59, %v848_v1  ;;  %v1011_v1 = vmul.f32 %v5572_v3, %v1010_v51 }
 0x1c3   :  { %986 = vadd.xlane.f32.xlu2 %v975_v49  ;;  %964 = vadd.xlane.f32.xlu0 %v6152_v61  ;;  %v976_v53 = vmul.f32 %v6152_v61, %v6152_v61  ;;  %v1012_v59 = vadd.f32 %v5572_v3, %v1011_v1  ;;  %v1030_v1 = vld [vmem:[%s7900_s4 + $0x38] sm:$0xff] }
 0x1c5   :  { %v6199_v30 = vsel %vm1013_vm1, %v5572_v3, %v1012_v59  ;;  %v1029_v3 = vld [vmem:[%s7900_s4 + $0x30] sm:$0xff]  ;;  %v1028_v59 = vld [vmem:[%s7900_s4 + $0x28] sm:$0xff] }
 0x1c8   :  { %v940_v7 = vpop.f32.mrf.mxu0 }
 0x1c9   :  { %v6163_v10 = vadd.f32 %v940_v7, %v849_v5 }
 0x1cb   :  { %988 = vadd.xlane.f32.xlu2 %v976_v53  ;;  %966 = vadd.xlane.f32.xlu1 %v6163_v10  ;;  %v977_v29 = vmul.f32 %v6163_v10, %v6163_v10 }
 0x1cd   :  { %990 = vadd.xlane.f32.xlu0 %v977_v29 }
 0x1d0   :  { %v943_v43 = vpop.f32.mrf.mxu0 }
 0x1d1   :  { %v6173_v18 = vadd.f32 %v943_v43, %v850_v13 }
 0x1d3   :  { %v978_v4 = vmul.f32 %v6173_v18, %v6173_v18 }
 0x1d5   :  { %968 = vadd.xlane.f32.xlu0 %v6173_v18  ;;  %992 = vadd.xlane.f32.xlu1 %v978_v4 }
 0x1d8   :  { %v945_v9 = vpop.f32.mrf.mxu0 }
 0x1d9   :  { %v6178_v23 = vadd.f32 %v945_v9, %v851_v31 }
 0x1db   :  { %v979_v42 = vmul.f32 %v6178_v23, %v6178_v23 }
 0x1dd   :  { %970 = vadd.xlane.f32.xlu1 %v6178_v23  ;;  %994 = vadd.xlane.f32.xlu2 %v979_v42 }
 0x216   :  { %v957_v2 = vpop.xlane.xlu0 %956 }
 0x218   :  { %v981_v15 = vpop.xlane.xlu2 %980 }
 0x21e   :  { %v959_v27 = vpop.xlane.xlu1 %958 }
 0x220   :  { %v983_v41 = vpop.xlane.xlu0 %982 }
 0x226   :  { %v961_v39 = vpop.xlane.xlu2 %960 }
 0x227   :  { %v996_v60 = vadd.f32 %v961_v39, %v957_v2 }
 0x228   :  { %v985_v45 = vpop.xlane.xlu1 %984 }
 0x229   :  { %v998_v49 = vadd.f32 %v985_v45, %v981_v15 }
 0x22e   :  { %v963_v48 = vpop.xlane.xlu2 %962 }
 0x22f   :  { %v997_v8 = vadd.f32 %v963_v48, %v959_v27  ;;  %v1023_v48 = vld [vmem:[%s7900_s4] sm:$0xff] }
 0x236   :  { %v965_v46 = vpop.xlane.xlu0 %964  ;;  %v987_v22 = vpop.xlane.xlu2 %986 }
 0x237   :  { %v1000_v25 = vadd.f32 %v996_v60, %v965_v46  ;;  %v999_v56 = vadd.f32 %v987_v22, %v983_v41  ;;  %v1027_v60 = vld [vmem:[%s7900_s4 + $0x20] sm:$0xff] }
 0x23e   :  { %v967_v52 = vpop.xlane.xlu1 %966  ;;  %v989_v58 = vpop.xlane.xlu2 %988 }
 0x23f   :  { %v1002_v26 = vadd.f32 %v998_v49, %v989_v58  ;;  %v1001_v11 = vadd.f32 %v997_v8, %v967_v52 }
 0x240   :  { %v991_v57 = vpop.xlane.xlu0 %990 }
 0x241   :  { %v1003_v29 = vadd.f32 %v999_v56, %v991_v57 }
 0x248   :  { %v969_v54 = vpop.xlane.xlu0 %968  ;;  %v993_v33 = vpop.xlane.xlu1 %992 }
 0x249   :  { %v1004_v5 = vadd.f32 %v1000_v25, %v969_v54  ;;  %v1006_v6 = vadd.f32 %v1002_v26, %v993_v33  ;;  %v1026_v33 = vld [vmem:[%s7900_s4 + $0x18] sm:$0xff] }
 0x24b   :  { %v1015_v7 = vmul.f32 %v6199_v30, %v1004_v5  ;;  %v1017_v28 = vmul.f32 %v6199_v30, %v1006_v6  ;;  %v1024_v5 = vld [vmem:[%s7900_s4 + $0x8] sm:$0xff]  ;;  %s7918_s4 = smov 120  }
 0x24d   :  { %v1019_v53 = vmul.f32 %v1015_v7, %v1015_v7  ;;  %1063 = vperm.xlu0 %5562, %v1015_v7  }
 0x24f   :  { %v1021_v36 = vsub.f32 %v1017_v28, %v1019_v53 }
 0x250   :  { %v971_v12 = vpop.xlane.xlu1 %970  ;;  %v995_v50 = vpop.xlane.xlu2 %994 }
 0x251   :  { %v1031_v55 = vadd.f32 1e-05, %v1021_v36  ;;  %v1005_v13 = vadd.f32 %v1001_v11, %v971_v12  ;;  %v1007_v43 = vadd.f32 %v1003_v29, %v995_v50 }
 0x253   :  { %5573 = vrsqrt.f32 %v1031_v55  ;;  %v1016_v14 = vmul.f32 %v6199_v30, %v1005_v13  ;;  %v1018_v4 = vmul.f32 %v6199_v30, %v1007_v43  ;;  %vm1039_vm3 = vweird.f32 %v1031_v55 }
 0x255   :  { %v1020_v19 = vmul.f32 %v1016_v14, %v1016_v14  ;;  %1068 = vperm.xlu1 %5561, %v1016_v14  }
 0x257   :  { %v1022_v63 = vsub.f32 %v1018_v4, %v1020_v19 }
 0x259   :  { %v5574_v20 = vpop.eup %5573  ;;  %v1032_v31 = vadd.f32 1e-05, %v1022_v63 }
 0x25a   :  { %v1034_v9 = vmul.f32 %v5574_v20, %v1031_v55  ;;  %vm1040_vm2 = vweird.f32 %v5574_v20 }
 0x25b   :  { %5575 = vrsqrt.f32 %v1032_v31  ;;  %vm1041_vm4 = vmor %vm1039_vm3, %vm1040_vm2  ;;  %vm1049_vm6 = vweird.f32 %v1032_v31 }
 0x25c   :  { %v1035_v42 = vmul.f32 %v5574_v20, %v1034_v9 }
 0x25e   :  { %v1036_v15 = vmul.f32 0.5, %v1035_v42 }
 0x260   :  { %v1037_v39 = vsub.f32 1.5, %v1036_v15 }
 0x261   :  { %v5576_v2 = vpop.eup %5575 }
 0x262   :  { %v1044_v27 = vmul.f32 %v5576_v2, %v1032_v31  ;;  %v1038_v41 = vmul.f32 %v5574_v20, %v1037_v39  ;;  %vm1050_vm5 = vweird.f32 %v5576_v2 }
 0x263   :  { %vm1051_vm7 = vmor %vm1049_vm6, %vm1050_vm5  ;;  %vm2009_vm6 = vcmask 261120  }
 0x264   :  { %v1045_v45 = vmul.f32 %v5576_v2, %v1044_v27  ;;  %v1042_v46 = vsel %vm1041_vm4, %v5574_v20, %v1038_v41 }
 0x265   :  { %v1055_v47 = vmul.f32 %v1042_v46, %v1025_v40  ;;  %v1053_v22 = vmul.f32 %v1042_v46, %v1023_v48  ;;  %v1059_v51 = vmul.f32 %v1042_v46, %v1029_v3  ;;  %v1057_v54 = vmul.f32 %v1042_v46, %v1027_v60 }
 0x266   :  { %v1046_v52 = vmul.f32 0.5, %v1045_v45 }
 0x267   :  { %1091 = vperm.xlu0 %5562, %v1055_v47   ;;  %1081 = vperm.xlu1 %5561, %v1053_v22  }
 0x268   :  { %v1047_v57 = vsub.f32 1.5, %v1046_v52  ;;  %1111 = vperm.xlu2 %5560, %v1059_v51  }
 0x26a   :  { %v1048_v58 = vmul.f32 %v5576_v2, %v1047_v57 }
 0x26c   :  { %v1052_v49 = vsel %vm1051_vm7, %v5576_v2, %v1048_v58 }
 0x26d   :  { %v1060_v25 = vmul.f32 %v1052_v49, %v1030_v1  ;;  %v1058_v26 = vmul.f32 %v1052_v49, %v1028_v59  ;;  %v1056_v6 = vmul.f32 %v1052_v49, %v1026_v33  ;;  %v1054_v7 = vmul.f32 %v1052_v49, %v1024_v5 }
 0x26f   :  { %1116 = vperm.xlu1 %5561, %v1060_v25   ;;  %1106 = vperm.xlu0 %5562, %v1058_v26  }
 0x270   :  { %1101 = vperm.xlu2 %5560, %v1057_v54  }
 0x277   :  { %1096 = vperm.xlu1 %5561, %v1056_v6  }
 0x278   :  { %1086 = vperm.xlu2 %5560, %v1054_v7  }
 0x2bf   :  { %v1064_v8 = vpop.permute.xlu0 %1063 }
 0x2c0   :  { %v1077_v56 = vsub.f32 %v6173_v18, %v1064_v8  ;;  %v1075_v36 = vsub.f32 %v6152_v61, %v1064_v8  ;;  %v1071_v43 = vsub.f32 %v6122_v62, %v1064_v8 }
 0x2c2   :  { %v1112_v53 = vpop.permute.xlu2 %1111 }
 0x2c3   :  { %v1125_v28 = vmul.f32 %v1112_v53, %v1077_v56 }
 0x2c5   :  { %v1181_v11 = vadd.f32 %v6183_v0, %v1125_v28  ;;  %v1073_v0 = vsub.f32 %v6136_v37, %v1064_v8 }
 0x2c7   :  { %v6231_v29 = vmax.f32 %v1181_v11, 0.0  ;;  %v1069_v18 = vpop.permute.xlu1 %1068 }
 0x2c8   :  { %v1078_v37 = vsub.f32 %v6178_v23, %v1069_v18  ;;  %v1076_v39 = vsub.f32 %v6163_v10, %v1069_v18  ;;  %v1074_v2 = vsub.f32 %v6146_v21, %v1069_v18  ;;  %v1072_v23 = vsub.f32 %v6129_v17, %v1069_v18 }
 0x2c9   :  { %1235 = vrot.lane.b32.xlu0 %v6231_v29, %s5635_s26  ;;  %1203 = vrot.lane.b32.xlu2 %v6231_v29, %s5636_s20 }
 0x2ca   :  { %v1102_v12 = vpop.permute.xlu2 %1101 }
 0x2cb   :  { %v1123_v50 = vmul.f32 %v1102_v12, %v1075_v36 }
 0x2cd   :  { %v1179_v55 = vadd.f32 %v6193_v24, %v1123_v50 }
 0x2cf   :  { %v6239_v13 = vmax.f32 %v1179_v55, 0.0 }
 0x2d1   :  { %1199 = vrot.lane.b32.xlu1 %v6239_v13, %s5636_s20 }
 0x2d2   :  { %v1087_v15 = vpop.permute.xlu2 %1086 }
 0x2d3   :  { %v1120_v48 = vmul.f32 %v1087_v15, %v1072_v23 }
 0x2d5   :  { %v1176_v17 = vadd.f32 %v6197_v16, %v1120_v48 }
 0x2d7   :  { %v6321_v45 = vmax.f32 %v1176_v17, 0.0 }
 0x2d9   :  { %1231 = vrot.lane.b32.xlu1 %v6239_v13, %s5635_s26  ;;  %v1092_v14 = vpop.permute.xlu0 %1091  ;;  %v1082_v19 = vpop.permute.xlu1 %1081 }
 0x2da   :  { %v1121_v61 = vmul.f32 %v1092_v14, %v1073_v0  ;;  %v1119_v4 = vmul.f32 %v1082_v19, %v1071_v43  ;;  %v6444_v14 = vld [vmem:[%s7897_s2] ss:$0 sm:$0xff] }
 0x2dc   :  { %v1177_v63 = vadd.f32 %v6189_v35, %v1121_v61  ;;  %v1175_v24 = vadd.f32 %v6195_v38, %v1119_v4 }
 0x2de   :  { %v6249_v20 = vmax.f32 %v1177_v63, 0.0  ;;  %v6251_v31 = vmax.f32 %v1175_v24, 0.0  ;;  %v6451_v63 = vld [vmem:[%s7897_s2 + $0x1] ss:$0 sm:$0xff] }
 0x2e0   :  { %1191 = vrot.lane.b32.xlu0 %v6251_v31, %s5636_s20  ;;  %1195 = vrot.lane.b32.xlu2 %v6249_v20, %s5636_s20 }
 0x2e1   :  { %1223 = vrot.lane.b32.xlu1 %v6251_v31, %s5635_s26  ;;  %v1117_v62 = vpop.permute.xlu1 %1116  ;;  %v1107_v9 = vpop.permute.xlu0 %1106 }
 0x2e2   :  { %v1126_v35 = vmul.f32 %v1117_v62, %v1078_v37  ;;  %v1124_v40 = vmul.f32 %v1107_v9, %v1076_v39 }
 0x2e4   :  { %v1182_v38 = vadd.f32 %v6187_v34, %v1126_v35  ;;  %v1180_v10 = vadd.f32 %v6185_v32, %v1124_v40 }
 0x2e6   :  { %v6306_v27 = vmax.f32 %v1182_v38, 0.0  ;;  %v6317_v34 = vmax.f32 %v1180_v10, 0.0 }
 0x2e8   :  { %1339 = vrot.lane.b32.xlu0 %v6231_v29, %s5637_s21  ;;  %1227 = vrot.lane.b32.xlu2 %v6249_v20, %s5635_s26 }
 0x2e9   :  { %1331 = vrot.lane.b32.xlu1 %v6249_v20, %s5637_s21  ;;  %v1097_v42 = vpop.permute.xlu1 %1096 }
 0x2ea   :  { %v1122_v41 = vmul.f32 %v1097_v42, %v1074_v2 }
 0x2ec   :  { %v1178_v21 = vadd.f32 %v6191_v44, %v1122_v41 }
 0x2ee   :  { %v6319_v3 = vmax.f32 %v1178_v21, 0.0 }
 0x2f0   :  { %1411 = vrot.lane.b32.xlu0 %v6231_v29, %s5638_s22  ;;  %1335 = vrot.lane.b32.xlu2 %v6239_v13, %s5637_s21 }
 0x2f1   :  { %1407 = vrot.lane.b32.xlu1 %v6239_v13, %s5638_s22 }
 0x2f8   :  { %1403 = vrot.lane.b32.xlu0 %v6249_v20, %s5638_s22  ;;  %1327 = vrot.lane.b32.xlu2 %v6251_v31, %s5637_s21 }
 0x2f9   :  { %1531 = vrot.lane.b32.xlu1 %v6231_v29, %s5641_s25 }
 0x300   :  { %1527 = vrot.lane.b32.xlu0 %v6239_v13, %s5641_s25  ;;  %1399 = vrot.lane.b32.xlu2 %v6251_v31, %s5638_s22 }
 0x301   :  { %1523 = vrot.lane.b32.xlu1 %v6249_v20, %s5641_s25 }
 0x308   :  { %1603 = vrot.lane.b32.xlu0 %v6231_v29, %s5639_s23  ;;  %1747 = vrot.lane.b32.xlu2 %v6231_v29, %s5642_s27 }
 0x309   :  { %1743 = vrot.lane.b32.xlu1 %v6239_v13, %s5642_s27 }
 0x310   :  { %1519 = vrot.lane.b32.xlu0 %v6251_v31, %s5641_s25  ;;  %1675 = vrot.lane.b32.xlu2 %v6231_v29, %s7918_s4 }
 0x311   :  { %1671 = vrot.lane.b32.xlu1 %v6239_v13, %s7918_s4 }
 0x318   :  { %1739 = vrot.lane.b32.xlu0 %v6249_v20, %s5642_s27  ;;  %1599 = vrot.lane.b32.xlu2 %v6239_v13, %s5639_s23 }
 0x319   :  { %1667 = vrot.lane.b32.xlu1 %v6249_v20, %s7918_s4 }
 0x320   :  { %1205 = vrot.lane.b32.xlu0 %v6306_v27, %s5636_s20  ;;  %1595 = vrot.lane.b32.xlu2 %v6249_v20, %s5639_s23 }
 0x321   :  { %1237 = vrot.lane.b32.xlu1 %v6306_v27, %s5635_s26 }
 0x323   :  { %v1204_v32 = vpop.permute.xlu2 %1203 }
 0x324   :  { %v1213_v19 = vmul.f32 %v6444_v14, %v1204_v32 }
 0x328   :  { %1197 = vrot.lane.b32.xlu0 %v6319_v3, %s5636_s20  ;;  %1201 = vrot.lane.b32.xlu2 %v6317_v34, %s5636_s20 }
 0x329   :  { %1193 = vrot.lane.b32.xlu1 %v6321_v45, %s5636_s20 }
 0x330   :  { %1229 = vrot.lane.b32.xlu0 %v6319_v3, %s5635_s26  ;;  %1233 = vrot.lane.b32.xlu2 %v6317_v34, %s5635_s26 }
 0x331   :  { %1341 = vrot.lane.b32.xlu1 %v6306_v27, %s5637_s21 }
 0x338   :  { %1735 = vrot.lane.b32.xlu0 %v6251_v31, %s5642_s27  ;;  %1591 = vrot.lane.b32.xlu2 %v6251_v31, %s5639_s23 }
 0x339   :  { %1413 = vrot.lane.b32.xlu1 %v6306_v27, %s5638_s22 }
 0x33a   :  { %v6341_v44 = vpop.permute.xlu2 %1195 }
 0x33b   :  { %v1236_v47 = vpop.permute.xlu0 %1235  ;;  %v1209_v41 = vmul.f32 %v6444_v14, %v6341_v44  ;;  %v5444_v44 = vld [vmem:[%s7901_s6] sm:$0xff] }
 0x33c   :  { %v1245_v24 = vmul.f32 %v6451_v63, %v1236_v47 }
 0x340   :  { %1337 = vrot.lane.b32.xlu0 %v6317_v34, %s5637_s21  ;;  %1225 = vrot.lane.b32.xlu2 %v6321_v45, %s5635_s26 }
 0x341   :  { %1405 = vrot.lane.b32.xlu1 %v6319_v3, %s5638_s22 }
 0x342   :  { %v6349_v16 = vpop.permute.xlu2 %1227 }
 0x343   :  { %v1200_v46 = vpop.permute.xlu1 %1199 }
 0x344   :  { %v1211_v42 = vmul.f32 %v6444_v14, %v1200_v46 }
 0x348   :  { %1329 = vrot.lane.b32.xlu0 %v6321_v45, %s5637_s21  ;;  %1333 = vrot.lane.b32.xlu2 %v6319_v3, %s5637_s21 }
 0x349   :  { %1529 = vrot.lane.b32.xlu1 %v6317_v34, %s5641_s25 }
 0x34a   :  { %v6357_v22 = vpop.permute.xlu2 %1335 }
 0x34b   :  { %v1232_v51 = vpop.permute.xlu1 %1231 }
 0x34c   :  { %v1243_v15 = vmul.f32 %v6451_v63, %v1232_v51 }
 0x350   :  { %1401 = vrot.lane.b32.xlu0 %v6321_v45, %s5638_s22  ;;  %1409 = vrot.lane.b32.xlu2 %v6317_v34, %s5638_s22 }
 0x351   :  { %1605 = vrot.lane.b32.xlu1 %v6306_v27, %s5639_s23 }
 0x352   :  { %v6365_v52 = vpop.permute.xlu0 %1191  ;;  %v6367_v57 = vpop.permute.xlu2 %1327 }
 0x353   :  { %v6369_v1 = vpop.permute.xlu1 %1223  ;;  %v1207_v32 = vmul.f32 %v6444_v14, %v6365_v52  ;;  %v6476_v52 = vld [vmem:[%s7897_s2 + $0x2] ss:$0 sm:$0xff] }
 0x358   :  { %1749 = vrot.lane.b32.xlu0 %v6306_v27, %s5642_s27  ;;  %1533 = vrot.lane.b32.xlu2 %v6306_v27, %s5641_s25 }
 0x359   :  { %1521 = vrot.lane.b32.xlu1 %v6321_v45, %s5641_s25 }
 0x35a   :  { %v6377_v58 = vpop.permute.xlu0 %1339  ;;  %v6379_v59 = vpop.permute.xlu2 %1399 }
 0x35b   :  { %v6381_v60 = vpop.permute.xlu1 %1331 }
 0x360   :  { %1677 = vrot.lane.b32.xlu0 %v6306_v27, %s7918_s4  ;;  %1525 = vrot.lane.b32.xlu2 %v6319_v3, %s5641_s25 }
 0x361   :  { %1741 = vrot.lane.b32.xlu1 %v6319_v3, %s5642_s27 }
 0x362   :  { %v6389_v49 = vpop.permute.xlu0 %1411  ;;  %v6391_v25 = vpop.permute.xlu2 %1747 }
 0x363   :  { %v6393_v26 = vpop.permute.xlu1 %1407 }
 0x368   :  { %1601 = vrot.lane.b32.xlu0 %v6317_v34, %s5639_s23  ;;  %1745 = vrot.lane.b32.xlu2 %v6317_v34, %s5642_s27 }
 0x369   :  { %1737 = vrot.lane.b32.xlu1 %v6321_v45, %s5642_s27 }
 0x36a   :  { %v6401_v54 = vpop.permute.xlu0 %1403  ;;  %v6403_v33 = vpop.permute.xlu2 %1675 }
 0x36b   :  { %v6405_v5 = vpop.permute.xlu1 %1531 }
 0x370   :  { %1597 = vrot.lane.b32.xlu0 %v6319_v3, %s5639_s23  ;;  %1673 = vrot.lane.b32.xlu2 %v6317_v34, %s7918_s4 }
 0x371   :  { %1663 = vrot.lane.b32.xlu1 %v6251_v31, %s7918_s4 }
 0x372   :  { %v6413_v6 = vpop.permute.xlu0 %1527  ;;  %v6415_v7 = vpop.permute.xlu2 %1599 }
 0x373   :  { %v6417_v8 = vpop.permute.xlu1 %1523 }
 0x378   :  { %1593 = vrot.lane.b32.xlu0 %v6321_v45, %s5639_s23  ;;  %1669 = vrot.lane.b32.xlu2 %v6319_v3, %s7918_s4 }
 0x37a   :  { %v6423_v56 = vpop.permute.xlu0 %1603  ;;  %v6425_v53 = vpop.permute.xlu2 %1595 }
 0x37b   :  { %v6427_v28 = vpop.permute.xlu1 %1743 }
 0x380   :  { %1665 = vrot.lane.b32.xlu2 %v6321_v45, %s7918_s4 }
 0x382   :  { %v6431_v11 = vpop.permute.xlu0 %1519  ;;  %v1202_v36 = vpop.permute.xlu2 %1201 }
 0x383   :  { %v6433_v12 = vpop.permute.xlu1 %1671  ;;  %v1212_v37 = vmul.f32 %v6444_v14, %v1202_v36  ;;  %v1474_v36 = vpack.c.bf16 %v6306_v27, %v6231_v29  ;;  %v1349_v29 = vmul.f32 %v6476_v52, %v6377_v58 }
 0x385   :  { %v1217_v39 = vpack.c.bf16 %v1212_v37, %v1211_v42 }
 0x38a   :  { %v6435_v50 = vpop.permute.xlu0 %1739  ;;  %v1234_v55 = vpop.permute.xlu2 %1233 }
 0x38b   :  { %v6437_v18 = vpop.permute.xlu1 %1667  ;;  %v1244_v38 = vmul.f32 %v6451_v63, %v1234_v55  ;;  %v1241_v55 = vmul.f32 %v6451_v63, %v6349_v16 }
 0x38d   :  { %v1249_v2 = vpack.c.bf16 %v1244_v38, %v1243_v15  ;;  %v1472_v38 = vpack.c.bf16 %v6319_v3, %v6249_v20  ;;  %v1471_v3 = vpack.c.bf16 %v6321_v45, %v6251_v31 }
 0x392   :  { %v1206_v0 = vpop.permute.xlu0 %1205  ;;  %v6439_v43 = vpop.permute.xlu2 %1591 }
 0x393   :  { %v1214_v61 = vmul.f32 %v6444_v14, %v1206_v0  ;;  %v1238_v4 = vpop.permute.xlu1 %1237 }
 0x394   :  { %v1246_v62 = vmul.f32 %v6451_v63, %v1238_v4 }
 0x395   :  { %v1218_v35 = vpack.c.bf16 %v1214_v61, %v1213_v19 }
 0x396   :  { %v1250_v9 = vpack.c.bf16 %v1246_v62, %v1245_v24  ;;  %v1473_v24 = vpack.c.bf16 %v6317_v34, %v6239_v13  ;;  %v1239_v62 = vmul.f32 %v6451_v63, %v6369_v1  ;;  %v6497_v13 = vld [vmem:[%s7897_s2 + $0x3] ss:$0 sm:$0xff] }
 0x397   :  { %1312 = vmatpush.bf16.msra.mxu2 %v1218_v35  ;;  %v1421_v34 = vmul.f32 %v6497_v13, %v6389_v49  ;;  %v5445_v49 = vld [vmem:[%s7901_s6 + $0x8] sm:$0xff]  ;;  %v1417_v31 = vmul.f32 %v6497_v13, %v6401_v54 }
 0x398   :  { %1277 = vmatpush.bf16.msra.mxu1 %v1250_v9  ;;  %v5446_v9 = vld [vmem:[%s7901_s6 + $0x10] sm:$0xff] }
 0x39a   :  { %v1198_v23 = vpop.permute.xlu0 %1197  ;;  %v1226_v40 = vpop.permute.xlu2 %1225 }
 0x39b   :  { %v1210_v48 = vmul.f32 %v6444_v14, %v1198_v23  ;;  %v1194_v10 = vpop.permute.xlu1 %1193  ;;  %1313 = vmatpush.bf16.msra.mxu2 %v1217_v39  ;;  %v1240_v61 = vmul.f32 %v6451_v63, %v1226_v40  ;;  %v1419_v39 = vmul.f32 %v6497_v13, %v6393_v26 }
 0x39c   :  { %1278 = vmatpush.bf16.msra.mxu1 %v1249_v2  ;;  %v1208_v17 = vmul.f32 %v6444_v14, %v1194_v10 }
 0x39d   :  { %v1216_v21 = vpack.c.bf16 %v1210_v48, %v1209_v41  ;;  %v1247_v37 = vpack.c.bf16 %v1240_v61, %v1239_v62  ;;  %v1347_v41 = vmul.f32 %v6476_v52, %v6357_v22  ;;  %v5448_v61 = vld [vmem:[%s7901_s6 + $0x20] sm:$0xff] }
 0x39e   :  { %v1215_v46 = vpack.c.bf16 %v1208_v17, %v1207_v32  ;;  %v1345_v32 = vmul.f32 %v6476_v52, %v6381_v60  ;;  %v5452_v62 = vld [vmem:[%s7901_s6 + $0x40] sm:$0xff] }
 0x39f   :  { %1314 = vmatpush.bf16.msra.mxu2 %v1216_v21 }
 0x3a2   :  { %v1230_v47 = vpop.permute.xlu0 %1229  ;;  %v1334_v51 = vpop.permute.xlu2 %1333 }
 0x3a3   :  { %v1242_v0 = vmul.f32 %v6451_v63, %v1230_v47  ;;  %v1342_v19 = vpop.permute.xlu1 %1341  ;;  %1315 = vmatpush.bf16.msra.mxu2 %v1215_v46  ;;  %v1346_v26 = vmul.f32 %v6476_v52, %v1334_v51  ;;  %v6524_v46 = vld [vmem:[%s7897_s2 + $0x5] ss:$0 sm:$0xff]  ;;  %v5447_v51 = vld [vmem:[%s7901_s6 + $0x18] sm:$0xff] }
 0x3a4   :  { %v1350_v27 = vmul.f32 %v6476_v52, %v1342_v19 }
 0x3a5   :  { %v1248_v4 = vpack.c.bf16 %v1242_v0, %v1241_v55  ;;  %v1352_v22 = vpack.c.bf16 %v1346_v26, %v1345_v32  ;;  %v1541_v0 = vmul.f32 %v6524_v46, %v6405_v5  ;;  %v5453_v26 = vld [vmem:[%s7901_s6 + $0x48] sm:$0xff] }
 0x3a6   :  { %v1354_v16 = vpack.c.bf16 %v1350_v27, %v1349_v29  ;;  %4759 = vmatmul.msk.bf16.vlgmr.msra.gmra.mxu2 %vm1266_vm8, %v5444_v44  ;;  %v1343_v44 = vmul.f32 %v6476_v52, %v6367_v57  ;;  %v1539_v57 = vmul.f32 %v6524_v46, %v6413_v6  ;;  %v1537_v6 = vmul.f32 %v6524_v46, %v6417_v8 }
 0x3a7   :  { %1500 = vmatpush.bf16.msrb.mxu2 %v1474_v36  ;;  %1279 = vmatpush.bf16.msra.mxu1 %v1248_v4 }
 0x3a8   :  { %1380 = vmatpush.bf16.msrb.mxu3 %v1354_v16 }
 0x3aa   :  { %v6487_v58 = vpop.permute.xlu0 %1735  ;;  %v1410_v35 = vpop.permute.xlu2 %1409 }
 0x3ab   :  { %1501 = vmatpush.bf16.msrb.mxu2 %v1473_v24  ;;  %v1414_v42 = vpop.permute.xlu1 %1413  ;;  %1280 = vmatpush.bf16.msra.mxu1 %v1247_v37  ;;  %v1420_v20 = vmul.f32 %v6497_v13, %v1410_v35  ;;  %v1415_v37 = vmul.f32 %v6497_v13, %v6379_v59 }
 0x3ac   :  { %v1422_v1 = vmul.f32 %v6497_v13, %v1414_v42 }
 0x3ad   :  { %v1425_v2 = vpack.c.bf16 %v1420_v20, %v1419_v39  ;;  %v5450_v20 = vld [vmem:[%s7901_s6 + $0x30] sm:$0xff] }
 0x3ae   :  { %v1426_v15 = vpack.c.bf16 %v1422_v1, %v1421_v34  ;;  %4749 = vmatmul.msk.bf16.vlgmr.msra.gmra.mxu1 %vm1266_vm8, %v5446_v9  ;;  %v6555_v9 = vld [vmem:[%s7897_s2 + $0x6] ss:$0 sm:$0xff] }
 0x3af   :  { %1502 = vmatpush.bf16.msrb.mxu2 %v1472_v38  ;;  %v1613_v42 = vmul.f32 %v6555_v9, %v6423_v56  ;;  %v6567_v56 = vld [vmem:[%s7897_s2 + $0x8] ss:$0 sm:$0xff] }
 0x3b0   :  { %1452 = vmatpush.bf16.msrb.mxu1 %v1426_v15 }
 0x3b2   :  { %v1338_v23 = vpop.permute.xlu0 %1337  ;;  %v1534_v40 = vpop.permute.xlu2 %1533 }
 0x3b3   :  { %1503 = vmatpush.bf16.msrb.mxu2 %v1471_v3  ;;  %v1348_v48 = vmul.f32 %v6476_v52, %v1338_v23  ;;  %v1406_v10 = vpop.permute.xlu1 %1405  ;;  %v1542_v54 = vmul.f32 %v6524_v46, %v1534_v40  ;;  %v1757_v3 = vmul.f32 %v6567_v56, %v6391_v25  ;;  %v1535_v23 = vmul.f32 %v6524_v46, %v6431_v11 }
 0x3b4   :  { %v1418_v45 = vmul.f32 %v6497_v13, %v1406_v10  ;;  %1453 = vmatpush.bf16.msrb.mxu1 %v1425_v2  ;;  %v1755_v25 = vmul.f32 %v6567_v56, %v6427_v28 }
 0x3b5   :  { %v1353_v21 = vpack.c.bf16 %v1348_v48, %v1347_v41  ;;  %v1546_v29 = vpack.c.bf16 %v1542_v54, %v1541_v0 }
 0x3b6   :  { %v1424_v17 = vpack.c.bf16 %v1418_v45, %v1417_v31  ;;  %4760 = vmatmul.msk.bf16.gmra.mxu2 %vm1266_vm8, %v5445_v49  ;;  %v5449_v31 = vld [vmem:[%s7901_s6 + $0x28] sm:$0xff] }
 0x3b7   :  { %1381 = vmatpush.bf16.msrb.mxu3 %v1353_v21  ;;  %v6589_v21 = vld [vmem:[%s7897_s2 + $0x7] ss:$0 sm:$0xff] }
 0x3b8   :  { %1454 = vmatpush.bf16.msrb.mxu1 %v1424_v17  ;;  %v1685_v17 = vmul.f32 %v6589_v21, %v6403_v33 }
 0x3ba   :  { %v1330_v47 = vpop.permute.xlu0 %1329  ;;  %v1526_v36 = vpop.permute.xlu2 %1525 }
 0x3bb   :  { %v1344_v60 = vmul.f32 %v6476_v52, %v1330_v47  ;;  %v1530_v55 = vpop.permute.xlu1 %1529  ;;  %1382 = vmatpush.bf16.msrb.mxu3 %v1352_v22  ;;  %v1538_v16 = vmul.f32 %v6524_v46, %v1526_v36  ;;  %v1753_v22 = vmul.f32 %v6567_v56, %v6435_v50  ;;  %v5451_v50 = vld [vmem:[%s7901_s6 + $0x38] sm:$0xff] }
 0x3bc   :  { %v1540_v27 = vmul.f32 %v6524_v46, %v1530_v55 }
 0x3bd   :  { %v1351_v19 = vpack.c.bf16 %v1344_v60, %v1343_v44  ;;  %v1544_v15 = vpack.c.bf16 %v1538_v16, %v1537_v6  ;;  %v1683_v60 = vmul.f32 %v6589_v21, %v6433_v12  ;;  %v1751_v12 = vmul.f32 %v6567_v56, %v6487_v58  ;;  %v5460_v58 = vld [vmem:[%s7901_s6 + $0x80] sm:$0xff] }
 0x3be   :  { %4750 = vmatmul.msk.bf16.gmra.mxu1 %vm1266_vm8, %v5447_v51  ;;  %v1545_v4 = vpack.c.bf16 %v1540_v27, %v1539_v57 }
 0x3bf   :  { %1383 = vmatpush.bf16.msrb.mxu3 %v1351_v19  ;;  %v1611_v19 = vmul.f32 %v6555_v9, %v6415_v7  ;;  %v5454_v7 = vld [vmem:[%s7901_s6 + $0x50] sm:$0xff] }
 0x3c2   :  { %v1402_v24 = vpop.permute.xlu0 %1401  ;;  %4773 = vmatmul.msk.bf16.vlgmr.msrb.gmra.mxu3 %vm1266_vm8, %v5448_v61  ;;  %v1746_v5 = vpop.permute.xlu2 %1745 }
 0x3c3   :  { %1572 = vmatpush.bf16.msra.mxu3 %v1546_v29  ;;  %v1416_v35 = vmul.f32 %v6497_v13, %v1402_v24  ;;  %v1606_v38 = vpop.permute.xlu1 %1605  ;;  %v1756_v41 = vmul.f32 %v6567_v56, %v1746_v5  ;;  %v1681_v29 = vmul.f32 %v6589_v21, %v6437_v18 }
 0x3c4   :  { %v1614_v34 = vmul.f32 %v6555_v9, %v1606_v38 }
 0x3c5   :  { %v1423_v1 = vpack.c.bf16 %v1416_v35, %v1415_v37  ;;  %v1761_v45 = vpack.c.bf16 %v1756_v41, %v1755_v25 }
 0x3c6   :  { %v1618_v59 = vpack.c.bf16 %v1614_v34, %v1613_v42  ;;  %4801 = vmatmul.msk.bf16.vlgmr.msrb.gmra.mxu2 %vm1266_vm8, %v5452_v62  ;;  %v1609_v62 = vmul.f32 %v6555_v9, %v6425_v53  ;;  %v1607_v53 = vmul.f32 %v6555_v9, %v6439_v43  ;;  %v5461_v43 = vld [vmem:[%s7901_s6 + $0x88] sm:$0xff] }
 0x3c7   :  { %1573 = vmatpush.bf16.msra.mxu3 %v1545_v4  ;;  %1455 = vmatpush.bf16.msrb.mxu1 %v1423_v1 }
 0x3c8   :  { %1644 = vmatpush.bf16.msra.mxu0 %v1618_v59 }
 0x3ca   :  { %v1750_v8 = vpop.permute.xlu0 %1749  ;;  %v1674_v49 = vpop.permute.xlu2 %1673 }
 0x3cb   :  { %1574 = vmatpush.bf16.msra.mxu3 %v1544_v15  ;;  %v1758_v39 = vmul.f32 %v6567_v56, %v1750_v8  ;;  %v1522_v2 = vpop.permute.xlu1 %1521  ;;  %v1684_v47 = vmul.f32 %v6589_v21, %v1674_v49  ;;  %v5458_v15 = vld [vmem:[%s7901_s6 + $0x70] sm:$0xff] }
 0x3cc   :  { %v1536_v40 = vmul.f32 %v6524_v46, %v1522_v2  ;;  %v5457_v2 = vld [vmem:[%s7901_s6 + $0x68] sm:$0xff] }
 0x3cd   :  { %v1762_v48 = vpack.c.bf16 %v1758_v39, %v1757_v3  ;;  %v1689_v33 = vpack.c.bf16 %v1684_v47, %v1683_v60  ;;  %v5456_v3 = vld [vmem:[%s7901_s6 + $0x60] sm:$0xff]  ;;  %v5459_v39 = vld [vmem:[%s7901_s6 + $0x78] sm:$0xff] }
 0x3ce   :  { %v1543_v10 = vpack.c.bf16 %v1536_v40, %v1535_v23  ;;  %4787 = vmatmul.msk.bf16.vlgmr.msrb.gmra.mxu1 %vm1266_vm8, %v5450_v20  ;;  %v5455_v20 = vld [vmem:[%s7901_s6 + $0x58] sm:$0xff] }
 0x3cf   :  { %1788 = vmatpush.bf16.msra.mxu2 %v1762_v48 }
 0x3d0   :  { %1575 = vmatpush.bf16.msra.mxu3 %v1543_v10 }
 0x3d2   :  { %v1678_v11 = vpop.permute.xlu0 %1677  ;;  %4774 = vmatmul.msk.bf16.gmra.mxu3 %vm1266_vm8, %v5449_v31  ;;  %v1670_v44 = vpop.permute.xlu2 %1669 }
 0x3d3   :  { %v1686_v28 = vmul.f32 %v6589_v21, %v1678_v11  ;;  %v1742_v32 = vpop.permute.xlu1 %1741  ;;  %1789 = vmatpush.bf16.msra.mxu2 %v1761_v45  ;;  %v1682_v55 = vmul.f32 %v6589_v21, %v1670_v44 }
 0x3d4   :  { %v1754_v54 = vmul.f32 %v6567_v56, %v1742_v32 }
 0x3d5   :  { %v1690_v36 = vpack.c.bf16 %v1686_v28, %v1685_v17  ;;  %v1688_v4 = vpack.c.bf16 %v1682_v55, %v1681_v29 }
 0x3d6   :  { %v1760_v51 = vpack.c.bf16 %v1754_v54, %v1753_v22  ;;  %4802 = vmatmul.msk.bf16.gmra.mxu2 %vm1266_vm8, %v5453_v26 }
 0x3d7   :  { %1716 = vmatpush.bf16.msra.mxu1 %v1690_v36 }
 0x3d8   :  { %1790 = vmatpush.bf16.msra.mxu2 %v1760_v51 }
 0x3da   :  { %v1602_v0 = vpop.permute.xlu0 %1601  ;;  %v1666_v18 = vpop.permute.xlu2 %1665 }
 0x3db   :  { %v1612_v27 = vmul.f32 %v6555_v9, %v1602_v0  ;;  %v1738_v61 = vpop.permute.xlu1 %1737  ;;  %1717 = vmatpush.bf16.msra.mxu1 %v1689_v33  ;;  %v1680_v38 = vmul.f32 %v6589_v21, %v1666_v18 }
 0x3dc   :  { %v1752_v57 = vmul.f32 %v6567_v56, %v1738_v61 }
 0x3dd   :  { %v1617_v16 = vpack.c.bf16 %v1612_v27, %v1611_v19 }
 0x3de   :  { %v1759_v24 = vpack.c.bf16 %v1752_v57, %v1751_v12  ;;  %4788 = vmatmul.msk.bf16.gmra.mxu1 %vm1266_vm8, %v5451_v50 }
 0x3df   :  { %1645 = vmatpush.bf16.msra.mxu0 %v1617_v16  ;;  %1718 = vmatpush.bf16.msra.mxu1 %v1688_v4 }
 0x3e0   :  { %1791 = vmatpush.bf16.msra.mxu2 %v1759_v24 }
 0x3e2   :  { %v1598_v5 = vpop.permute.xlu0 %1597  ;;  %4815 = vmatmul.msk.bf16.vlgmr.msra.gmra.mxu3 %vm1266_vm8, %v5454_v7 }
 0x3e3   :  { %v1610_v37 = vmul.f32 %v6555_v9, %v1598_v5  ;;  %v1664_v35 = vpop.permute.xlu1 %1663 }
 0x3e4   :  { %v1679_v6 = vmul.f32 %v6589_v21, %v1664_v35 }
 0x3e5   :  { %v1616_v42 = vpack.c.bf16 %v1610_v37, %v1609_v62 }
 0x3e6   :  { %v1687_v34 = vpack.c.bf16 %v1680_v38, %v1679_v6  ;;  %4857 = vmatmul.msk.bf16.vlgmr.msra.gmra.mxu2 %vm1266_vm8, %v5460_v58 }
 0x3e7   :  { %1646 = vmatpush.bf16.msra.mxu0 %v1616_v42 }
 0x3e8   :  { %1719 = vmatpush.bf16.msra.mxu1 %v1687_v34 }
 0x3ea   :  { %v1594_v1 = vpop.permute.xlu0 %1593 }
 0x3eb   :  { %v1608_v59 = vmul.f32 %v6555_v9, %v1594_v1 }
 0x3ed   :  { %v1615_v8 = vpack.c.bf16 %v1608_v59, %v1607_v53 }
 0x3ee   :  { %4843 = vmatmul.msk.bf16.vlgmr.msra.gmra.mxu1 %vm1266_vm8, %v5458_v15 }
 0x3ef   :  { %1647 = vmatpush.bf16.msra.mxu0 %v1615_v8 }
 0x3f2   :  { %4816 = vmatmul.msk.bf16.gmra.mxu3 %vm1266_vm8, %v5455_v20  ;;  %4829 = vmatmul.msk.bf16.vlgmr.msra.gmra.mxu0 %vm1266_vm8, %v5456_v3 }
 0x3f6   :  { %4858 = vmatmul.msk.bf16.gmra.mxu2 %vm1266_vm8, %v5461_v43 }
 0x3fe   :  { %4844 = vmatmul.msk.bf16.gmra.mxu1 %vm1266_vm8, %v5459_v39 }
 0x402   :  { %4830 = vmatmul.msk.bf16.gmra.mxu0 %vm1266_vm8, %v5457_v2 }
 0x429   :  { %v1317_v23 = vpop.f32.mrf.mxu2 }
 0x42b   :  { %v1282_v40 = vpop.f32.mrf.mxu1 }
 0x42c   :  { %v1318_v60 = vadd.f32 %v1317_v23, %v1282_v40 }
 0x431   :  { %v1319_v49 = vpop.f32.mrf.mxu2 }
 0x433   :  { %v1284_v41 = vpop.f32.mrf.mxu1 }
 0x434   :  { %v1320_v35 = vadd.f32 %v1319_v49, %v1284_v41 }
 0x439   :  { %v1322_v48 = vpop.f32.mrf.mxu2 }
 0x43b   :  { %v1287_v10 = vpop.f32.mrf.mxu1 }
 0x43c   :  { %v1323_v16 = vadd.f32 %v1322_v48, %v1287_v10 }
 0x441   :  { %v1324_v31 = vpop.f32.mrf.mxu2 }
 0x443   :  { %v1289_v25 = vpop.f32.mrf.mxu1 }
 0x444   :  { %v1325_v38 = vadd.f32 %v1324_v31, %v1289_v25 }
 0x445   :  { %v1385_v45 = vpop.f32.mrf.mxu3 }
 0x446   :  { %v1395_v55 = vadd.f32 %v1385_v45, %v1318_v60 }
 0x449   :  { %v1505_v11 = vpop.f32.mrf.mxu2 }
 0x44b   :  { %v1457_v26 = vpop.f32.mrf.mxu1 }
 0x44c   :  { %v1467_v0 = vadd.f32 %v1457_v26, %v1395_v55 }
 0x44d   :  { %v1387_v17 = vpop.f32.mrf.mxu3 }
 0x44e   :  { %v1515_v19 = vadd.f32 %v1505_v11, %v1467_v0  ;;  %v1396_v6 = vadd.f32 %v1387_v17, %v1320_v35 }
 0x451   :  { %v1507_v28 = vpop.f32.mrf.mxu2 }
 0x453   :  { %v1459_v32 = vpop.f32.mrf.mxu1 }
 0x454   :  { %v1468_v34 = vadd.f32 %v1459_v32, %v1396_v6 }
 0x455   :  { %v1390_v22 = vpop.f32.mrf.mxu3 }
 0x456   :  { %v1397_v18 = vadd.f32 %v1390_v22, %v1323_v16  ;;  %v1516_v43 = vadd.f32 %v1507_v28, %v1468_v34 }
 0x459   :  { %v1510_v54 = vpop.f32.mrf.mxu2 }
 0x45b   :  { %v1462_v47 = vpop.f32.mrf.mxu1 }
 0x45c   :  { %v1469_v62 = vadd.f32 %v1462_v47, %v1397_v18 }
 0x45d   :  { %v1392_v36 = vpop.f32.mrf.mxu3 }
 0x45e   :  { %v1517_v42 = vadd.f32 %v1510_v54, %v1469_v62  ;;  %v1398_v1 = vadd.f32 %v1392_v36, %v1325_v38  ;;  %v1933_v36 = vld [vmem:[%s7902_s8 + $0x18] sm:$0xff] }
 0x461   :  { %v1512_v44 = vpop.f32.mrf.mxu2 }
 0x463   :  { %v1464_v51 = vpop.f32.mrf.mxu1 }
 0x464   :  { %v1470_v8 = vadd.f32 %v1464_v51, %v1398_v1  ;;  %v1932_v51 = vld [vmem:[%s7902_s8 + $0x10] sm:$0xff] }
 0x465   :  { %v1577_v33 = vpop.f32.mrf.mxu3 }
 0x466   :  { %v1587_v27 = vadd.f32 %v1577_v33, %v1515_v19  ;;  %v1518_v23 = vadd.f32 %v1512_v44, %v1470_v8  ;;  %v5645_v44 = vmov 128.0  }
 0x467   :  { %5577 = vrcp.f32 %v5645_v44 }
 0x469   :  { %v1793_v29 = vpop.f32.mrf.mxu2 }
 0x46b   :  { %v1721_v50 = vpop.f32.mrf.mxu1 }
 0x46d   :  { %v1579_v61 = vpop.f32.mrf.mxu3  ;;  %v5578_v60 = vpop.eup %5577 }
 0x46e   :  { %v1588_v40 = vadd.f32 %v1579_v61, %v1516_v43  ;;  %v1828_v33 = vmul.f32 128.0, %v5578_v60  ;;  %vm1832_vm9 = vweird.f32 %v5578_v60 }
 0x46f   :  { %v1649_v12 = vpop.f32.mrf.mxu0 }
 0x470   :  { %v1659_v57 = vadd.f32 %v1649_v12, %v1587_v27  ;;  %v1829_v55 = vsub.f32 1.0, %v1828_v33 }
 0x471   :  { %v1795_v5 = vpop.f32.mrf.mxu2 }
 0x472   :  { %v1731_v4 = vadd.f32 %v1721_v50, %v1659_v57  ;;  %v1830_v0 = vmul.f32 %v5578_v60, %v1829_v55 }
 0x473   :  { %v1723_v7 = vpop.f32.mrf.mxu1 }
 0x474   :  { %v6654_v24 = vadd.f32 %v1793_v29, %v1731_v4  ;;  %v1831_v50 = vadd.f32 %v5578_v60, %v1830_v0 }
 0x475   :  { %v1582_v37 = vpop.f32.mrf.mxu3 }
 0x476   :  { %1807 = vadd.xlane.f32.xlu1 %v6654_v24  ;;  %v1589_v15 = vadd.f32 %v1582_v37, %v1517_v42  ;;  %v1815_v47 = vmul.f32 %v6654_v24, %v6654_v24  ;;  %v6680_v27 = vsel %vm1832_vm9, %v5578_v60, %v1831_v50 }
 0x477   :  { %v1651_v58 = vpop.f32.mrf.mxu0 }
 0x478   :  { %v1660_v10 = vadd.f32 %v1651_v58, %v1588_v40 }
 0x479   :  { %v1798_v3 = vpop.f32.mrf.mxu2 }
 0x47a   :  { %v1732_v11 = vadd.f32 %v1723_v7, %v1660_v10 }
 0x47b   :  { %v1726_v53 = vpop.f32.mrf.mxu1 }
 0x47c   :  { %v6665_v32 = vadd.f32 %v1795_v5, %v1732_v11 }
 0x47d   :  { %v1584_v2 = vpop.f32.mrf.mxu3 }
 0x47e   :  { %v1590_v49 = vadd.f32 %v1584_v2, %v1518_v23  ;;  %v1816_v54 = vmul.f32 %v6665_v32, %v6665_v32 }
 0x47f   :  { %v1654_v59 = vpop.f32.mrf.mxu0 }
 0x480   :  { %v1661_v20 = vadd.f32 %v1654_v59, %v1589_v15 }
 0x481   :  { %v1800_v17 = vpop.f32.mrf.mxu2 }
 0x482   :  { %v1733_v39 = vadd.f32 %v1726_v53, %v1661_v20 }
 0x483   :  { %v1728_v45 = vpop.f32.mrf.mxu1 }
 0x484   :  { %v6657_v48 = vadd.f32 %v1798_v3, %v1733_v39 }
 0x486   :  { %1811 = vadd.xlane.f32.xlu0 %v6657_v48  ;;  %v1817_v41 = vmul.f32 %v6657_v48, %v6657_v48 }
 0x487   :  { %v1656_v31 = vpop.f32.mrf.mxu0 }
 0x488   :  { %v1662_v25 = vadd.f32 %v1656_v31, %v1590_v49  ;;  %1823 = vadd.xlane.f32.xlu2 %v1817_v41 }
 0x48a   :  { %v1734_v26 = vadd.f32 %v1728_v45, %v1662_v25 }
 0x48c   :  { %v6662_v28 = vadd.f32 %v1800_v17, %v1734_v26 }
 0x48e   :  { %1813 = vadd.xlane.f32.xlu1 %v6662_v28  ;;  %v1818_v22 = vmul.f32 %v6662_v28, %v6662_v28 }
 0x490   :  { %1809 = vadd.xlane.f32.xlu2 %v6665_v32  ;;  %1825 = vadd.xlane.f32.xlu0 %v1818_v22 }
 0x496   :  { %1821 = vadd.xlane.f32.xlu1 %v1816_v54 }
 0x498   :  { %1819 = vadd.xlane.f32.xlu0 %v1815_v47  ;;  %v1853_v47 = vld [vmem:[%s7903_s7 + $0x18] sm:$0xff] }
 0x4ac   :  { %1951 = vperm.xlu0 %5562, %v1933_v36  }
 0x4af   :  { %1946 = vperm.xlu1 %5561, %v1932_v51  }
 0x4e9   :  { %v1808_v19 = vpop.xlane.xlu1 %1807 }
 0x4ea   :  { %v6698_v6 = vmul.f32 %v6680_v27, %v1808_v19 }
 0x4ec   :  { %v1842_v8 = vmul.f32 %v6698_v6, %v6698_v6 }
 0x4f9   :  { %v1812_v29 = vpop.xlane.xlu0 %1811 }
 0x4fa   :  { %v6683_v12 = vmul.f32 %v6680_v27, %v1812_v29  ;;  %v1851_v29 = vld [vmem:[%s7903_s7 + $0x8] sm:$0xff] }
 0x4fb   :  { %v1824_v61 = vpop.xlane.xlu2 %1823 }
 0x4fc   :  { %v1844_v57 = vmul.f32 %v6683_v12, %v6683_v12  ;;  %v1840_v4 = vmul.f32 %v6680_v27, %v1824_v61 }
 0x4fe   :  { %v1848_v58 = vsub.f32 %v1840_v4, %v1844_v57 }
 0x500   :  { %v6700_v42 = vadd.f32 1e-05, %v1848_v58  ;;  %v1930_v58 = vld [vmem:[%s7902_s8] sm:$0xff] }
 0x501   :  { %v1814_v16 = vpop.xlane.xlu1 %1813 }
 0x502   :  { %v6689_v7 = vmul.f32 %v6680_v27, %v1814_v16  ;;  %v1850_v16 = vld [vmem:[%s7903_s7] sm:$0xff]  ;;  %vm1884_vm4 = vweird.f32 %v6700_v42 }
 0x503   :  { %v1810_v18 = vpop.xlane.xlu2 %1809  ;;  %v1826_v5 = vpop.xlane.xlu0 %1825 }
 0x504   :  { %v1845_v62 = vmul.f32 %v6689_v7, %v6689_v7  ;;  %v1841_v37 = vmul.f32 %v6680_v27, %v1826_v5  ;;  %v6695_v35 = vmul.f32 %v6680_v27, %v1810_v18 }
 0x506   :  { %v1849_v38 = vsub.f32 %v1841_v37, %v1845_v62  ;;  %v1843_v15 = vmul.f32 %v6695_v35, %v6695_v35 }
 0x508   :  { %v1857_v34 = vadd.f32 1e-05, %v1849_v38 }
 0x509   :  { %v1822_v1 = vpop.xlane.xlu1 %1821 }
 0x50a   :  { %5579 = vrsqrt.f32 %v1857_v34  ;;  %v1839_v53 = vmul.f32 %v6680_v27, %v1822_v1  ;;  %vm1894_vm11 = vweird.f32 %v1857_v34 }
 0x50b   :  { %v1820_v59 = vpop.xlane.xlu0 %1819  ;;  %5581 = vrsqrt.f32 %v6700_v42 }
 0x50c   :  { %v1847_v20 = vsub.f32 %v1839_v53, %v1843_v15  ;;  %v1838_v3 = vmul.f32 %v6680_v27, %v1820_v59  ;;  %v1931_v53 = vld [vmem:[%s7902_s8 + $0x8] sm:$0xff] }
 0x50e   :  { %v1855_v43 = vadd.f32 1e-05, %v1847_v20  ;;  %v1846_v39 = vsub.f32 %v1838_v3, %v1842_v8  ;;  %v1904_v8 = vsub.f32 %v6657_v48, %v6683_v12  ;;  %v1903_v12 = vsub.f32 %v6665_v32, %v6695_v35 }
 0x510   :  { %v5580_v2 = vpop.eup %5579  ;;  %5583 = vrsqrt.f32 %v1855_v43  ;;  %v1854_v23 = vadd.f32 1e-05, %v1846_v39  ;;  %vm1874_vm14 = vweird.f32 %v1855_v43 }
 0x511   :  { %v1889_v40 = vmul.f32 %v5580_v2, %v1857_v34  ;;  %v5582_v10 = vpop.eup %5581  ;;  %vm1895_vm10 = vweird.f32 %v5580_v2  ;;  %v1852_v34 = vld [vmem:[%s7903_s7 + $0x10] sm:$0xff] }
 0x512   :  { %5585 = vrsqrt.f32 %v1854_v23  ;;  %v1879_v41 = vmul.f32 %v5582_v10, %v6700_v42  ;;  %vm1896_vm12 = vmor %vm1894_vm11, %vm1895_vm10  ;;  %vm1864_vm1 = vweird.f32 %v1854_v23  ;;  %vm1885_vm3 = vweird.f32 %v5582_v10 }
 0x513   :  { %v1890_v49 = vmul.f32 %v5580_v2, %v1889_v40  ;;  %vm1886_vm5 = vmor %vm1884_vm4, %vm1885_vm3  ;;  %vm2703_vm4 = vcmask 1043456  }
 0x514   :  { %v1880_v17 = vmul.f32 %v5582_v10, %v1879_v41  ;;  %v1902_v41 = vsub.f32 %v6654_v24, %v6698_v6 }
 0x515   :  { %v1891_v31 = vmul.f32 0.5, %v1890_v49 }
 0x516   :  { %v5584_v25 = vpop.eup %5583  ;;  %v1881_v55 = vmul.f32 0.5, %v1880_v17 }
 0x517   :  { %v1892_v45 = vsub.f32 1.5, %v1891_v31  ;;  %v1869_v11 = vmul.f32 %v5584_v25, %v1855_v43  ;;  %vm1875_vm13 = vweird.f32 %v5584_v25 }
 0x518   :  { %v5586_v26 = vpop.eup %5585  ;;  %vm1876_vm0 = vmor %vm1874_vm14, %vm1875_vm13  ;;  %v1882_v57 = vsub.f32 1.5, %v1881_v55 }
 0x519   :  { %v1870_v22 = vmul.f32 %v5584_v25, %v1869_v11  ;;  %v1859_v54 = vmul.f32 %v5586_v26, %v1854_v23  ;;  %v1893_v36 = vmul.f32 %v5580_v2, %v1892_v45  ;;  %vm1865_vm15 = vweird.f32 %v5586_v26 }
 0x51a   :  { %vm1866_vm2 = vmor %vm1864_vm1, %vm1865_vm15  ;;  %v1883_v38 = vmul.f32 %v5582_v10, %v1882_v57  ;;  %v1905_v23 = vsub.f32 %v6662_v28, %v6689_v7 }
 0x51b   :  { %v1871_v51 = vmul.f32 0.5, %v1870_v22  ;;  %v1860_v44 = vmul.f32 %v5586_v26, %v1859_v54  ;;  %v1897_v60 = vsel %vm1896_vm12, %v5580_v2, %v1893_v36 }
 0x51c   :  { %v1901_v33 = vmul.f32 %v1897_v60, %v1853_v47  ;;  %v1887_v1 = vsel %vm1886_vm5, %v5582_v10, %v1883_v38  ;;  %vm2690_vm5 = vcmask 326656  }
 0x51d   :  { %v1872_v0 = vsub.f32 1.5, %v1871_v51  ;;  %v1861_v50 = vmul.f32 0.5, %v1860_v44  ;;  %v1900_v15 = vmul.f32 %v1887_v1, %v1852_v34  ;;  %v5464_v34 = vld [vmem:[%s7904_s9 + $0x10] sm:$0xff] }
 0x51e   :  { %1923 = vperm.xlu0 %5562, %v1901_v33   ;;  %v1952_v20 = vpop.permute.xlu0 %1951 }
 0x51f   :  { %v1862_v19 = vsub.f32 1.5, %v1861_v50  ;;  %v1873_v61 = vmul.f32 %v5584_v25, %v1872_v0 }
 0x521   :  { %v1877_v4 = vsel %vm1876_vm0, %v5584_v25, %v1873_v61  ;;  %v1863_v18 = vmul.f32 %v5586_v26, %v1862_v19  ;;  %v1947_v43 = vpop.permute.xlu1 %1946 }
 0x522   :  { %v1899_v5 = vmul.f32 %v1877_v4, %v1851_v29 }
 0x523   :  { %v1867_v62 = vsel %vm1866_vm2, %v5586_v26, %v1863_v18 }
 0x524   :  { %1913 = vperm.xlu1 %5561, %v1899_v5   ;;  %v1898_v37 = vmul.f32 %v1867_v62, %v1850_v16 }
 0x526   :  { %1936 = vperm.xlu0 %5562, %v1930_v58   ;;  %1908 = vperm.xlu2 %5560, %v1898_v37  }
 0x52e   :  { %1918 = vperm.xlu2 %5560, %v1900_v15  }
 0x536   :  { %1941 = vperm.xlu2 %5560, %v1931_v53  }
 0x580   :  { %v1909_v59 = vpop.permute.xlu2 %1908 }
 0x581   :  { %v1926_v25 = vmul.f32 %v1909_v59, %v1902_v41 }
 0x588   :  { %v1919_v3 = vpop.permute.xlu2 %1918 }
 0x589   :  { %v1928_v42 = vmul.f32 %v1919_v3, %v1904_v8 }
 0x58b   :  { %v1956_v39 = vadd.f32 %v1947_v43, %v1928_v42 }
 0x58d   :  { %v6731_v2 = vmax.f32 %v1956_v39, 0.0 }
 0x58f   :  { %2132 = vrot.lane.b32.xlu0 %v6731_v2, %s5638_s22 }
 0x590   :  { %v1924_v40 = vpop.permute.xlu0 %1923  ;;  %v1942_v11 = vpop.permute.xlu2 %1941 }
 0x591   :  { %v1929_v10 = vmul.f32 %v1924_v40, %v1905_v23  ;;  %v5465_v40 = vld [vmem:[%s7904_s9 + $0x18] sm:$0xff] }
 0x593   :  { %v1957_v49 = vadd.f32 %v1952_v20, %v1929_v10  ;;  %v5469_v10 = vld [vmem:[%s7904_s9 + $0x38] sm:$0xff] }
 0x595   :  { %v6739_v48 = vmax.f32 %v1957_v49, 0.0 }
 0x596   :  { %v1914_v31 = vpop.permute.xlu1 %1913 }
 0x597   :  { %v1927_v45 = vmul.f32 %v1914_v31, %v1903_v12  ;;  %1986 = vrot.lane.b32.xlu0 %v6739_v48, %s5635_s26  ;;  %v2187_v38 = vpack.c.bf16 %v6739_v48, %v6731_v2 }
 0x598   :  { %v1937_v26 = vpop.permute.xlu0 %1936 }
 0x599   :  { %v1955_v28 = vadd.f32 %v1942_v11, %v1927_v45  ;;  %v1954_v7 = vadd.f32 %v1937_v26, %v1926_v25 }
 0x59b   :  { %v6745_v17 = vmax.f32 %v1955_v28, 0.0  ;;  %v6747_v22 = vmax.f32 %v1954_v7, 0.0 }
 0x59d   :  { %1982 = vrot.lane.b32.xlu1 %v6745_v17, %s5635_s26  ;;  %1980 = vrot.lane.b32.xlu2 %v6747_v22, %s5635_s26  ;;  %v2186_v1 = vpack.c.bf16 %v6745_v17, %v6747_v22 }
 0x59f   :  { %2128 = vrot.lane.b32.xlu0 %v6747_v22, %s5638_s22 }
 0x5a5   :  { %1984 = vrot.lane.b32.xlu1 %v6731_v2, %s5635_s26  ;;  %2074 = vrot.lane.b32.xlu2 %v6731_v2, %s5637_s21 }
 0x5a7   :  { %1964 = vrot.lane.b32.xlu0 %v6745_v17, %s5636_s20 }
 0x5ad   :  { %1966 = vrot.lane.b32.xlu1 %v6731_v2, %s5636_s20  ;;  %2130 = vrot.lane.b32.xlu2 %v6745_v17, %s5638_s22 }
 0x5af   :  { %2352 = vrot.lane.b32.xlu0 %v6731_v2, %s7918_s4 }
 0x5b5   :  { %1962 = vrot.lane.b32.xlu1 %v6747_v22, %s5636_s20  ;;  %2070 = vrot.lane.b32.xlu2 %v6747_v22, %s5637_s21 }
 0x5b7   :  { %1968 = vrot.lane.b32.xlu0 %v6739_v48, %s5636_s20 }
 0x5bd   :  { %2072 = vrot.lane.b32.xlu1 %v6745_v17, %s5637_s21  ;;  %2134 = vrot.lane.b32.xlu2 %v6739_v48, %s5638_s22 }
 0x5bf   :  { %2294 = vrot.lane.b32.xlu0 %v6731_v2, %s5639_s23 }
 0x5c5   :  { %2076 = vrot.lane.b32.xlu1 %v6739_v48, %s5637_s21  ;;  %2410 = vrot.lane.b32.xlu2 %v6731_v2, %s5642_s27 }
 0x5c7   :  { %2350 = vrot.lane.b32.xlu0 %v6745_v17, %s7918_s4 }
 0x5cd   :  { %2236 = vrot.lane.b32.xlu1 %v6731_v2, %s5641_s25  ;;  %2232 = vrot.lane.b32.xlu2 %v6747_v22, %s5641_s25 }
 0x5cf   :  { %2406 = vrot.lane.b32.xlu0 %v6747_v22, %s5642_s27 }
 0x5d5   :  { %2348 = vrot.lane.b32.xlu1 %v6747_v22, %s7918_s4  ;;  %2354 = vrot.lane.b32.xlu2 %v6739_v48, %s7918_s4 }
 0x5d7   :  { %2238 = vrot.lane.b32.xlu0 %v6739_v48, %s5641_s25 }
 0x5dd   :  { %2234 = vrot.lane.b32.xlu1 %v6745_v17, %s5641_s25  ;;  %2296 = vrot.lane.b32.xlu2 %v6739_v48, %s5639_s23 }
 0x5df   :  { %2292 = vrot.lane.b32.xlu0 %v6745_v17, %s5639_s23 }
 0x5e5   :  { %2412 = vrot.lane.b32.xlu1 %v6739_v48, %s5642_s27  ;;  %2408 = vrot.lane.b32.xlu2 %v6745_v17, %s5642_s27 }
 0x5ed   :  { %2290 = vrot.lane.b32.xlu1 %v6747_v22, %s5639_s23 }
 0x5f7   :  { %v1981_v24 = vpop.permute.xlu2 %1980 }
 0x5f8   :  { %v1988_v16 = vmul.f32 %v6451_v63, %v1981_v24 }
 0x5ff   :  { %v6809_v32 = vpop.permute.xlu2 %2074 }
 0x600   :  { %v2080_v11 = vmul.f32 %v6476_v52, %v6809_v32  ;;  %v5466_v32 = vld [vmem:[%s7904_s9 + $0x20] sm:$0xff] }
 0x601   :  { %v2133_v35 = vpop.permute.xlu0 %2132 }
 0x602   :  { %v2138_v33 = vmul.f32 %v6497_v13, %v2133_v35 }
 0x607   :  { %v2131_v6 = vpop.permute.xlu2 %2130 }
 0x608   :  { %v2137_v18 = vmul.f32 %v6497_v13, %v2131_v6 }
 0x609   :  { %v1987_v54 = vpop.permute.xlu0 %1986 }
 0x60a   :  { %v1991_v55 = vmul.f32 %v6451_v63, %v1987_v54 }
 0x60f   :  { %v1983_v47 = vpop.permute.xlu1 %1982  ;;  %v6811_v36 = vpop.permute.xlu2 %2070 }
 0x610   :  { %v1989_v29 = vmul.f32 %v6451_v63, %v1983_v47  ;;  %v2078_v54 = vmul.f32 %v6476_v52, %v6811_v36 }
 0x611   :  { %v2129_v51 = vpop.permute.xlu0 %2128 }
 0x612   :  { %v2136_v61 = vmul.f32 %v6497_v13, %v2129_v51  ;;  %v1992_v5 = vpack.c.bf16 %v1989_v29, %v1988_v16 }
 0x614   :  { %v2140_v58 = vpack.c.bf16 %v2137_v18, %v2136_v61 }
 0x617   :  { %v1985_v44 = vpop.permute.xlu1 %1984  ;;  %v2135_v60 = vpop.permute.xlu2 %2134 }
 0x618   :  { %v1990_v0 = vmul.f32 %v6451_v63, %v1985_v44  ;;  %v2139_v50 = vmul.f32 %v6497_v13, %v2135_v60  ;;  %v5468_v63 = vld [vmem:[%s7904_s9 + $0x30] sm:$0xff] }
 0x619   :  { %v1965_v19 = vpop.permute.xlu0 %1964 }
 0x61a   :  { %v1993_v57 = vpack.c.bf16 %v1991_v55, %v1990_v0  ;;  %v2141_v4 = vpack.c.bf16 %v2139_v50, %v2138_v33  ;;  %v1971_v43 = vmul.f32 %v6444_v14, %v1965_v19  ;;  %v5470_v33 = vld [vmem:[%s7904_s9 + $0x40] sm:$0xff] }
 0x61c   :  { %2022 = vmatpush.bf16.msrb.mxu3 %v1993_v57  ;;  %2169 = vmatpush.bf16.msrb.mxu2 %v2141_v4  ;;  %v5476_v4 = vld [vmem:[%s7904_s9 + $0x70] sm:$0xff] }
 0x61f   :  { %v1967_v62 = vpop.permute.xlu1 %1966  ;;  %v6821_v37 = vpop.permute.xlu2 %2410 }
 0x620   :  { %2023 = vmatpush.bf16.msrb.mxu3 %v1992_v5  ;;  %2170 = vmatpush.bf16.msrb.mxu2 %v2140_v58  ;;  %v1972_v8 = vmul.f32 %v6444_v14, %v1967_v62  ;;  %v5467_v5 = vld [vmem:[%s7904_s9 + $0x28] sm:$0xff] }
 0x621   :  { %v2353_v13 = vpop.permute.xlu0 %2352 }
 0x622   :  { %v2358_v49 = vmul.f32 %v6589_v21, %v2353_v13  ;;  %v2416_v13 = vmul.f32 %v6567_v56, %v6821_v37  ;;  %v5478_v37 = vld [vmem:[%s7904_s9 + $0x80] sm:$0xff] }
 0x623   :  { %4871 = vmatmul.msk.bf16.vlgmr.msrb.gmra.mxu3 %vm2009_vm6, %v5464_v34  ;;  %4909 = vmatmul.msk.bf16.vlgmr.msrb.gmra.mxu2 %vm2009_vm6, %v5468_v63  ;;  %v5472_v34 = vld [vmem:[%s7904_s9 + $0x50] sm:$0xff] }
 0x624   :  { %2215 = vmatpush.bf16.msra.mxu3 %v2187_v38 }
 0x627   :  { %v1963_v15 = vpop.permute.xlu1 %1962  ;;  %v2233_v53 = vpop.permute.xlu2 %2232 }
 0x628   :  { %2216 = vmatpush.bf16.msra.mxu3 %v2186_v1  ;;  %v1970_v3 = vmul.f32 %v6444_v14, %v1963_v15  ;;  %v2240_v58 = vmul.f32 %v6524_v46, %v2233_v53 }
 0x629   :  { %v1969_v59 = vpop.permute.xlu0 %1968 }
 0x62a   :  { %v1973_v20 = vmul.f32 %v6444_v14, %v1969_v59  ;;  %v1974_v41 = vpack.c.bf16 %v1971_v43, %v1970_v3  ;;  %v5462_v14 = vld [vmem:[%s7904_s9] sm:$0xff]  ;;  %v5477_v59 = vld [vmem:[%s7904_s9 + $0x78] sm:$0xff] }
 0x62c   :  { %v1975_v42 = vpack.c.bf16 %v1973_v20, %v1972_v8 }
 0x62e   :  { %2057 = vmatpush.bf16.msrb.mxu0 %v1975_v42 }
 0x62f   :  { %v2073_v39 = vpop.permute.xlu1 %2072  ;;  %v2355_v23 = vpop.permute.xlu2 %2354 }
 0x630   :  { %v2359_v12 = vmul.f32 %v6589_v21, %v2355_v23  ;;  %v2079_v24 = vmul.f32 %v6476_v52, %v2073_v39 }
 0x631   :  { %v2295_v31 = vpop.permute.xlu0 %2294 }
 0x632   :  { %v2361_v25 = vpack.c.bf16 %v2359_v12, %v2358_v49  ;;  %2058 = vmatpush.bf16.msrb.mxu0 %v1974_v41  ;;  %v2300_v47 = vmul.f32 %v6555_v9, %v2295_v31  ;;  %v2082_v51 = vpack.c.bf16 %v2079_v24, %v2078_v54 }
 0x633   :  { %4872 = vmatmul.msk.bf16.gmra.mxu3 %vm2009_vm6, %v5465_v40  ;;  %4910 = vmatmul.msk.bf16.gmra.mxu2 %vm2009_vm6, %v5469_v10  ;;  %v5474_v40 = vld [vmem:[%s7904_s9 + $0x60] sm:$0xff]  ;;  %v5475_v10 = vld [vmem:[%s7904_s9 + $0x68] sm:$0xff] }
 0x634   :  { %2389 = vmatpush.bf16.msra.mxu2 %v2361_v25 }
 0x635   :  { %4881 = vmatmul.msk.bf16.vlgmr.msrb.gmra.mxu0 %vm2009_vm6, %v5462_v14 }
 0x637   :  { %v2077_v45 = vpop.permute.xlu1 %2076  ;;  %v2297_v28 = vpop.permute.xlu2 %2296 }
 0x638   :  { %v2081_v26 = vmul.f32 %v6476_v52, %v2077_v45  ;;  %v2301_v6 = vmul.f32 %v6555_v9, %v2297_v28  ;;  %v5463_v52 = vld [vmem:[%s7904_s9 + $0x8] sm:$0xff] }
 0x639   :  { %v2351_v7 = vpop.permute.xlu0 %2350 }
 0x63a   :  { %v2083_v35 = vpack.c.bf16 %v2081_v26, %v2080_v11  ;;  %v2303_v44 = vpack.c.bf16 %v2301_v6, %v2300_v47  ;;  %v2357_v0 = vmul.f32 %v6589_v21, %v2351_v7 }
 0x63c   :  { %2111 = vmatpush.bf16.msrb.mxu1 %v2083_v35 }
 0x63f   :  { %v2237_v60 = vpop.permute.xlu1 %2236  ;;  %v2409_v15 = vpop.permute.xlu2 %2408 }
 0x640   :  { %2112 = vmatpush.bf16.msrb.mxu1 %v2082_v51  ;;  %v2242_v29 = vmul.f32 %v6524_v46, %v2237_v60  ;;  %v2415_v8 = vmul.f32 %v6567_v56, %v2409_v15 }
 0x641   :  { %v2407_v55 = vpop.permute.xlu0 %2406 }
 0x643   :  { %4895 = vmatmul.msk.bf16.vlgmr.msrb.gmra.mxu1 %vm2009_vm6, %v5466_v32  ;;  %4923 = vmatmul.msk.bf16.vlgmr.msra.gmra.mxu3 %vm2009_vm6, %v5470_v33 }
 0x644   :  { %2331 = vmatpush.bf16.msra.mxu1 %v2303_v44 }
 0x645   :  { %4882 = vmatmul.msk.bf16.gmra.mxu0 %vm2009_vm6, %v5463_v52 }
 0x647   :  { %v2349_v36 = vpop.permute.xlu1 %2348 }
 0x648   :  { %v2356_v50 = vmul.f32 %v6589_v21, %v2349_v36  ;;  %v5471_v21 = vld [vmem:[%s7904_s9 + $0x48] sm:$0xff] }
 0x649   :  { %v2239_v19 = vpop.permute.xlu0 %2238 }
 0x64a   :  { %v2360_v61 = vpack.c.bf16 %v2357_v0, %v2356_v50  ;;  %v2243_v57 = vmul.f32 %v6524_v46, %v2239_v19 }
 0x64c   :  { %v2245_v16 = vpack.c.bf16 %v2243_v57, %v2242_v29  ;;  %2390 = vmatpush.bf16.msra.mxu2 %v2360_v61 }
 0x64e   :  { %2273 = vmatpush.bf16.msra.mxu0 %v2245_v16 }
 0x64f   :  { %v2235_v18 = vpop.permute.xlu1 %2234  ;;  %4965 = vmatmul.msk.bf16.vlgmr.msra.gmra.mxu2 %vm2009_vm6, %v5476_v4 }
 0x650   :  { %v2241_v62 = vmul.f32 %v6524_v46, %v2235_v18  ;;  %v2414_v46 = vmul.f32 %v6567_v56, %v2407_v55 }
 0x651   :  { %v2293_v20 = vpop.permute.xlu0 %2292 }
 0x652   :  { %v2244_v38 = vpack.c.bf16 %v2241_v62, %v2240_v58  ;;  %v2418_v3 = vpack.c.bf16 %v2415_v8, %v2414_v46  ;;  %v2299_v43 = vmul.f32 %v6555_v9, %v2293_v20 }
 0x653   :  { %4896 = vmatmul.msk.bf16.gmra.mxu1 %vm2009_vm6, %v5467_v5  ;;  %4924 = vmatmul.msk.bf16.gmra.mxu3 %vm2009_vm6, %v5471_v21 }
 0x654   :  { %2274 = vmatpush.bf16.msra.mxu0 %v2244_v38 }
 0x657   :  { %v2413_v63 = vpop.permute.xlu1 %2412  ;;  %4937 = vmatmul.msk.bf16.vlgmr.msra.gmra.mxu0 %vm2009_vm6, %v5472_v34 }
 0x658   :  { %v2417_v1 = vmul.f32 %v6567_v56, %v2413_v63  ;;  %v5473_v56 = vld [vmem:[%s7904_s9 + $0x58] sm:$0xff] }
 0x65a   :  { %v2419_v53 = vpack.c.bf16 %v2417_v1, %v2416_v13 }
 0x65c   :  { %2447 = vmatpush.bf16.msrb.mxu3 %v2419_v53 }
 0x65f   :  { %v2291_v42 = vpop.permute.xlu1 %2290  ;;  %4966 = vmatmul.msk.bf16.gmra.mxu2 %vm2009_vm6, %v5477_v59 }
 0x660   :  { %v2298_v39 = vmul.f32 %v6555_v9, %v2291_v42  ;;  %2448 = vmatpush.bf16.msrb.mxu3 %v2418_v3  ;;  %v5479_v9 = vld [vmem:[%s7904_s9 + $0x88] sm:$0xff] }
 0x662   :  { %v2302_v23 = vpack.c.bf16 %v2299_v43, %v2298_v39 }
 0x663   :  { %4979 = vmatmul.msk.bf16.vlgmr.msrb.gmra.mxu3 %vm2009_vm6, %v5478_v37 }
 0x664   :  { %2332 = vmatpush.bf16.msra.mxu1 %v2302_v23 }
 0x667   :  { %4938 = vmatmul.msk.bf16.gmra.mxu0 %vm2009_vm6, %v5473_v56  ;;  %4951 = vmatmul.msk.bf16.vlgmr.msra.gmra.mxu1 %vm2009_vm6, %v5474_v40 }
 0x673   :  { %4980 = vmatmul.msk.bf16.gmra.mxu3 %vm2009_vm6, %v5479_v9 }
 0x677   :  { %4952 = vmatmul.msk.bf16.gmra.mxu1 %vm2009_vm6, %v5475_v10 }
 0x6a6   :  { %v2025_v49 = vpop.f32.mrf.mxu3  ;;  %v2172_v14 = vpop.f32.mrf.mxu2 }
 0x6ae   :  { %v2027_v41 = vpop.f32.mrf.mxu3  ;;  %v2174_v26 = vpop.f32.mrf.mxu2 }
 0x6b2   :  { %v2060_v12 = vpop.f32.mrf.mxu0 }
 0x6b3   :  { %v2061_v60 = vadd.f32 %v2060_v12, %v2025_v49 }
 0x6b6   :  { %v2030_v31 = vpop.f32.mrf.mxu3  ;;  %v2177_v35 = vpop.f32.mrf.mxu2 }
 0x6ba   :  { %v2062_v25 = vpop.f32.mrf.mxu0 }
 0x6bb   :  { %v2063_v63 = vadd.f32 %v2062_v25, %v2027_v41 }
 0x6be   :  { %v2032_v45 = vpop.f32.mrf.mxu3  ;;  %v2179_v51 = vpop.f32.mrf.mxu2 }
 0x6c0   :  { %v2114_v11 = vpop.f32.mrf.mxu1 }
 0x6c1   :  { %v2124_v33 = vadd.f32 %v2114_v11, %v2061_v60 }
 0x6c2   :  { %v2065_v7 = vpop.f32.mrf.mxu0 }
 0x6c3   :  { %v2182_v36 = vadd.f32 %v2172_v14, %v2124_v33  ;;  %v2066_v18 = vadd.f32 %v2065_v7, %v2030_v31 }
 0x6c6   :  { %v2218_v28 = vpop.f32.mrf.mxu3 }
 0x6c7   :  { %v2228_v50 = vadd.f32 %v2218_v28, %v2182_v36 }
 0x6c8   :  { %v2116_v24 = vpop.f32.mrf.mxu1 }
 0x6c9   :  { %v2125_v1 = vadd.f32 %v2116_v24, %v2063_v63 }
 0x6ca   :  { %v2067_v54 = vpop.f32.mrf.mxu0 }
 0x6cb   :  { %v2068_v15 = vadd.f32 %v2067_v54, %v2032_v45  ;;  %v2183_v3 = vadd.f32 %v2174_v26, %v2125_v1  ;;  %v2583_v54 = vld [vmem:[%s7905_s11 + $0x18] sm:$0xff] }
 0x6ce   :  { %v2220_v6 = vpop.f32.mrf.mxu3 }
 0x6cf   :  { %v2229_v43 = vadd.f32 %v2220_v6, %v2183_v3 }
 0x6d0   :  { %v2119_v47 = vpop.f32.mrf.mxu1 }
 0x6d1   :  { %v2126_v58 = vadd.f32 %v2119_v47, %v2066_v18  ;;  %v2582_v47 = vld [vmem:[%s7905_s11 + $0x10] sm:$0xff] }
 0x6d2   :  { %v2392_v0 = vpop.f32.mrf.mxu2 }
 0x6d3   :  { %v2184_v13 = vadd.f32 %v2177_v35, %v2126_v58 }
 0x6d4   :  { %v2276_v32 = vpop.f32.mrf.mxu0 }
 0x6d5   :  { %v2286_v19 = vadd.f32 %v2276_v32, %v2228_v50 }
 0x6d6   :  { %v2223_v44 = vpop.f32.mrf.mxu3 }
 0x6d7   :  { %v2230_v46 = vadd.f32 %v2223_v44, %v2184_v13 }
 0x6d8   :  { %v2121_v55 = vpop.f32.mrf.mxu1 }
 0x6d9   :  { %v2127_v53 = vadd.f32 %v2121_v55, %v2068_v15 }
 0x6da   :  { %v2394_v21 = vpop.f32.mrf.mxu2 }
 0x6db   :  { %v2185_v39 = vadd.f32 %v2179_v51, %v2127_v53  ;;  %v2580_v51 = vld [vmem:[%s7905_s11] sm:$0xff] }
 0x6dc   :  { %v2278_v29 = vpop.f32.mrf.mxu0 }
 0x6dd   :  { %v2287_v40 = vadd.f32 %v2278_v29, %v2229_v43  ;;  %v2502_v43 = vld [vmem:[%s7906_s10 + $0x10] sm:$0xff] }
 0x6de   :  { %v2225_v52 = vpop.f32.mrf.mxu3 }
 0x6df   :  { %v2231_v9 = vadd.f32 %v2225_v52, %v2185_v39 }
 0x6e2   :  { %v2397_v8 = vpop.f32.mrf.mxu2 }
 0x6e4   :  { %v2334_v61 = vpop.f32.mrf.mxu1  ;;  %v2281_v38 = vpop.f32.mrf.mxu0 }
 0x6e5   :  { %v2344_v57 = vadd.f32 %v2334_v61, %v2286_v19  ;;  %v2288_v59 = vadd.f32 %v2281_v38, %v2230_v46 }
 0x6e6   :  { %v2450_v4 = vpop.f32.mrf.mxu3 }
 0x6e7   :  { %v2402_v16 = vadd.f32 %v2392_v0, %v2344_v57 }
 0x6e9   :  { %v6926_v5 = vadd.f32 %v2450_v4, %v2402_v16 }
 0x6ea   :  { %v2399_v25 = vpop.f32.mrf.mxu2 }
 0x6eb   :  { %2464 = vadd.xlane.f32.xlu1 %v6926_v5  ;;  %v2472_v6 = vmul.f32 %v6926_v5, %v6926_v5 }
 0x6ec   :  { %v2336_v62 = vpop.f32.mrf.mxu1  ;;  %v2283_v56 = vpop.f32.mrf.mxu0 }
 0x6ed   :  { %v2289_v49 = vadd.f32 %v2283_v56, %v2231_v9  ;;  %v2345_v41 = vadd.f32 %v2336_v62, %v2287_v40 }
 0x6ee   :  { %v2452_v34 = vpop.f32.mrf.mxu3 }
 0x6ef   :  { %v2403_v45 = vadd.f32 %v2394_v21, %v2345_v41 }
 0x6f1   :  { %v6936_v7 = vadd.f32 %v2452_v34, %v2403_v45 }
 0x6f3   :  { %v2473_v35 = vmul.f32 %v6936_v7, %v6936_v7 }
 0x6f4   :  { %v2339_v20 = vpop.f32.mrf.mxu1 }
 0x6f5   :  { %v2346_v42 = vadd.f32 %v2339_v20, %v2288_v59 }
 0x6f6   :  { %v2455_v37 = vpop.f32.mrf.mxu3 }
 0x6f7   :  { %v2404_v23 = vadd.f32 %v2397_v8, %v2346_v42 }
 0x6f9   :  { %v6929_v10 = vadd.f32 %v2455_v37, %v2404_v23 }
 0x6fb   :  { %2468 = vadd.xlane.f32.xlu2 %v6929_v10  ;;  %v2474_v12 = vmul.f32 %v6929_v10, %v6929_v10 }
 0x6fc   :  { %v2341_v31 = vpop.f32.mrf.mxu1 }
 0x6fd   :  { %v2347_v14 = vadd.f32 %v2341_v31, %v2289_v49  ;;  %2480 = vadd.xlane.f32.xlu0 %v2474_v12 }
 0x6fe   :  { %v2457_v26 = vpop.f32.mrf.mxu3 }
 0x6ff   :  { %v2405_v11 = vadd.f32 %v2399_v25, %v2347_v14 }
 0x701   :  { %v6934_v28 = vadd.f32 %v2457_v26, %v2405_v11 }
 0x703   :  { %2470 = vadd.xlane.f32.xlu1 %v6934_v28  ;;  %v2475_v24 = vmul.f32 %v6934_v28, %v6934_v28 }
 0x705   :  { %2466 = vadd.xlane.f32.xlu0 %v6936_v7  ;;  %2482 = vadd.xlane.f32.xlu2 %v2475_v24 }
 0x70b   :  { %2478 = vadd.xlane.f32.xlu1 %v2473_v35 }
 0x70d   :  { %2476 = vadd.xlane.f32.xlu2 %v2472_v6 }
 0x719   :  { %2601 = vperm.xlu0 %5562, %v2583_v54   ;;  %v2501_v54 = vld [vmem:[%s7906_s10 + $0x8] sm:$0xff] }
 0x724   :  { %2596 = vperm.xlu1 %5561, %v2582_v47  }
 0x72c   :  { %2586 = vperm.xlu1 %5561, %v2580_v51  }
 0x75e   :  { %v2465_v44 = vpop.xlane.xlu1 %2464 }
 0x75f   :  { %v6971_v58 = vmul.f32 %v2465_v44, %v6680_v27 }
 0x761   :  { %v2492_v46 = vmul.f32 %v6971_v58, %v6971_v58 }
 0x76e   :  { %v2469_v60 = vpop.xlane.xlu2 %2468 }
 0x76f   :  { %v6956_v32 = vmul.f32 %v2469_v60, %v6680_v27  ;;  %v2500_v60 = vld [vmem:[%s7906_s10] sm:$0xff] }
 0x770   :  { %v2481_v33 = vpop.xlane.xlu0 %2480 }
 0x771   :  { %v2494_v55 = vmul.f32 %v6956_v32, %v6956_v32  ;;  %v2490_v52 = vmul.f32 %v2481_v33, %v6680_v27 }
 0x773   :  { %v2498_v36 = vsub.f32 %v2490_v52, %v2494_v55 }
 0x775   :  { %v2506_v0 = vadd.f32 1e-05, %v2498_v36 }
 0x776   :  { %v2471_v50 = vpop.xlane.xlu1 %2470 }
 0x777   :  { %5587 = vrsqrt.f32 %v2506_v0  ;;  %v6962_v19 = vmul.f32 %v2471_v50, %v6680_v27  ;;  %vm2534_vm9 = vweird.f32 %v2506_v0 }
 0x778   :  { %v2467_v29 = vpop.xlane.xlu0 %2466  ;;  %v2483_v61 = vpop.xlane.xlu2 %2482 }
 0x779   :  { %v2495_v57 = vmul.f32 %v6962_v19, %v6962_v19  ;;  %v2491_v4 = vmul.f32 %v2483_v61, %v6680_v27  ;;  %v6968_v16 = vmul.f32 %v2467_v29, %v6680_v27  ;;  %v2581_v61 = vld [vmem:[%s7905_s11 + $0x8] sm:$0xff] }
 0x77b   :  { %v2499_v18 = vsub.f32 %v2491_v4, %v2495_v57  ;;  %v2493_v63 = vmul.f32 %v6968_v16, %v6968_v16  ;;  %v6997_v57 = vld [vmem:[%s7907_s1] sm:$0xff] }
 0x77d   :  { %v5588_v21 = vpop.eup %5587  ;;  %v2507_v62 = vadd.f32 1e-05, %v2499_v18  ;;  %v2552_v18 = vsub.f32 %v6926_v5, %v6971_v58 }
 0x77e   :  { %v2529_v38 = vmul.f32 %v5588_v21, %v2506_v0  ;;  %v2479_v34 = vpop.xlane.xlu1 %2478  ;;  %vm2535_vm7 = vweird.f32 %v5588_v21  ;;  %v2503_v0 = vld [vmem:[%s7906_s10 + $0x18] sm:$0xff] }
 0x77f   :  { %v2489_v13 = vmul.f32 %v2479_v34, %v6680_v27  ;;  %5589 = vrsqrt.f32 %v2507_v62  ;;  %vm2536_vm10 = vmor %vm2534_vm9, %vm2535_vm7  ;;  %vm2544_vm2 = vweird.f32 %v2507_v62 }
 0x780   :  { %v2530_v1 = vmul.f32 %v5588_v21, %v2529_v38  ;;  %v2477_v15 = vpop.xlane.xlu2 %2476 }
 0x781   :  { %v2497_v53 = vsub.f32 %v2489_v13, %v2493_v63  ;;  %v2488_v59 = vmul.f32 %v2477_v15, %v6680_v27  ;;  %v2554_v15 = vsub.f32 %v6929_v10, %v6956_v32  ;;  %v2553_v10 = vsub.f32 %v6936_v7, %v6968_v16  ;;  %v5619_v7 = vld [vmem:[%s7897_s2 + $0x1] ss:$0 sm:$0xff] }
 0x782   :  { %v2531_v8 = vmul.f32 0.5, %v2530_v1 }
 0x783   :  { %v2505_v20 = vadd.f32 1e-05, %v2497_v53  ;;  %v2496_v3 = vsub.f32 %v2488_v59, %v2492_v46  ;;  %v2555_v46 = vsub.f32 %v6934_v28, %v6962_v19 }
 0x784   :  { %v2532_v42 = vsub.f32 1.5, %v2531_v8 }
 0x785   :  { %5591 = vrsqrt.f32 %v2505_v20  ;;  %v2504_v37 = vadd.f32 1e-05, %v2496_v3  ;;  %v5590_v23 = vpop.eup %5589  ;;  %vm2524_vm12 = vweird.f32 %v2505_v20 }
 0x786   :  { %v2533_v39 = vmul.f32 %v5588_v21, %v2532_v42  ;;  %v2539_v9 = vmul.f32 %v5590_v23, %v2507_v62  ;;  %vm2545_vm1 = vweird.f32 %v5590_v23 }
 0x787   :  { %5593 = vrsqrt.f32 %v2504_v37  ;;  %vm2514_vm15 = vweird.f32 %v2504_v37  ;;  %vm2546_vm3 = vmor %vm2544_vm2, %vm2545_vm1 }
 0x788   :  { %v2537_v56 = vsel %vm2536_vm10, %v5588_v21, %v2533_v39  ;;  %v2540_v12 = vmul.f32 %v5590_v23, %v2539_v9 }
 0x789   :  { %v2550_v40 = vmul.f32 %v2537_v56, %v2502_v43 }
 0x78a   :  { %v2541_v11 = vmul.f32 0.5, %v2540_v12 }
 0x78b   :  { %v5592_v27 = vpop.eup %5591  ;;  %2568 = vperm.xlu0 %5562, %v2550_v40   ;;  %v2602_v21 = vpop.permute.xlu0 %2601  ;;  %v3649_v40 = vld [vmem:[%s7908_s14 + $0x38] sm:$0xff] }
 0x78c   :  { %v2519_v49 = vmul.f32 %v5592_v27, %v2505_v20  ;;  %vm2525_vm11 = vweird.f32 %v5592_v27  ;;  %v2542_v47 = vsub.f32 1.5, %v2541_v11  ;;  %v3647_v11 = vld [vmem:[%s7908_s14 + $0x28] sm:$0xff] }
 0x78d   :  { %v5594_v41 = vpop.eup %5593  ;;  %vm2526_vm14 = vmor %vm2524_vm12, %vm2525_vm11 }
 0x78e   :  { %v2520_v31 = vmul.f32 %v5592_v27, %v2519_v49  ;;  %v2509_v14 = vmul.f32 %v5594_v41, %v2504_v37  ;;  %vm2515_vm13 = vweird.f32 %v5594_v41  ;;  %v2543_v36 = vmul.f32 %v5590_v23, %v2542_v47 }
 0x78f   :  { %vm2516_vm0 = vmor %vm2514_vm15, %vm2515_vm13 }
 0x790   :  { %v2521_v25 = vmul.f32 0.5, %v2520_v31  ;;  %v2510_v45 = vmul.f32 %v5594_v41, %v2509_v14  ;;  %v2547_v50 = vsel %vm2546_vm3, %v5590_v23, %v2543_v36  ;;  %v3648_v31 = vld [vmem:[%s7908_s14 + $0x30] sm:$0xff]  ;;  %v3642_v36 = vld [vmem:[%s7908_s14] sm:$0xff] }
 0x791   :  { %v2551_v29 = vmul.f32 %v2547_v50, %v2503_v0 }
 0x792   :  { %v2522_v26 = vsub.f32 1.5, %v2521_v25  ;;  %v2511_v24 = vmul.f32 0.5, %v2510_v45 }
 0x794   :  { %v2523_v35 = vmul.f32 %v5592_v27, %v2522_v26  ;;  %v2512_v6 = vsub.f32 1.5, %v2511_v24  ;;  %v3643_v26 = vld [vmem:[%s7908_s14 + $0x8] sm:$0xff]  ;;  %v3645_v24 = vld [vmem:[%s7908_s14 + $0x18] sm:$0xff] }
 0x796   :  { %v2513_v51 = vmul.f32 %v5594_v41, %v2512_v6  ;;  %v2527_v44 = vsel %vm2526_vm14, %v5592_v27, %v2523_v35  ;;  %v2597_v4 = vpop.permute.xlu1 %2596  ;;  %v7107_v27 = vld [vmem:[%s7897_s2 + $0x2] ss:$0 sm:$0xff] }
 0x797   :  { %v2549_v33 = vmul.f32 %v2527_v44, %v2501_v54 }
 0x798   :  { %v2517_v55 = vsel %vm2516_vm0, %v5594_v41, %v2513_v51  ;;  %v3646_v41 = vld [vmem:[%s7908_s14 + $0x20] sm:$0xff] }
 0x799   :  { %2563 = vperm.xlu0 %5562, %v2549_v33   ;;  %v2548_v52 = vmul.f32 %v2517_v55, %v2500_v60  ;;  %v7131_v51 = vld [vmem:[%s7897_s2 + $0x3] ss:$0 sm:$0xff]  ;;  %v3644_v33 = vld [vmem:[%s7908_s14 + $0x10] sm:$0xff] }
 0x79b   :  { %2558 = vperm.xlu2 %5560, %v2548_v52  }
 0x79e   :  { %v2587_v34 = vpop.permute.xlu1 %2586 }
 0x7a1   :  { %2651 = vrot.lane.b32.xlu0 %v6997_v57, %s5635_s26 }
 0x7a3   :  { %2573 = vperm.xlu2 %5560, %v2551_v29  }
 0x7ab   :  { %2591 = vperm.xlu2 %5560, %v2581_v61   ;;  %v3000_v61 = vpack.c.bf16 %v6997_v57, %v6997_v57 }
 0x7f5   :  { %v2559_v62 = vpop.permute.xlu2 %2558 }
 0x7f6   :  { %v2576_v38 = vmul.f32 %v2559_v62, %v2552_v18 }
 0x7f8   :  { %v2604_v63 = vadd.f32 %v2587_v34, %v2576_v38 }
 0x7fa   :  { %v2608_v13 = vadd.f32 %v2604_v63, %v6747_v22  ;;  %v3043_v63 = vsel %vm2703_vm4, %v3000_v61, 0  ;;  %v5625_v61 = vld [vmem:[%s7897_s2 + $0x5] ss:$0 sm:$0xff] }
 0x7fc   :  { %v7004_v1 = vmax.f32 %v2608_v13, 0.0  ;;  %v5484_v13 = vld [vmem:[%s7909_s12 + $0x20] sm:$0xff] }
 0x7fd   :  { %v2569_v53 = vpop.permute.xlu0 %2568  ;;  %v2574_v59 = vpop.permute.xlu2 %2573 }
 0x7fe   :  { %v2578_v8 = vmul.f32 %v2569_v53, %v2554_v15  ;;  %v2579_v20 = vmul.f32 %v2574_v59, %v2555_v46  ;;  %2643 = vrot.lane.b32.xlu0 %v7004_v1, %s5635_s26  ;;  %v5622_v46 = vld [vmem:[%s7897_s2] ss:$0 sm:$0xff] }
 0x800   :  { %v2606_v5 = vadd.f32 %v2597_v4, %v2578_v8  ;;  %v2607_v58 = vadd.f32 %v2602_v21, %v2579_v20 }
 0x802   :  { %v2610_v3 = vadd.f32 %v2606_v5, %v6731_v2  ;;  %v2611_v22 = vadd.f32 %v2607_v58, %v6739_v48 }
 0x804   :  { %v7014_v42 = vmax.f32 %v2610_v3, 0.0  ;;  %v7016_v37 = vmax.f32 %v2611_v22, 0.0  ;;  %v7160_v3 = vld [vmem:[%s7897_s2 + $0x6] ss:$0 sm:$0xff] }
 0x805   :  { %v2592_v32 = vpop.permute.xlu2 %2591 }
 0x806   :  { %2647 = vrot.lane.b32.xlu1 %v7014_v42, %s5635_s26  ;;  %2907 = vrot.lane.b32.xlu0 %v6997_v57, %s5638_s22 }
 0x807   :  { %2649 = vrot.lane.b32.xlu2 %v7016_v37, %s5635_s26 }
 0x80b   :  { %v2564_v28 = vpop.permute.xlu0 %2563 }
 0x80c   :  { %v2577_v2 = vmul.f32 %v2564_v28, %v2553_v10 }
 0x80e   :  { %v2605_v48 = vadd.f32 %v2592_v32, %v2577_v2  ;;  %2621 = vrot.lane.b32.xlu0 %v7014_v42, %s5636_s20 }
 0x80f   :  { %2808 = vrot.lane.b32.xlu2 %v6997_v57, %s5637_s21 }
 0x810   :  { %v2609_v19 = vadd.f32 %v2605_v48, %v6745_v17 }
 0x812   :  { %v7031_v43 = vmax.f32 %v2609_v19, 0.0 }
 0x813   :  { %v2652_v17 = vpop.permute.xlu0 %2651 }
 0x814   :  { %2645 = vrot.lane.b32.xlu1 %v7031_v43, %s5635_s26  ;;  %v2657_v16 = vmul.f32 %v5619_v7, %v2652_v17 }
 0x816   :  { %2802 = vrot.lane.b32.xlu0 %v7031_v43, %s5637_s21  ;;  %v2660_v39 = vpack.c.bf16 %v2657_v16, %v2657_v16 }
 0x817   :  { %2804 = vrot.lane.b32.xlu2 %v7014_v42, %s5637_s21 }
 0x818   :  { %v2705_v23 = vsel %vm2703_vm4, %v2660_v39, 0 }
 0x819   :  { %2712 = vmatpush.bf16.msrb.mxu0 %v2705_v23  ;;  %v5485_v23 = vld [vmem:[%s7909_s12 + $0x28] sm:$0xff] }
 0x81c   :  { %2625 = vrot.lane.b32.xlu1 %v6997_v57, %s5636_s20 }
 0x81e   :  { %2806 = vrot.lane.b32.xlu0 %v7016_v37, %s5637_s21 }
 0x81f   :  { %2800 = vrot.lane.b32.xlu2 %v7004_v1, %s5637_s21 }
 0x824   :  { %2903 = vrot.lane.b32.xlu1 %v7014_v42, %s5638_s22 }
 0x826   :  { %2617 = vrot.lane.b32.xlu0 %v7004_v1, %s5636_s20 }
 0x827   :  { %2905 = vrot.lane.b32.xlu2 %v7016_v37, %s5638_s22 }
 0x82c   :  { %2899 = vrot.lane.b32.xlu1 %v7004_v1, %s5638_s22 }
 0x82e   :  { %3288 = vrot.lane.b32.xlu0 %v6997_v57, %s7918_s4 }
 0x82f   :  { %2901 = vrot.lane.b32.xlu2 %v7031_v43, %s5638_s22 }
 0x834   :  { %2623 = vrot.lane.b32.xlu1 %v7016_v37, %s5636_s20 }
 0x836   :  { %3086 = vrot.lane.b32.xlu0 %v7014_v42, %s5641_s25 }
 0x837   :  { %3189 = vrot.lane.b32.xlu2 %v6997_v57, %s5639_s23 }
 0x83c   :  { %2619 = vrot.lane.b32.xlu1 %v7031_v43, %s5636_s20 }
 0x83e   :  { %3183 = vrot.lane.b32.xlu0 %v7031_v43, %s5639_s23 }
 0x83f   :  { %3185 = vrot.lane.b32.xlu2 %v7014_v42, %s5639_s23 }
 0x844   :  { %3090 = vrot.lane.b32.xlu1 %v6997_v57, %s5641_s25 }
 0x846   :  { %3282 = vrot.lane.b32.xlu0 %v7031_v43, %s7918_s4 }
 0x847   :  { %3181 = vrot.lane.b32.xlu2 %v7004_v1, %s5639_s23 }
 0x84c   :  { %3284 = vrot.lane.b32.xlu1 %v7014_v42, %s7918_s4 }
 0x84e   :  { %3187 = vrot.lane.b32.xlu0 %v7016_v37, %s5639_s23 }
 0x84f   :  { %3280 = vrot.lane.b32.xlu2 %v7004_v1, %s7918_s4 }
 0x854   :  { %3387 = vrot.lane.b32.xlu1 %v6997_v57, %s5642_s27  ;;  %v2999_v57 = vpack.c.bf16 %v7016_v37, %v7014_v42 }
 0x856   :  { %3383 = vrot.lane.b32.xlu0 %v7014_v42, %s5642_s27  ;;  %v2998_v42 = vpack.c.bf16 %v7031_v43, %v7004_v1 }
 0x857   :  { %3286 = vrot.lane.b32.xlu2 %v7016_v37, %s7918_s4 }
 0x85c   :  { %3082 = vrot.lane.b32.xlu1 %v7004_v1, %s5641_s25 }
 0x85e   :  { %3381 = vrot.lane.b32.xlu0 %v7031_v43, %s5642_s27 }
 0x85f   :  { %3084 = vrot.lane.b32.xlu2 %v7031_v43, %s5641_s25  ;;  %v5488_v43 = vld [vmem:[%s7909_s12 + $0x40] sm:$0xff] }
 0x861   :  { %v2650_v56 = vpop.permute.xlu2 %2649 }
 0x862   :  { %v2656_v54 = vmul.f32 %v5619_v7, %v2650_v56 }
 0x864   :  { %3088 = vrot.lane.b32.xlu1 %v7016_v37, %s5641_s25 }
 0x866   :  { %3687 = vperm.xlu0 %5562, %v3649_v40  }
 0x867   :  { %3379 = vrot.lane.b32.xlu2 %v7004_v1, %s5642_s27 }
 0x869   :  { %v2809_v9 = vpop.permute.xlu2 %2808 }
 0x86a   :  { %v2814_v49 = vmul.f32 %v7107_v27, %v2809_v9 }
 0x86c   :  { %v2817_v12 = vpack.c.bf16 %v2814_v49, %v2814_v49  ;;  %3385 = vrot.lane.b32.xlu1 %v7016_v37, %s5642_s27 }
 0x86e   :  { %v2860_v14 = vsel %vm2703_vm4, %v2817_v12, 0  ;;  %3672 = vperm.xlu0 %5562, %v3646_v41   ;;  %v5624_v12 = vld [vmem:[%s7897_s2 + $0x7] ss:$0 sm:$0xff] }
 0x86f   :  { %3682 = vperm.xlu2 %5560, %v3648_v31   ;;  %2867 = vmatpush.bf16.msrb.mxu2 %v2860_v14  ;;  %v5492_v14 = vld [vmem:[%s7909_s12 + $0x60] sm:$0xff] }
 0x870   :  { %v2644_v25 = vpop.permute.xlu0 %2643 }
 0x871   :  { %v2805_v45 = vpop.permute.xlu2 %2804  ;;  %v2653_v18 = vmul.f32 %v5619_v7, %v2644_v25 }
 0x872   :  { %v2812_v8 = vmul.f32 %v7107_v27, %v2805_v45 }
 0x874   :  { %3677 = vperm.xlu1 %5561, %v3647_v11  }
 0x876   :  { %3657 = vperm.xlu0 %5562, %v3643_v26  }
 0x877   :  { %3667 = vperm.xlu2 %5560, %v3645_v24  }
 0x878   :  { %v2648_v35 = vpop.permute.xlu1 %2647  ;;  %v2908_v6 = vpop.permute.xlu0 %2907 }
 0x879   :  { %v2655_v47 = vmul.f32 %v5619_v7, %v2648_v35  ;;  %v2913_v44 = vmul.f32 %v7131_v51, %v2908_v6  ;;  %v2801_v60 = vpop.permute.xlu2 %2800 }
 0x87a   :  { %v2810_v32 = vmul.f32 %v7107_v27, %v2801_v60 }
 0x87b   :  { %v2659_v55 = vpack.c.bf16 %v2656_v54, %v2655_v47  ;;  %v2916_v52 = vpack.c.bf16 %v2913_v44, %v2913_v44  ;;  %v5489_v54 = vld [vmem:[%s7909_s12 + $0x48] sm:$0xff] }
 0x87c   :  { %3662 = vperm.xlu1 %5561, %v3644_v33  }
 0x87d   :  { %v2959_v0 = vsel %vm2703_vm4, %v2916_v52, 0  ;;  %2713 = vmatpush.bf16.msrb.mxu0 %v2659_v55 }
 0x87e   :  { %2966 = vmatpush.bf16.msra.mxu3 %v2959_v0  ;;  %v5480_v0 = vld [vmem:[%s7909_s12] sm:$0xff] }
 0x87f   :  { %3652 = vperm.xlu2 %5560, %v3642_v36  }
 0x880   :  { %v7141_v50 = vpop.permute.xlu0 %2621 }
 0x881   :  { %v2906_v29 = vpop.permute.xlu2 %2905  ;;  %v2629_v26 = vmul.f32 %v5622_v46, %v7141_v50  ;;  %v5493_v50 = vld [vmem:[%s7909_s12 + $0x68] sm:$0xff] }
 0x882   :  { %v2912_v19 = vmul.f32 %v7131_v51, %v2906_v29 }
 0x886   :  { %v2646_v4 = vpop.permute.xlu1 %2645 }
 0x887   :  { %v2654_v21 = vmul.f32 %v5619_v7, %v2646_v4 }
 0x888   :  { %v2803_v62 = vpop.permute.xlu0 %2802 }
 0x889   :  { %v2658_v38 = vpack.c.bf16 %v2654_v21, %v2653_v18  ;;  %v2902_v34 = vpop.permute.xlu2 %2901  ;;  %v2811_v37 = vmul.f32 %v7107_v27, %v2803_v62  ;;  %v5490_v21 = vld [vmem:[%s7909_s12 + $0x50] sm:$0xff] }
 0x88a   :  { %v2910_v9 = vmul.f32 %v7131_v51, %v2902_v34 }
 0x88b   :  { %2714 = vmatpush.bf16.msrb.mxu0 %v2658_v38  ;;  %v2815_v17 = vpack.c.bf16 %v2811_v37, %v2810_v32  ;;  %v5487_v38 = vld [vmem:[%s7909_s12 + $0x38] sm:$0xff] }
 0x88e   :  { %v2626_v15 = vpop.permute.xlu1 %2625  ;;  %5005 = vmatmul.msk.bf16.vlgmr.msrb.gmra.mxu0 %vm2690_vm5, %v5484_v13 }
 0x88f   :  { %3050 = vmatpush.bf16.msra.mxu0 %v3043_v63  ;;  %v2631_v53 = vmul.f32 %v5622_v46, %v2626_v15 }
 0x890   :  { %v2807_v59 = vpop.permute.xlu0 %2806 }
 0x891   :  { %v2634_v20 = vpack.c.bf16 %v2631_v53, %v2631_v53  ;;  %v2813_v5 = vmul.f32 %v7107_v27, %v2807_v59  ;;  %v3190_v58 = vpop.permute.xlu2 %3189 }
 0x892   :  { %v3195_v22 = vmul.f32 %v7160_v3, %v3190_v58  ;;  %v5494_v58 = vld [vmem:[%s7909_s12 + $0x70] sm:$0xff] }
 0x893   :  { %3051 = vmatpush.bf16.msra.mxu0 %v2999_v57  ;;  %v2769_v10 = vsel %vm2703_vm4, %v2634_v20, 0  ;;  %v2816_v28 = vpack.c.bf16 %v2813_v5, %v2812_v8  ;;  %v5481_v5 = vld [vmem:[%s7909_s12 + $0x8] sm:$0xff] }
 0x894   :  { %v3198_v2 = vpack.c.bf16 %v3195_v22, %v3195_v22  ;;  %2776 = vmatpush.bf16.msrb.mxu1 %v2769_v10 }
 0x895   :  { %2868 = vmatpush.bf16.msrb.mxu2 %v2816_v28 }
 0x896   :  { %v2904_v48 = vpop.permute.xlu1 %2903  ;;  %v3241_v7 = vsel %vm2703_vm4, %v3198_v2, 0 }
 0x897   :  { %3052 = vmatpush.bf16.msra.mxu0 %v2998_v42  ;;  %v2911_v16 = vmul.f32 %v7131_v51, %v2904_v48  ;;  %v5626_v48 = vld [vmem:[%s7897_s2 + $0x8] ss:$0 sm:$0xff] }
 0x898   :  { %v2618_v1 = vpop.permute.xlu0 %2617 }
 0x899   :  { %v2915_v39 = vpack.c.bf16 %v2912_v19, %v2911_v16  ;;  %2869 = vmatpush.bf16.msrb.mxu2 %v2815_v17  ;;  %v3186_v56 = vpop.permute.xlu2 %3185  ;;  %v2627_v60 = vmul.f32 %v5622_v46, %v2618_v1  ;;  %v5491_v17 = vld [vmem:[%s7909_s12 + $0x58] sm:$0xff] }
 0x89a   :  { %v3193_v53 = vmul.f32 %v7160_v3, %v3186_v56 }
 0x89b   :  { %2967 = vmatpush.bf16.msra.mxu3 %v2915_v39  ;;  %v5495_v39 = vld [vmem:[%s7909_s12 + $0x78] sm:$0xff] }
 0x89c   :  { %5053 = vmatmul.msk.bf16.vlgmr.msrb.gmra.mxu2 %vm2690_vm5, %v5488_v43  ;;  %v5482_v43 = vld [vmem:[%s7909_s12 + $0x10] sm:$0xff] }
 0x89d   :  { %3248 = vmatpush.bf16.msra.mxu2 %v3241_v7 }
 0x89e   :  { %v2900_v40 = vpop.permute.xlu1 %2899  ;;  %5006 = vmatmul.msk.bf16.gmra.mxu0 %vm2690_vm5, %v5485_v23 }
 0x89f   :  { %v2909_v27 = vmul.f32 %v7131_v51, %v2900_v40  ;;  %v5486_v51 = vld [vmem:[%s7909_s12 + $0x30] sm:$0xff] }
 0x8a0   :  { %v3289_v49 = vpop.permute.xlu0 %3288 }
 0x8a1   :  { %v2914_v41 = vpack.c.bf16 %v2910_v9, %v2909_v27  ;;  %v3294_v31 = vmul.f32 %v5624_v12, %v3289_v49  ;;  %v3182_v35 = vpop.permute.xlu2 %3181  ;;  %v5504_v49 = vld [vmem:[%s7909_s12 + $0xc0] sm:$0xff] }
 0x8a2   :  { %v3191_v10 = vmul.f32 %v7160_v3, %v3182_v35 }
 0x8a3   :  { %v3297_v25 = vpack.c.bf16 %v3294_v31, %v3294_v31  ;;  %2968 = vmatpush.bf16.msra.mxu3 %v2914_v41  ;;  %v5497_v31 = vld [vmem:[%s7909_s12 + $0x88] sm:$0xff] }
 0x8a5   :  { %v3340_v45 = vsel %vm2703_vm4, %v3297_v25, 0 }
 0x8a6   :  { %v2624_v11 = vpop.permute.xlu1 %2623  ;;  %5081 = vmatmul.msk.bf16.vlgmr.msra.gmra.mxu3 %vm2690_vm5, %v5492_v14 }
 0x8a7   :  { %v2630_v24 = vmul.f32 %v5622_v46, %v2624_v11  ;;  %3347 = vmatpush.bf16.msrb.mxu3 %v3340_v45 }
 0x8a8   :  { %v7190_v6 = vpop.permute.xlu0 %3086 }
 0x8a9   :  { %v2633_v47 = vpack.c.bf16 %v2630_v24, %v2629_v26  ;;  %v3281_v36 = vpop.permute.xlu2 %3280  ;;  %v3094_v9 = vmul.f32 %v5625_v61, %v7190_v6 }
 0x8aa   :  { %v3290_v22 = vmul.f32 %v5624_v12, %v3281_v36  ;;  %v5509_v36 = vld [vmem:[%s7909_s12 + $0xe8] sm:$0xff] }
 0x8ab   :  { %2777 = vmatpush.bf16.msrb.mxu1 %v2633_v47  ;;  %v5483_v47 = vld [vmem:[%s7909_s12 + $0x18] sm:$0xff] }
 0x8ac   :  { %5054 = vmatmul.msk.bf16.gmra.mxu2 %vm2690_vm5, %v5489_v54 }
 0x8ae   :  { %v2620_v44 = vpop.permute.xlu1 %2619  ;;  %5007 = vmatmul.msk.bf16.gmra.mxu0 %vm2690_vm5, %v5486_v51  ;;  %v5508_v51 = vld [vmem:[%s7909_s12 + $0xe0] sm:$0xff] }
 0x8af   :  { %v2628_v33 = vmul.f32 %v5622_v46, %v2620_v44 }
 0x8b0   :  { %v3184_v55 = vpop.permute.xlu0 %3183 }
 0x8b1   :  { %v2632_v52 = vpack.c.bf16 %v2628_v33, %v2627_v60  ;;  %v3287_v63 = vpop.permute.xlu2 %3286  ;;  %v3192_v42 = vmul.f32 %v7160_v3, %v3184_v55  ;;  %v5505_v33 = vld [vmem:[%s7909_s12 + $0xc8] sm:$0xff]  ;;  %v5498_v55 = vld [vmem:[%s7909_s12 + $0x90] sm:$0xff] }
 0x8b2   :  { %v3293_v15 = vmul.f32 %v5624_v12, %v3287_v63  ;;  %v5513_v63 = vld [vmem:[%s7909_s12 + $0x108] sm:$0xff] }
 0x8b3   :  { %2778 = vmatpush.bf16.msrb.mxu1 %v2632_v52  ;;  %v3196_v32 = vpack.c.bf16 %v3192_v42, %v3191_v10  ;;  %v5500_v52 = vld [vmem:[%s7909_s12 + $0xa0] sm:$0xff] }
 0x8b6   :  { %5025 = vmatmul.msk.bf16.vlgmr.msrb.gmra.mxu1 %vm2690_vm5, %v5480_v0  ;;  %v3091_v29 = vpop.permute.xlu1 %3090  ;;  %5082 = vmatmul.msk.bf16.gmra.mxu3 %vm2690_vm5, %v5493_v50  ;;  %v5506_v0 = vld [vmem:[%s7909_s12 + $0xd0] sm:$0xff]  ;;  %v5499_v50 = vld [vmem:[%s7909_s12 + $0x98] sm:$0xff] }
 0x8b7   :  { %v3096_v4 = vmul.f32 %v5625_v61, %v3091_v29  ;;  %v5501_v29 = vld [vmem:[%s7909_s12 + $0xa8] sm:$0xff] }
 0x8b8   :  { %v3283_v18 = vpop.permute.xlu0 %3282 }
 0x8b9   :  { %v3099_v62 = vpack.c.bf16 %v3096_v4, %v3096_v4  ;;  %v3291_v59 = vmul.f32 %v5624_v12, %v3283_v18  ;;  %v3085_v56 = vpop.permute.xlu2 %3084  ;;  %v5507_v4 = vld [vmem:[%s7909_s12 + $0xd8] sm:$0xff]  ;;  %v5512_v18 = vld [vmem:[%s7909_s12 + $0x100] sm:$0xff] }
 0x8ba   :  { %v3093_v14 = vmul.f32 %v5625_v61, %v3085_v56 }
 0x8bb   :  { %v3142_v34 = vsel %vm2703_vm4, %v3099_v62, 0  ;;  %v3295_v28 = vpack.c.bf16 %v3291_v59, %v3290_v22  ;;  %v5502_v62 = vld [vmem:[%s7909_s12 + $0xb0] sm:$0xff] }
 0x8bc   :  { %5055 = vmatmul.msk.bf16.gmra.mxu2 %vm2690_vm5, %v5490_v21  ;;  %3149 = vmatpush.bf16.msra.mxu1 %v3142_v34  ;;  %v5514_v59 = vld [vmem:[%s7909_s12 + $0x110] sm:$0xff] }
 0x8be   :  { %v3285_v13 = vpop.permute.xlu1 %3284  ;;  %5008 = vmatmul.msk.bf16.gmra.mxu0 %vm2690_vm5, %v5487_v38  ;;  %v5511_v38 = vld [vmem:[%s7909_s12 + $0xf8] sm:$0xff] }
 0x8bf   :  { %v3292_v57 = vmul.f32 %v5624_v12, %v3285_v13 }
 0x8c0   :  { %v3188_v46 = vpop.permute.xlu0 %3187 }
 0x8c1   :  { %v3296_v8 = vpack.c.bf16 %v3293_v15, %v3292_v57  ;;  %v3194_v20 = vmul.f32 %v7160_v3, %v3188_v46  ;;  %v5496_v3 = vld [vmem:[%s7909_s12 + $0x80] sm:$0xff]  ;;  %v3380_v35 = vpop.permute.xlu2 %3379  ;;  %v5503_v15 = vld [vmem:[%s7909_s12 + $0xb8] sm:$0xff] }
 0x8c2   :  { %v3389_v44 = vmul.f32 %v5626_v48, %v3380_v35 }
 0x8c3   :  { %v3197_v37 = vpack.c.bf16 %v3194_v20, %v3193_v53  ;;  %3348 = vmatpush.bf16.msrb.mxu3 %v3296_v8 }
 0x8c5   :  { %3249 = vmatpush.bf16.msra.mxu2 %v3197_v37  ;;  %v5515_v37 = vld [vmem:[%s7909_s12 + $0x118] sm:$0xff] }
 0x8c6   :  { %5026 = vmatmul.msk.bf16.gmra.mxu1 %vm2690_vm5, %v5481_v5  ;;  %v3388_v2 = vpop.permute.xlu1 %3387  ;;  %5083 = vmatmul.msk.bf16.gmra.mxu3 %vm2690_vm5, %v5494_v58 }
 0x8c7   :  { %v3393_v19 = vmul.f32 %v5626_v48, %v3388_v2  ;;  %3349 = vmatpush.bf16.msrb.mxu3 %v3295_v28 }
 0x8c8   :  { %v3384_v23 = vpop.permute.xlu0 %3383 }
 0x8c9   :  { %v3396_v7 = vpack.c.bf16 %v3393_v19, %v3393_v19  ;;  %3250 = vmatpush.bf16.msra.mxu2 %v3196_v32  ;;  %v3391_v26 = vmul.f32 %v5626_v48, %v3384_v23 }
 0x8cb   :  { %v3439_v16 = vsel %vm2703_vm4, %v3396_v7, 0 }
 0x8cc   :  { %3446 = vmatpush.bf16.msrb.mxu0 %v3439_v16  ;;  %5056 = vmatmul.msk.bf16.gmra.mxu2 %vm2690_vm5, %v5491_v17 }
 0x8ce   :  { %v3083_v1 = vpop.permute.xlu1 %3082  ;;  %5109 = vmatmul.msk.bf16.vlgmr.msra.gmra.mxu0 %vm2690_vm5, %v5496_v3 }
 0x8cf   :  { %v3092_v41 = vmul.f32 %v5625_v61, %v3083_v1 }
 0x8d0   :  { %v3382_v45 = vpop.permute.xlu0 %3381 }
 0x8d1   :  { %v3097_v25 = vpack.c.bf16 %v3093_v14, %v3092_v41  ;;  %v3390_v6 = vmul.f32 %v5626_v48, %v3382_v45 }
 0x8d3   :  { %v3394_v60 = vpack.c.bf16 %v3390_v6, %v3389_v44 }
 0x8d6   :  { %5027 = vmatmul.msk.bf16.gmra.mxu1 %vm2690_vm5, %v5482_v43  ;;  %v3089_v40 = vpop.permute.xlu1 %3088  ;;  %5084 = vmatmul.msk.bf16.gmra.mxu3 %vm2690_vm5, %v5495_v39 }
 0x8d7   :  { %v3095_v27 = vmul.f32 %v5625_v61, %v3089_v40  ;;  %v5510_v61 = vld [vmem:[%s7909_s12 + $0xf0] sm:$0xff] }
 0x8d9   :  { %v3098_v12 = vpack.c.bf16 %v3095_v27, %v3094_v9 }
 0x8db   :  { %3150 = vmatpush.bf16.msra.mxu1 %v3098_v12 }
 0x8dc   :  { %5165 = vmatmul.msk.bf16.vlgmr.msra.gmra.mxu2 %vm2690_vm5, %v5504_v49 }
 0x8de   :  { %v3386_v11 = vpop.permute.xlu1 %3385  ;;  %5110 = vmatmul.msk.bf16.gmra.mxu0 %vm2690_vm5, %v5497_v31 }
 0x8df   :  { %v3392_v24 = vmul.f32 %v5626_v48, %v3386_v11  ;;  %3151 = vmatpush.bf16.msra.mxu1 %v3097_v25 }
 0x8e1   :  { %v3395_v54 = vpack.c.bf16 %v3392_v24, %v3391_v26 }
 0x8e3   :  { %3447 = vmatpush.bf16.msrb.mxu0 %v3395_v54 }
 0x8e6   :  { %5028 = vmatmul.msk.bf16.gmra.mxu1 %vm2690_vm5, %v5483_v47  ;;  %5193 = vmatmul.msk.bf16.vlgmr.msrb.gmra.mxu3 %vm2690_vm5, %v5508_v51 }
 0x8e7   :  { %3448 = vmatpush.bf16.msrb.mxu0 %v3394_v60 }
 0x8ec   :  { %5166 = vmatmul.msk.bf16.gmra.mxu2 %vm2690_vm5, %v5505_v33 }
 0x8ee   :  { %5111 = vmatmul.msk.bf16.gmra.mxu0 %vm2690_vm5, %v5498_v55 }
 0x8f6   :  { %5137 = vmatmul.msk.bf16.vlgmr.msra.gmra.mxu1 %vm2690_vm5, %v5500_v52  ;;  %5194 = vmatmul.msk.bf16.gmra.mxu3 %vm2690_vm5, %v5509_v36 }
 0x8fc   :  { %5167 = vmatmul.msk.bf16.gmra.mxu2 %vm2690_vm5, %v5506_v0 }
 0x8fe   :  { %5112 = vmatmul.msk.bf16.gmra.mxu0 %vm2690_vm5, %v5499_v50 }
 0x906   :  { %5138 = vmatmul.msk.bf16.gmra.mxu1 %vm2690_vm5, %v5501_v29  ;;  %5195 = vmatmul.msk.bf16.gmra.mxu3 %vm2690_vm5, %v5510_v61 }
 0x90b   :  { %v2716_v21 = vpop.f32.mrf.mxu0 }
 0x90c   :  { %5168 = vmatmul.msk.bf16.gmra.mxu2 %vm2690_vm5, %v5507_v4 }
 0x90e   :  { %5221 = vmatmul.msk.bf16.vlgmr.msrb.gmra.mxu0 %vm2690_vm5, %v5512_v18 }
 0x913   :  { %v2718_v34 = vpop.f32.mrf.mxu0 }
 0x916   :  { %5139 = vmatmul.msk.bf16.gmra.mxu1 %vm2690_vm5, %v5502_v62  ;;  %5196 = vmatmul.msk.bf16.gmra.mxu3 %vm2690_vm5, %v5511_v38 }
 0x91b   :  { %v2721_v13 = vpop.f32.mrf.mxu0 }
 0x91e   :  { %5222 = vmatmul.msk.bf16.gmra.mxu0 %vm2690_vm5, %v5513_v63 }
 0x91f   :  { %v2871_v46 = vpop.f32.mrf.mxu2 }
 0x923   :  { %v7324_v57 = vpop.f32.mrf.mxu0 }
 0x926   :  { %5140 = vmatmul.msk.bf16.gmra.mxu1 %vm2690_vm5, %v5503_v15 }
 0x927   :  { %v2873_v20 = vpop.f32.mrf.mxu2 }
 0x929   :  { %v2970_v53 = vpop.f32.mrf.mxu3 }
 0x92b   :  { %v7330_v8 = vpop.f32.mrf.mxu0 }
 0x92e   :  { %5223 = vmatmul.msk.bf16.gmra.mxu0 %vm2690_vm5, %v5514_v59 }
 0x92f   :  { %v2876_v42 = vpop.f32.mrf.mxu2 }
 0x931   :  { %v2972_v5 = vpop.f32.mrf.mxu3 }
 0x933   :  { %v7333_v58 = vpop.f32.mrf.mxu0  ;;  %v2780_v22 = vpop.f32.mrf.mxu1 }
 0x934   :  { %v2781_v35 = vadd.f32 %v2780_v22, %v2716_v21 }
 0x936   :  { %v2891_v54 = vadd.f32 %v2871_v46, %v2781_v35 }
 0x937   :  { %v2878_v32 = vpop.f32.mrf.mxu2 }
 0x938   :  { %v2990_v44 = vadd.f32 %v2970_v53, %v2891_v54 }
 0x939   :  { %v2975_v2 = vpop.f32.mrf.mxu3 }
 0x93b   :  { %v7338_v10 = vpop.f32.mrf.mxu0  ;;  %v2782_v28 = vpop.f32.mrf.mxu1 }
 0x93c   :  { %v2783_v60 = vadd.f32 %v2782_v28, %v2718_v34 }
 0x93e   :  { %5224 = vmatmul.msk.bf16.gmra.mxu0 %vm2690_vm5, %v5515_v37  ;;  %v2892_v52 = vadd.f32 %v2873_v20, %v2783_v60 }
 0x93f   :  { %v7343_v16 = vpop.f32.mrf.mxu2 }
 0x940   :  { %v2991_v61 = vadd.f32 %v2972_v5, %v2892_v52 }
 0x941   :  { %v2977_v17 = vpop.f32.mrf.mxu3 }
 0x943   :  { %v7341_v48 = vpop.f32.mrf.mxu0  ;;  %v2785_v19 = vpop.f32.mrf.mxu1 }
 0x944   :  { %v2786_v4 = vadd.f32 %v2785_v19, %v2721_v13 }
 0x946   :  { %v2893_v38 = vadd.f32 %v2876_v42, %v2786_v4 }
 0x947   :  { %v7347_v23 = vpop.f32.mrf.mxu2 }
 0x948   :  { %v2992_v53 = vadd.f32 %v2975_v2, %v2893_v38 }
 0x949   :  { %v7345_v1 = vpop.f32.mrf.mxu3 }
 0x94b   :  { %v2787_v7 = vpop.f32.mrf.mxu1  ;;  %v3054_v3 = vpop.f32.mrf.mxu0 }
 0x94c   :  { %v3074_v55 = vadd.f32 %v3054_v3, %v2990_v44  ;;  %v2788_v20 = vadd.f32 %v2787_v7, %v7324_v57 }
 0x94e   :  { %v2894_v5 = vadd.f32 %v2878_v32, %v2788_v20 }
 0x94f   :  { %v7353_v27 = vpop.f32.mrf.mxu2 }
 0x951   :  { %v7349_v56 = vpop.f32.mrf.mxu3 }
 0x953   :  { %v2790_v43 = vpop.f32.mrf.mxu1  ;;  %v3056_v39 = vpop.f32.mrf.mxu0 }
 0x954   :  { %v3075_v62 = vadd.f32 %v3056_v39, %v2991_v61  ;;  %v2791_v2 = vadd.f32 %v2790_v43, %v7330_v8 }
 0x956   :  { %v2895_v32 = vadd.f32 %v7343_v16, %v2791_v2 }
 0x957   :  { %v7359_v31 = vpop.f32.mrf.mxu2 }
 0x958   :  { %v2994_v8 = vadd.f32 %v7345_v1, %v2895_v32  ;;  %v7433_v32 = vpop.permute.xlu2 %3682 }
 0x959   :  { %v7357_v12 = vpop.f32.mrf.mxu3 }
 0x95b   :  { %v7351_v40 = vpop.f32.mrf.mxu1  ;;  %v3059_v9 = vpop.f32.mrf.mxu0 }
 0x95c   :  { %v3076_v28 = vadd.f32 %v3059_v9, %v2992_v53  ;;  %v2793_v43 = vadd.f32 %v7351_v40, %v7333_v58 }
 0x95f   :  { %v3252_v24 = vpop.f32.mrf.mxu2 }
 0x961   :  { %v7365_v45 = vpop.f32.mrf.mxu3 }
 0x963   :  { %v7355_v49 = vpop.f32.mrf.mxu1  ;;  %v3061_v41 = vpop.f32.mrf.mxu0 }
 0x964   :  { %v2796_v40 = vadd.f32 %v7355_v49, %v7338_v10 }
 0x967   :  { %v3254_v33 = vpop.f32.mrf.mxu2 }
 0x969   :  { %v3351_v6 = vpop.f32.mrf.mxu3 }
 0x96b   :  { %v7361_v14 = vpop.f32.mrf.mxu1  ;;  %v7363_v25 = vpop.f32.mrf.mxu0 }
 0x96c   :  { %v3078_v16 = vadd.f32 %v7363_v25, %v2994_v8  ;;  %v2798_v49 = vadd.f32 %v7361_v14, %v7341_v48 }
 0x96e   :  { %v2898_v53 = vadd.f32 %v7359_v31, %v2798_v49 }
 0x96f   :  { %v3257_v21 = vpop.f32.mrf.mxu2 }
 0x970   :  { %v2997_v48 = vadd.f32 %v7365_v45, %v2898_v53 }
 0x971   :  { %v3353_v0 = vpop.f32.mrf.mxu3 }
 0x973   :  { %v7367_v11 = vpop.f32.mrf.mxu0  ;;  %v3153_v26 = vpop.f32.mrf.mxu1 }
 0x974   :  { %v3173_v36 = vadd.f32 %v3153_v26, %v3074_v55  ;;  %v2896_v55 = vadd.f32 %v7347_v23, %v2793_v43 }
 0x976   :  { %v3272_v18 = vadd.f32 %v3252_v24, %v3173_v36  ;;  %v2993_v24 = vadd.f32 %v2977_v17, %v2894_v5  ;;  %v2995_v58 = vadd.f32 %v7349_v56, %v2896_v55 }
 0x977   :  { %v3259_v3 = vpop.f32.mrf.mxu2 }
 0x978   :  { %v3371_v63 = vadd.f32 %v3351_v6, %v3272_v18  ;;  %v3077_v7 = vadd.f32 %v3061_v41, %v2993_v24  ;;  %v3079_v23 = vadd.f32 %v7367_v11, %v2995_v58  ;;  %v2897_v18 = vadd.f32 %v7353_v27, %v2796_v40 }
 0x979   :  { %v3356_v34 = vpop.f32.mrf.mxu3 }
 0x97a   :  { %v2996_v10 = vadd.f32 %v7357_v12, %v2897_v18 }
 0x97b   :  { %v7369_v47 = vpop.f32.mrf.mxu0  ;;  %v3155_v51 = vpop.f32.mrf.mxu1 }
 0x97c   :  { %v3174_v15 = vadd.f32 %v3155_v51, %v3075_v62  ;;  %v3080_v27 = vadd.f32 %v7369_v47, %v2996_v10 }
 0x97e   :  { %v3273_v22 = vadd.f32 %v3254_v33, %v3174_v15 }
 0x97f   :  { %v3262_v17 = vpop.f32.mrf.mxu2 }
 0x980   :  { %v3372_v13 = vadd.f32 %v3353_v0, %v3273_v22 }
 0x981   :  { %v3358_v57 = vpop.f32.mrf.mxu3 }
 0x983   :  { %v7371_v50 = vpop.f32.mrf.mxu0  ;;  %v3158_v29 = vpop.f32.mrf.mxu1 }
 0x984   :  { %v3175_v19 = vadd.f32 %v3158_v29, %v3076_v28  ;;  %v3081_v31 = vadd.f32 %v7371_v50, %v2997_v48 }
 0x986   :  { %v3274_v35 = vadd.f32 %v3257_v21, %v3175_v19 }
 0x987   :  { %v3264_v25 = vpop.f32.mrf.mxu2 }
 0x988   :  { %v3373_v6 = vadd.f32 %v3356_v34, %v3274_v35 }
 0x989   :  { %v3361_v41 = vpop.f32.mrf.mxu3 }
 0x98b   :  { %v3450_v46 = vpop.f32.mrf.mxu0  ;;  %v3160_v37 = vpop.f32.mrf.mxu1 }
 0x98c   :  { %v7373_v59 = vadd.f32 %v3450_v46, %v3371_v63  ;;  %v3176_v54 = vadd.f32 %v3160_v37, %v3077_v7 }
 0x98e   :  { %3478 = vadd.xlane.f32.xlu1 %v7373_v59  ;;  %v3494_v26 = vmul.f32 %v7373_v59, %v7373_v59  ;;  %v3275_v33 = vadd.f32 %v3259_v3, %v3176_v54  ;;  %v7437_v54 = vpop.permute.xlu0 %3687 }
 0x98f   :  { %v3267_v11 = vpop.f32.mrf.mxu2 }
 0x990   :  { %v3374_v52 = vadd.f32 %v3358_v57, %v3275_v33 }
 0x991   :  { %v3363_v38 = vpop.f32.mrf.mxu3 }
 0x993   :  { %v3452_v39 = vpop.f32.mrf.mxu0  ;;  %v3163_v9 = vpop.f32.mrf.mxu1 }
 0x994   :  { %v7377_v42 = vadd.f32 %v3452_v39, %v3372_v13  ;;  %v3177_v36 = vadd.f32 %v3163_v9, %v3078_v16 }
 0x996   :  { %3502 = vadd.xlane.f32.xlu1 %v3494_v26  ;;  %3480 = vadd.xlane.f32.xlu2 %v7377_v42  ;;  %v3495_v60 = vmul.f32 %v7377_v42, %v7377_v42  ;;  %v3276_v4 = vadd.f32 %v3262_v17, %v3177_v36  ;;  %v7443_v17 = vpop.permute.xlu0 %3672 }
 0x997   :  { %v3269_v39 = vpop.f32.mrf.mxu2 }
 0x998   :  { %v3375_v62 = vadd.f32 %v3361_v41, %v3276_v4 }
 0x999   :  { %v3366_v5 = vpop.f32.mrf.mxu3 }
 0x99b   :  { %v3455_v51 = vpop.f32.mrf.mxu0  ;;  %v3165_v0 = vpop.f32.mrf.mxu1 }
 0x99c   :  { %v7384_v44 = vadd.f32 %v3455_v51, %v3373_v6  ;;  %v3178_v21 = vadd.f32 %v3165_v0, %v3079_v23  ;;  %v7435_v6 = vpop.permute.xlu1 %3677  ;;  %v7439_v51 = vpop.permute.xlu2 %3667 }
 0x99e   :  { %3504 = vadd.xlane.f32.xlu2 %v3495_v60  ;;  %3482 = vadd.xlane.f32.xlu0 %v7384_v44  ;;  %v3496_v1 = vmul.f32 %v7384_v44, %v7384_v44  ;;  %v3277_v34 = vadd.f32 %v3264_v25, %v3178_v21  ;;  %v7447_v33 = vpop.permute.xlu0 %3657 }
 0x9a0   :  { %v3376_v20 = vadd.f32 %v3363_v38, %v3277_v34 }
 0x9a1   :  { %v3368_v35 = vpop.f32.mrf.mxu3 }
 0x9a3   :  { %v3457_v29 = vpop.f32.mrf.mxu0  ;;  %v3168_v46 = vpop.f32.mrf.mxu1 }
 0x9a4   :  { %v7394_v61 = vadd.f32 %v3457_v29, %v3374_v52  ;;  %v3179_v22 = vadd.f32 %v3168_v46, %v3080_v27  ;;  %v7441_v60 = vpop.permute.xlu1 %3662  ;;  %v7445_v8 = vpop.permute.xlu2 %3652 }
 0x9a6   :  { %3506 = vadd.xlane.f32.xlu0 %v3496_v1  ;;  %3484 = vadd.xlane.f32.xlu1 %v7394_v61  ;;  %v3497_v56 = vmul.f32 %v7394_v61, %v7394_v61  ;;  %v3278_v14 = vadd.f32 %v3267_v11, %v3179_v22 }
 0x9a8   :  { %v3377_v19 = vadd.f32 %v3366_v5, %v3278_v14 }
 0x9ab   :  { %v3460_v63 = vpop.f32.mrf.mxu0  ;;  %v3170_v13 = vpop.f32.mrf.mxu1 }
 0x9ac   :  { %v7404_v15 = vadd.f32 %v3460_v63, %v3375_v62  ;;  %v3180_v3 = vadd.f32 %v3170_v13, %v3081_v31 }
 0x9ae   :  { %3508 = vadd.xlane.f32.xlu1 %v3497_v56  ;;  %3486 = vadd.xlane.f32.xlu2 %v7404_v15  ;;  %v3498_v12 = vmul.f32 %v7404_v15, %v7404_v15  ;;  %v3279_v2 = vadd.f32 %v3269_v39, %v3180_v3 }
 0x9b0   :  { %v3378_v57 = vadd.f32 %v3368_v35, %v3279_v2 }
 0x9b3   :  { %v3462_v37 = vpop.f32.mrf.mxu0 }
 0x9b4   :  { %v7414_v28 = vadd.f32 %v3462_v37, %v3376_v20 }
 0x9b6   :  { %3510 = vadd.xlane.f32.xlu1 %v3498_v12  ;;  %3488 = vadd.xlane.f32.xlu0 %v7414_v28  ;;  %v3499_v47 = vmul.f32 %v7414_v28, %v7414_v28 }
 0x9b8   :  { %3512 = vadd.xlane.f32.xlu2 %v3499_v47 }
 0x9bb   :  { %v3465_v26 = vpop.f32.mrf.mxu0 }
 0x9bc   :  { %v7423_v24 = vadd.f32 %v3465_v26, %v3377_v19 }
 0x9be   :  { %v3500_v45 = vmul.f32 %v7423_v24, %v7423_v24 }
 0x9c0   :  { %3490 = vadd.xlane.f32.xlu2 %v7423_v24  ;;  %3514 = vadd.xlane.f32.xlu0 %v3500_v45 }
 0x9c3   :  { %v3467_v7 = vpop.f32.mrf.mxu0 }
 0x9c4   :  { %v7428_v9 = vadd.f32 %v3467_v7, %v3378_v57  ;;  %v3544_v7 = vld [vmem:[%s7910_s13 + $0x30] sm:$0xff] }
 0x9c6   :  { %v3501_v50 = vmul.f32 %v7428_v9, %v7428_v9 }
 0x9c8   :  { %3492 = vadd.xlane.f32.xlu0 %v7428_v9  ;;  %3516 = vadd.xlane.f32.xlu1 %v3501_v50 }
 0xa01   :  { %v3479_v43 = vpop.xlane.xlu1 %3478 }
 0xa09   :  { %v3481_v16 = vpop.xlane.xlu2 %3480  ;;  %v3503_v41 = vpop.xlane.xlu1 %3502 }
 0xa11   :  { %v3483_v55 = vpop.xlane.xlu0 %3482  ;;  %v3505_v52 = vpop.xlane.xlu2 %3504 }
 0xa12   :  { %v3518_v25 = vadd.f32 %v3483_v55, %v3479_v43  ;;  %v3538_v43 = vld [vmem:[%s7910_s13] sm:$0xff] }
 0xa19   :  { %v3485_v36 = vpop.xlane.xlu1 %3484  ;;  %v3507_v0 = vpop.xlane.xlu0 %3506 }
 0xa1a   :  { %v3520_v23 = vadd.f32 %v3507_v0, %v3503_v41  ;;  %v3519_v10 = vadd.f32 %v3485_v36, %v3481_v16 }
 0xa21   :  { %v3487_v29 = vpop.xlane.xlu2 %3486  ;;  %v3509_v1 = vpop.xlane.xlu1 %3508 }
 0xa22   :  { %v3522_v18 = vadd.f32 %v3518_v25, %v3487_v29  ;;  %v3521_v49 = vadd.f32 %v3509_v1, %v3505_v52 }
 0xa29   :  { %v3489_v58 = vpop.xlane.xlu0 %3488  ;;  %v3511_v4 = vpop.xlane.xlu1 %3510 }
 0xa2a   :  { %v3524_v62 = vadd.f32 %v3520_v23, %v3511_v4  ;;  %v3523_v11 = vadd.f32 %v3519_v10, %v3489_v58  ;;  %v3542_v58 = vld [vmem:[%s7910_s13 + $0x20] sm:$0xff]  ;;  %v3545_v4 = vld [vmem:[%s7910_s13 + $0x38] sm:$0xff] }
 0xa2b   :  { %v3513_v40 = vpop.xlane.xlu2 %3512 }
 0xa2c   :  { %v3525_v53 = vadd.f32 %v3521_v49, %v3513_v40  ;;  %v3543_v40 = vld [vmem:[%s7910_s13 + $0x28] sm:$0xff] }
 0xa33   :  { %v3515_v21 = vpop.xlane.xlu0 %3514  ;;  %v3491_v38 = vpop.xlane.xlu2 %3490 }
 0xa34   :  { %v3528_v63 = vadd.f32 %v3524_v62, %v3515_v21  ;;  %v3526_v56 = vadd.f32 %v3522_v18, %v3491_v38  ;;  %v3539_v21 = vld [vmem:[%s7910_s13 + $0x8] sm:$0xff]  ;;  %v3541_v38 = vld [vmem:[%s7910_s13 + $0x18] sm:$0xff] }
 0xa36   :  { %v3530_v46 = vmul.f32 %v3526_v56, %v6199_v30  ;;  %v3532_v34 = vmul.f32 %v3528_v63, %v6199_v30 }
 0xa38   :  { %v3534_v27 = vmul.f32 %v3530_v46, %v3530_v46  ;;  %3578 = vperm.xlu2 %5560, %v3530_v46  }
 0xa3a   :  { %v3536_v20 = vsub.f32 %v3532_v34, %v3534_v27 }
 0xa3b   :  { %v3493_v22 = vpop.xlane.xlu0 %3492  ;;  %v3517_v37 = vpop.xlane.xlu1 %3516 }
 0xa3c   :  { %v3546_v12 = vadd.f32 1e-05, %v3536_v20  ;;  %v3527_v5 = vadd.f32 %v3523_v11, %v3493_v22  ;;  %v3529_v48 = vadd.f32 %v3525_v53, %v3517_v37 }
 0xa3e   :  { %5595 = vrsqrt.f32 %v3546_v12  ;;  %v3531_v14 = vmul.f32 %v3527_v5, %v6199_v30  ;;  %v3533_v13 = vmul.f32 %v3529_v48, %v6199_v30  ;;  %vm3554_vm7 = vweird.f32 %v3546_v12  ;;  %v3540_v30 = vld [vmem:[%s7910_s13 + $0x10] sm:$0xff] }
 0xa40   :  { %v3535_v47 = vmul.f32 %v3531_v14, %v3531_v14  ;;  %3583 = vperm.xlu0 %5562, %v3531_v14  }
 0xa42   :  { %v3537_v31 = vsub.f32 %v3533_v13, %v3535_v47 }
 0xa44   :  { %v5596_v19 = vpop.eup %5595  ;;  %v3547_v3 = vadd.f32 1e-05, %v3537_v31 }
 0xa45   :  { %v3549_v39 = vmul.f32 %v5596_v19, %v3546_v12  ;;  %vm3555_vm6 = vweird.f32 %v5596_v19 }
 0xa46   :  { %5597 = vrsqrt.f32 %v3547_v3  ;;  %vm3556_vm9 = vmor %vm3554_vm7, %vm3555_vm6  ;;  %vm3564_vm11 = vweird.f32 %v3547_v3 }
 0xa47   :  { %v3550_v26 = vmul.f32 %v5596_v19, %v3549_v39 }
 0xa49   :  { %v3551_v2 = vmul.f32 0.5, %v3550_v26 }
 0xa4b   :  { %v3552_v45 = vsub.f32 1.5, %v3551_v2 }
 0xa4c   :  { %v5598_v35 = vpop.eup %5597 }
 0xa4d   :  { %v3559_v57 = vmul.f32 %v5598_v35, %v3547_v3  ;;  %v3553_v50 = vmul.f32 %v5596_v19, %v3552_v45  ;;  %vm3565_vm10 = vweird.f32 %v5598_v35 }
 0xa4e   :  { %vm3566_vm12 = vmor %vm3564_vm11, %vm3565_vm10 }
 0xa4f   :  { %v3560_v16 = vmul.f32 %v5598_v35, %v3559_v57  ;;  %v3557_v41 = vsel %vm3556_vm9, %v5596_v19, %v3553_v50 }
 0xa50   :  { %v3574_v55 = vmul.f32 %v3557_v41, %v3544_v7  ;;  %v3570_v52 = vmul.f32 %v3557_v41, %v3540_v30  ;;  %v3568_v36 = vmul.f32 %v3557_v41, %v3538_v43  ;;  %v3572_v23 = vmul.f32 %v3557_v41, %v3542_v58  ;;  %v5627_v58 = vld [vmem:[%s7897_s2] ss:$0 sm:$0xff] }
 0xa51   :  { %v3561_v0 = vmul.f32 0.5, %v3560_v16 }
 0xa52   :  { %3626 = vperm.xlu1 %5561, %v3574_v55   ;;  %3606 = vperm.xlu2 %5560, %v3570_v52  }
 0xa53   :  { %v3562_v29 = vsub.f32 1.5, %v3561_v0  ;;  %3596 = vperm.xlu0 %5562, %v3568_v36  }
 0xa55   :  { %v3563_v1 = vmul.f32 %v5598_v35, %v3562_v29 }
 0xa57   :  { %v3567_v25 = vsel %vm3566_vm12, %v5598_v35, %v3563_v1 }
 0xa58   :  { %v3573_v18 = vmul.f32 %v3567_v25, %v3543_v40  ;;  %v3575_v62 = vmul.f32 %v3567_v25, %v3545_v4  ;;  %v3569_v63 = vmul.f32 %v3567_v25, %v3539_v21  ;;  %v3571_v56 = vmul.f32 %v3567_v25, %v3541_v38 }
 0xa5a   :  { %3616 = vperm.xlu1 %5561, %v3572_v23   ;;  %3621 = vperm.xlu2 %5560, %v3573_v18  }
 0xa5b   :  { %3631 = vperm.xlu0 %5562, %v3575_v62  }
 0xa62   :  { %3601 = vperm.xlu1 %5561, %v3569_v63  }
 0xa63   :  { %3611 = vperm.xlu0 %5562, %v3571_v56  }
 0xa92   :  { %v3579_v46 = vpop.permute.xlu2 %3578 }
 0xa93   :  { %v3592_v49 = vsub.f32 %v7423_v24, %v3579_v46  ;;  %v3588_v53 = vsub.f32 %v7384_v44, %v3579_v46  ;;  %v3586_v37 = vsub.f32 %v7373_v59, %v3579_v46  ;;  %v3590_v24 = vsub.f32 %v7404_v15, %v3579_v46 }
 0xaac   :  { %v3607_v11 = vpop.permute.xlu2 %3606 }
 0xaad   :  { %v3636_v12 = vmul.f32 %v3607_v11, %v3588_v53 }
 0xaaf   :  { %v3692_v44 = vadd.f32 %v7441_v60, %v3636_v12 }
 0xab1   :  { %v7491_v13 = vmax.f32 %v3692_v44, 0.0 }
 0xab2   :  { %v3584_v10 = vpop.permute.xlu0 %3583 }
 0xab3   :  { %v3593_v60 = vsub.f32 %v7428_v9, %v3584_v10  ;;  %v3589_v2 = vsub.f32 %v7394_v61, %v3584_v10  ;;  %v3587_v50 = vsub.f32 %v7377_v42, %v3584_v10 }
 0xab4   :  { %v3622_v3 = vpop.permute.xlu2 %3621 }
 0xac4   :  { %v3627_v34 = vpop.permute.xlu1 %3626 }
 0xac5   :  { %v3640_v27 = vmul.f32 %v3627_v34, %v3592_v49  ;;  %v3597_v22 = vpop.permute.xlu0 %3596 }
 0xac6   :  { %v3634_v48 = vmul.f32 %v3597_v22, %v3586_v37 }
 0xac7   :  { %v3696_v20 = vadd.f32 %v7433_v32, %v3640_v27 }
 0xac8   :  { %v3690_v32 = vadd.f32 %v7445_v8, %v3634_v48  ;;  %v3591_v8 = vsub.f32 %v7414_v28, %v3584_v10 }
 0xac9   :  { %v7481_v5 = vmax.f32 %v3696_v20, 0.0 }
 0xaca   :  { %v7495_v19 = vmax.f32 %v3690_v32, 0.0  ;;  %v3639_v45 = vmul.f32 %v3622_v3, %v3591_v8 }
 0xacb   :  { %3718 = vrot.lane.b32.xlu1 %v7481_v5, %s5636_s20  ;;  %3752 = vrot.lane.b32.xlu2 %v7481_v5, %s5635_s26 }
 0xacc   :  { %v3617_v14 = vpop.permute.xlu1 %3616  ;;  %v3695_v28 = vadd.f32 %v7435_v6, %v3639_v45 }
 0xacd   :  { %v3638_v47 = vmul.f32 %v3617_v14, %v3590_v24  ;;  %v3632_v15 = vpop.permute.xlu0 %3631  ;;  %v5628_v14 = vld [vmem:[%s7897_s2 + $0x1] ss:$0 sm:$0xff] }
 0xace   :  { %v7535_v57 = vmax.f32 %v3695_v28, 0.0 }
 0xacf   :  { %v3694_v59 = vadd.f32 %v7443_v17, %v3638_v47  ;;  %v3641_v17 = vmul.f32 %v3632_v15, %v3593_v60 }
 0xad1   :  { %v7493_v31 = vmax.f32 %v3694_v59, 0.0  ;;  %v3697_v39 = vadd.f32 %v7437_v54, %v3641_v17 }
 0xad3   :  { %3710 = vrot.lane.b32.xlu1 %v7491_v13, %s5636_s20  ;;  %3714 = vrot.lane.b32.xlu0 %v7493_v31, %s5636_s20  ;;  %v7525_v9 = vmax.f32 %v3697_v39, 0.0 }
 0xad4   :  { %3706 = vrot.lane.b32.xlu2 %v7495_v19, %s5636_s20  ;;  %v3602_v7 = vpop.permute.xlu1 %3601 }
 0xad5   :  { %v3612_v26 = vpop.permute.xlu0 %3611  ;;  %v3635_v30 = vmul.f32 %v3602_v7, %v3587_v50  ;;  %v4052_v7 = vpack.c.bf16 %v7525_v9, %v7481_v5  ;;  %v5516_v50 = vld [vmem:[%s7911_s15] sm:$0xff] }
 0xad6   :  { %v3637_v35 = vmul.f32 %v3612_v26, %v3589_v2 }
 0xad7   :  { %v3691_v6 = vadd.f32 %v7447_v33, %v3635_v30 }
 0xad8   :  { %v3693_v54 = vadd.f32 %v7439_v51, %v3637_v35 }
 0xad9   :  { %v7553_v51 = vmax.f32 %v3691_v6, 0.0 }
 0xada   :  { %v7537_v61 = vmax.f32 %v3693_v54, 0.0 }
 0xadb   :  { %3744 = vrot.lane.b32.xlu1 %v7491_v13, %s5635_s26  ;;  %3748 = vrot.lane.b32.xlu0 %v7493_v31, %s5635_s26 }
 0xadc   :  { %3883 = vrot.lane.b32.xlu2 %v7481_v5, %s5637_s21 }
 0xae3   :  { %3879 = vrot.lane.b32.xlu1 %v7493_v31, %s5637_s21  ;;  %3740 = vrot.lane.b32.xlu0 %v7495_v19, %s5635_s26 }
 0xae4   :  { %3972 = vrot.lane.b32.xlu2 %v7481_v5, %s5638_s22 }
 0xaeb   :  { %3871 = vrot.lane.b32.xlu1 %v7495_v19, %s5637_s21  ;;  %3875 = vrot.lane.b32.xlu0 %v7491_v13, %s5637_s21 }
 0xaec   :  { %3964 = vrot.lane.b32.xlu2 %v7491_v13, %s5638_s22 }
 0xaf3   :  { %3960 = vrot.lane.b32.xlu1 %v7495_v19, %s5638_s22  ;;  %3968 = vrot.lane.b32.xlu0 %v7493_v31, %s5638_s22 }
 0xaf4   :  { %3720 = vrot.lane.b32.xlu2 %v7525_v9, %s5636_s20 }
 0xafb   :  { %3716 = vrot.lane.b32.xlu1 %v7535_v57, %s5636_s20  ;;  %4126 = vrot.lane.b32.xlu0 %v7481_v5, %s5641_s25 }
 0xafc   :  { %3712 = vrot.lane.b32.xlu2 %v7537_v61, %s5636_s20 }
 0xb03   :  { %3750 = vrot.lane.b32.xlu1 %v7535_v57, %s5635_s26  ;;  %3754 = vrot.lane.b32.xlu0 %v7525_v9, %s5635_s26 }
 0xb04   :  { %3746 = vrot.lane.b32.xlu2 %v7537_v61, %s5635_s26 }
 0xb0b   :  { %4393 = vrot.lane.b32.xlu1 %v7481_v5, %s5642_s27  ;;  %3708 = vrot.lane.b32.xlu0 %v7553_v51, %s5636_s20 }
 0xb0c   :  { %4122 = vrot.lane.b32.xlu2 %v7493_v31, %s5641_s25 }
 0xb13   :  { %3742 = vrot.lane.b32.xlu1 %v7553_v51, %s5635_s26  ;;  %4118 = vrot.lane.b32.xlu0 %v7491_v13, %s5641_s25 }
 0xb14   :  { %4215 = vrot.lane.b32.xlu2 %v7481_v5, %s5639_s23 }
 0xb1b   :  { %4304 = vrot.lane.b32.xlu1 %v7481_v5, %s7918_s4  ;;  %4389 = vrot.lane.b32.xlu0 %v7493_v31, %s5642_s27 }
 0xb1c   :  { %4114 = vrot.lane.b32.xlu2 %v7495_v19, %s5641_s25 }
 0xb23   :  { %4211 = vrot.lane.b32.xlu1 %v7493_v31, %s5639_s23  ;;  %4300 = vrot.lane.b32.xlu0 %v7493_v31, %s7918_s4 }
 0xb24   :  { %4385 = vrot.lane.b32.xlu2 %v7491_v13, %s5642_s27 }
 0xb25   :  { %v7579_v42 = vpop.permute.xlu2 %3752 }
 0xb26   :  { %v3762_v44 = vmul.f32 %v5628_v14, %v7579_v42  ;;  %v4051_v42 = vpack.c.bf16 %v7535_v57, %v7493_v31 }
 0xb2b   :  { %4207 = vrot.lane.b32.xlu1 %v7491_v13, %s5639_s23  ;;  %3885 = vrot.lane.b32.xlu0 %v7525_v9, %s5637_s21 }
 0xb2c   :  { %3881 = vrot.lane.b32.xlu2 %v7535_v57, %s5637_s21 }
 0xb2e   :  { %v7587_v33 = vpop.permute.xlu2 %3706 }
 0xb2f   :  { %v3722_v26 = vmul.f32 %v5627_v58, %v7587_v33 }
 0xb33   :  { %3974 = vrot.lane.b32.xlu0 %v7525_v9, %s5638_s22  ;;  %3877 = vrot.lane.b32.xlu1 %v7537_v61, %s5637_s21 }
 0xb34   :  { %3873 = vrot.lane.b32.xlu2 %v7553_v51, %s5637_s21 }
 0xb36   :  { %v7595_v43 = vpop.permute.xlu2 %3883 }
 0xb3b   :  { %3966 = vrot.lane.b32.xlu0 %v7537_v61, %s5638_s22  ;;  %3970 = vrot.lane.b32.xlu1 %v7535_v57, %s5638_s22 }
 0xb3c   :  { %3962 = vrot.lane.b32.xlu2 %v7553_v51, %s5638_s22 }
 0xb3d   :  { %v3719_v16 = vpop.permute.xlu1 %3718 }
 0xb3e   :  { %v7603_v41 = vpop.permute.xlu2 %3972  ;;  %v3728_v40 = vmul.f32 %v5627_v58, %v3719_v16 }
 0xb43   :  { %4296 = vrot.lane.b32.xlu0 %v7491_v13, %s7918_s4  ;;  %4203 = vrot.lane.b32.xlu1 %v7495_v19, %s5639_s23 }
 0xb44   :  { %4381 = vrot.lane.b32.xlu2 %v7495_v19, %s5642_s27 }
 0xb45   :  { %v3711_v55 = vpop.permute.xlu1 %3710  ;;  %v3715_v52 = vpop.permute.xlu0 %3714 }
 0xb46   :  { %v7611_v36 = vpop.permute.xlu2 %3964  ;;  %v3726_v27 = vmul.f32 %v5627_v58, %v3715_v52  ;;  %v3724_v37 = vmul.f32 %v5627_v58, %v3711_v55  ;;  %v5519_v52 = vld [vmem:[%s7911_s15 + $0x18] sm:$0xff] }
 0xb4b   :  { %4124 = vrot.lane.b32.xlu0 %v7535_v57, %s5641_s25  ;;  %4128 = vrot.lane.b32.xlu1 %v7525_v9, %s5641_s25 }
 0xb4c   :  { %4395 = vrot.lane.b32.xlu2 %v7525_v9, %s5642_s27 }
 0xb4d   :  { %v3745_v0 = vpop.permute.xlu1 %3744  ;;  %v3749_v29 = vpop.permute.xlu0 %3748 }
 0xb4e   :  { %v3721_v1 = vpop.permute.xlu2 %3720  ;;  %v3760_v60 = vmul.f32 %v5628_v14, %v3749_v29  ;;  %v3758_v2 = vmul.f32 %v5628_v14, %v3745_v0 }
 0xb4f   :  { %v3729_v4 = vmul.f32 %v5627_v58, %v3721_v1 }
 0xb51   :  { %v3733_v25 = vpack.c.bf16 %v3729_v4, %v3728_v40  ;;  %v5520_v40 = vld [vmem:[%s7911_s15 + $0x20] sm:$0xff] }
 0xb53   :  { %3851 = vmatpush.bf16.msrb.mxu2 %v3733_v25  ;;  %4217 = vrot.lane.b32.xlu0 %v7525_v9, %s5639_s23 }
 0xb54   :  { %4120 = vrot.lane.b32.xlu1 %v7537_v61, %s5641_s25  ;;  %4306 = vrot.lane.b32.xlu2 %v7525_v9, %s7918_s4  ;;  %v4050_v9 = vpack.c.bf16 %v7537_v61, %v7491_v13  ;;  %v5517_v13 = vld [vmem:[%s7911_s15 + $0x8] sm:$0xff] }
 0xb55   :  { %v7628_v23 = vpop.permute.xlu1 %3879  ;;  %v3741_v18 = vpop.permute.xlu0 %3740 }
 0xb56   :  { %v3713_v62 = vpop.permute.xlu2 %3712  ;;  %v3756_v33 = vmul.f32 %v5628_v14, %v3741_v18 }
 0xb57   :  { %v3725_v20 = vmul.f32 %v5627_v58, %v3713_v62 }
 0xb59   :  { %v3731_v12 = vpack.c.bf16 %v3725_v20, %v3724_v37 }
 0xb5b   :  { %4116 = vrot.lane.b32.xlu0 %v7553_v51, %s5641_s25 }
 0xb5c   :  { %4391 = vrot.lane.b32.xlu1 %v7535_v57, %s5642_s27  ;;  %4213 = vrot.lane.b32.xlu2 %v7535_v57, %s5639_s23 }
 0xb5d   :  { %v7636_v21 = vpop.permute.xlu1 %3871  ;;  %v7638_v38 = vpop.permute.xlu0 %3875 }
 0xb5e   :  { %v3747_v63 = vpop.permute.xlu2 %3746 }
 0xb5f   :  { %v3759_v17 = vmul.f32 %v5628_v14, %v3747_v63 }
 0xb61   :  { %v3765_v28 = vpack.c.bf16 %v3759_v17, %v3758_v2  ;;  %v5522_v2 = vld [vmem:[%s7911_s15 + $0x30] sm:$0xff] }
 0xb63   :  { %4387 = vrot.lane.b32.xlu0 %v7537_v61, %s5642_s27 }
 0xb64   :  { %4302 = vrot.lane.b32.xlu1 %v7535_v57, %s7918_s4  ;;  %4209 = vrot.lane.b32.xlu2 %v7537_v61, %s5639_s23  ;;  %v4049_v57 = vpack.c.bf16 %v7553_v51, %v7495_v19 }
 0xb65   :  { %v7646_v56 = vpop.permute.xlu1 %3960  ;;  %v7648_v46 = vpop.permute.xlu0 %3968 }
 0xb66   :  { %v7650_v10 = vpop.permute.xlu2 %4122 }
 0xb6b   :  { %4383 = vrot.lane.b32.xlu0 %v7553_v51, %s5642_s27 }
 0xb6c   :  { %4298 = vrot.lane.b32.xlu1 %v7537_v61, %s7918_s4  ;;  %4205 = vrot.lane.b32.xlu2 %v7553_v51, %s5639_s23 }
 0xb6d   :  { %v3717_v49 = vpop.permute.xlu1 %3716  ;;  %v7658_v34 = vpop.permute.xlu0 %4126 }
 0xb6e   :  { %v3727_v11 = vmul.f32 %v5627_v58, %v3717_v49  ;;  %v7660_v53 = vpop.permute.xlu2 %4215 }
 0xb70   :  { %v3732_v22 = vpack.c.bf16 %v3727_v11, %v3726_v27  ;;  %v5518_v27 = vld [vmem:[%s7911_s15 + $0x10] sm:$0xff] }
 0xb72   :  { %3852 = vmatpush.bf16.msrb.mxu2 %v3732_v22 }
 0xb73   :  { %4292 = vrot.lane.b32.xlu0 %v7495_v19, %s7918_s4 }
 0xb74   :  { %4294 = vrot.lane.b32.xlu1 %v7553_v51, %s7918_s4  ;;  %v5629_v51 = vld [vmem:[%s7897_s2 + $0x2] ss:$0 sm:$0xff] }
 0xb75   :  { %v3751_v48 = vpop.permute.xlu1 %3750  ;;  %v3755_v24 = vpop.permute.xlu0 %3754  ;;  %v3893_v25 = vmul.f32 %v5629_v51, %v7595_v43  ;;  %v3891_v11 = vmul.f32 %v5629_v51, %v7628_v23  ;;  %v5630_v43 = vld [vmem:[%s7897_s2 + $0x3] ss:$0 sm:$0xff]  ;;  %v7732_v23 = vld [vmem:[%s7897_s2 + $0x8] ss:$0 sm:$0xff] }
 0xb76   :  { %v7670_v47 = vpop.permute.xlu2 %4114  ;;  %v3763_v32 = vmul.f32 %v5628_v14, %v3755_v24  ;;  %3853 = vmatpush.bf16.msrb.mxu2 %v3731_v12  ;;  %v3761_v59 = vmul.f32 %v5628_v14, %v3751_v48  ;;  %v3982_v12 = vmul.f32 %v5630_v43, %v7603_v41  ;;  %v3889_v48 = vmul.f32 %v5629_v51, %v7638_v38  ;;  %v5521_v38 = vld [vmem:[%s7911_s15 + $0x28] sm:$0xff] }
 0xb78   :  { %v3767_v15 = vpack.c.bf16 %v3763_v32, %v3762_v44  ;;  %v3766_v8 = vpack.c.bf16 %v3761_v59, %v3760_v60 }
 0xb7a   :  { %3803 = vmatpush.bf16.msrb.mxu1 %v3767_v15 }
 0xb7d   :  { %v7672_v3 = vpop.permute.xlu1 %4393  ;;  %v3709_v39 = vpop.permute.xlu0 %3708 }
 0xb7e   :  { %v7675_v45 = vpop.permute.xlu2 %4385  ;;  %v3723_v35 = vmul.f32 %v5627_v58, %v3709_v39  ;;  %3804 = vmatpush.bf16.msrb.mxu1 %v3766_v8  ;;  %v4403_v32 = vmul.f32 %v7732_v23, %v7672_v3  ;;  %v3887_v8 = vmul.f32 %v5629_v51, %v7636_v21  ;;  %v5528_v21 = vld [vmem:[%s7911_s15 + $0x60] sm:$0xff] }
 0xb80   :  { %v3730_v54 = vpack.c.bf16 %v3723_v35, %v3722_v26  ;;  %v3980_v35 = vmul.f32 %v5630_v43, %v7648_v46  ;;  %v7754_v46 = vld [vmem:[%s7897_s2 + $0x7] ss:$0 sm:$0xff] }
 0xb82   :  { %3805 = vmatpush.bf16.msrb.mxu1 %v3765_v28  ;;  %3854 = vmatpush.bf16.msrb.mxu2 %v3730_v54 }
 0xb85   :  { %v3743_v30 = vpop.permute.xlu1 %3742  ;;  %v7682_v6 = vpop.permute.xlu0 %4118  ;;  %5258 = vmatmul.msk.bf16.vlgmr.msrb.gmra.mxu2 %vm1266_vm8, %v5516_v50 }
 0xb86   :  { %4088 = vmatpush.bf16.msra.mxu2 %v4052_v7  ;;  %v3757_v16 = vmul.f32 %v5628_v14, %v3743_v30  ;;  %v3882_v55 = vpop.permute.xlu2 %3881  ;;  %v3978_v30 = vmul.f32 %v5630_v43, %v7611_v36 }
 0xb87   :  { %v3892_v63 = vmul.f32 %v5629_v51, %v3882_v55 }
 0xb88   :  { %v3764_v5 = vpack.c.bf16 %v3757_v16, %v3756_v33 }
 0xb89   :  { %v3897_v20 = vpack.c.bf16 %v3892_v63, %v3891_v11  ;;  %v5529_v63 = vld [vmem:[%s7911_s15 + $0x68] sm:$0xff] }
 0xb8a   :  { %4089 = vmatpush.bf16.msra.mxu2 %v4051_v42  ;;  %3806 = vmatpush.bf16.msrb.mxu1 %v3764_v5 }
 0xb8d   :  { %v7692_v0 = vpop.permute.xlu1 %4304  ;;  %5243 = vmatmul.msk.bf16.vlgmr.msrb.gmra.mxu1 %vm1266_vm8, %v5519_v52  ;;  %v7695_v31 = vpop.permute.xlu0 %4389 }
 0xb8e   :  { %4090 = vmatpush.bf16.msra.mxu2 %v4050_v9  ;;  %v3874_v29 = vpop.permute.xlu2 %3873  ;;  %v3976_v9 = vmul.f32 %v5630_v43, %v7646_v56  ;;  %v4314_v36 = vmul.f32 %v7754_v46, %v7692_v0  ;;  %v5523_v56 = vld [vmem:[%s7911_s15 + $0x38] sm:$0xff]  ;;  %v5633_v0 = vld [vmem:[%s7897_s2 + $0x5] ss:$0 sm:$0xff] }
 0xb8f   :  { %v3888_v15 = vmul.f32 %v5629_v51, %v3874_v29 }
 0xb91   :  { %v3895_v39 = vpack.c.bf16 %v3888_v15, %v3887_v8 }
 0xb92   :  { %4091 = vmatpush.bf16.msra.mxu2 %v4049_v57 }
 0xb95   :  { %v7702_v61 = vpop.permute.xlu1 %4211  ;;  %v7704_v1 = vpop.permute.xlu0 %4300  ;;  %5259 = vmatmul.msk.bf16.gmra.mxu2 %vm1266_vm8, %v5517_v13  ;;  %v5525_v13 = vld [vmem:[%s7911_s15 + $0x48] sm:$0xff] }
 0xb96   :  { %v3963_v58 = vpop.permute.xlu2 %3962 }
 0xb97   :  { %v3977_v42 = vmul.f32 %v5630_v43, %v3963_v58 }
 0xb99   :  { %v3984_v52 = vpack.c.bf16 %v3977_v42, %v3976_v9  ;;  %v5531_v9 = vld [vmem:[%s7911_s15 + $0x78] sm:$0xff] }
 0xb9d   :  { %v7710_v4 = vpop.permute.xlu1 %4207  ;;  %5244 = vmatmul.msk.bf16.gmra.mxu1 %vm1266_vm8, %v5520_v40  ;;  %v3886_v19 = vpop.permute.xlu0 %3885 }
 0xb9e   :  { %v7717_v18 = vpop.permute.xlu2 %4381  ;;  %v3894_v62 = vmul.f32 %v5629_v51, %v3886_v19  ;;  %v4136_v19 = vmul.f32 %v5633_v0, %v7658_v34  ;;  %v5634_v34 = vld [vmem:[%s7897_s2 + $0x6] ss:$0 sm:$0xff] }
 0xba0   :  { %v3898_v49 = vpack.c.bf16 %v3894_v62, %v3893_v25 }
 0xba2   :  { %3934 = vmatpush.bf16.msra.mxu3 %v3898_v49  ;;  %v4134_v49 = vmul.f32 %v5633_v0, %v7650_v10 }
 0xba5   :  { %v3878_v22 = vpop.permute.xlu1 %3877  ;;  %v3975_v37 = vpop.permute.xlu0 %3974  ;;  %5260 = vmatmul.msk.bf16.gmra.mxu2 %vm1266_vm8, %v5518_v27 }
 0xba6   :  { %v3890_v24 = vmul.f32 %v5629_v51, %v3878_v22  ;;  %v4396_v14 = vpop.permute.xlu2 %4395  ;;  %v3983_v44 = vmul.f32 %v5630_v43, %v3975_v37  ;;  %3935 = vmatpush.bf16.msra.mxu3 %v3897_v20  ;;  %v4225_v22 = vmul.f32 %v5634_v34, %v7660_v53 }
 0xba7   :  { %v4404_v59 = vmul.f32 %v7732_v23, %v4396_v14 }
 0xba8   :  { %v3896_v60 = vpack.c.bf16 %v3890_v24, %v3889_v48  ;;  %v3987_v17 = vpack.c.bf16 %v3983_v44, %v3982_v12  ;;  %v4132_v12 = vmul.f32 %v5633_v0, %v7682_v6  ;;  %v5526_v44 = vld [vmem:[%s7911_s15 + $0x50] sm:$0xff]  ;;  %v5524_v6 = vld [vmem:[%s7911_s15 + $0x40] sm:$0xff] }
 0xba9   :  { %v4408_v41 = vpack.c.bf16 %v4404_v59, %v4403_v32  ;;  %v4223_v32 = vmul.f32 %v5634_v34, %v7702_v61  ;;  %v4401_v61 = vmul.f32 %v7732_v23, %v7695_v31  ;;  %v5534_v31 = vld [vmem:[%s7911_s15 + $0x90] sm:$0xff] }
 0xbaa   :  { %3936 = vmatpush.bf16.msra.mxu3 %v3896_v60  ;;  %4023 = vmatpush.bf16.msra.mxu1 %v3987_v17  ;;  %v4130_v17 = vmul.f32 %v5633_v0, %v7670_v47  ;;  %v5530_v47 = vld [vmem:[%s7911_s15 + $0x70] sm:$0xff] }
 0xbab   :  { %4444 = vmatpush.bf16.msrb.mxu2 %v4408_v41  ;;  %v4221_v41 = vmul.f32 %v5634_v34, %v7710_v4 }
 0xbad   :  { %v3971_v26 = vpop.permute.xlu1 %3970  ;;  %5245 = vmatmul.msk.bf16.gmra.mxu1 %vm1266_vm8, %v5521_v38  ;;  %v3967_v3 = vpop.permute.xlu0 %3966 }
 0xbae   :  { %v3981_v28 = vmul.f32 %v5630_v43, %v3971_v26  ;;  %3937 = vmatpush.bf16.msra.mxu3 %v3895_v39  ;;  %v4307_v54 = vpop.permute.xlu2 %4306  ;;  %v3979_v50 = vmul.f32 %v5630_v43, %v3967_v3 }
 0xbaf   :  { %v4315_v16 = vmul.f32 %v7754_v46, %v4307_v54 }
 0xbb0   :  { %v3986_v7 = vpack.c.bf16 %v3981_v28, %v3980_v35  ;;  %v3985_v33 = vpack.c.bf16 %v3979_v50, %v3978_v30  ;;  %v4312_v30 = vmul.f32 %v7754_v46, %v7704_v1  ;;  %v4397_v1 = vmul.f32 %v7732_v23, %v7717_v18  ;;  %v5535_v18 = vld [vmem:[%s7911_s15 + $0x98] sm:$0xff] }
 0xbb1   :  { %5279 = vmatmul.msk.bf16.vlgmr.msra.gmra.mxu3 %vm1266_vm8, %v5522_v2  ;;  %v4319_v57 = vpack.c.bf16 %v4315_v16, %v4314_v36 }
 0xbb2   :  { %4024 = vmatpush.bf16.msra.mxu1 %v3986_v7  ;;  %v4399_v7 = vmul.f32 %v7732_v23, %v7675_v45 }
 0xbb5   :  { %v4204_v55 = vpop.permute.xlu1 %4203  ;;  %v7757_v5 = vpop.permute.xlu0 %4296  ;;  %5321 = vmatmul.msk.bf16.vlgmr.msra.gmra.mxu2 %vm1266_vm8, %v5528_v21 }
 0xbb6   :  { %4025 = vmatpush.bf16.msra.mxu1 %v3985_v33  ;;  %v4214_v29 = vpop.permute.xlu2 %4213  ;;  %v4219_v28 = vmul.f32 %v5634_v34, %v4204_v55  ;;  %v5527_v55 = vld [vmem:[%s7911_s15 + $0x58] sm:$0xff] }
 0xbb7   :  { %v4224_v24 = vmul.f32 %v5634_v34, %v4214_v29 }
 0xbb9   :  { %v4229_v59 = vpack.c.bf16 %v4224_v24, %v4223_v32 }
 0xbba   :  { %4026 = vmatpush.bf16.msra.mxu1 %v3984_v52 }
 0xbbd   :  { %v4129_v58 = vpop.permute.xlu1 %4128  ;;  %5300 = vmatmul.msk.bf16.vlgmr.msra.gmra.mxu1 %vm1266_vm8, %v5525_v13  ;;  %v4125_v40 = vpop.permute.xlu0 %4124 }
 0xbbe   :  { %4355 = vmatpush.bf16.msrb.mxu1 %v4319_v57  ;;  %v4137_v51 = vmul.f32 %v5633_v0, %v4129_v58  ;;  %v4135_v62 = vmul.f32 %v5633_v0, %v4125_v40  ;;  %v4210_v27 = vpop.permute.xlu2 %4209  ;;  %v4310_v57 = vmul.f32 %v7754_v46, %v7757_v5  ;;  %v5540_v40 = vld [vmem:[%s7911_s15 + $0xc0] sm:$0xff] }
 0xbbf   :  { %v4222_v15 = vmul.f32 %v5634_v34, %v4210_v27  ;;  %v5542_v27 = vld [vmem:[%s7911_s15 + $0xd0] sm:$0xff] }
 0xbc0   :  { %v4141_v25 = vpack.c.bf16 %v4137_v51, %v4136_v19  ;;  %v4140_v11 = vpack.c.bf16 %v4135_v62, %v4134_v49  ;;  %v5537_v51 = vld [vmem:[%s7911_s15 + $0xa8] sm:$0xff]  ;;  %v5536_v62 = vld [vmem:[%s7911_s15 + $0xa0] sm:$0xff] }
 0xbc1   :  { %5280 = vmatmul.msk.bf16.gmra.mxu3 %vm1266_vm8, %v5523_v56  ;;  %v4228_v26 = vpack.c.bf16 %v4222_v15, %v4221_v41  ;;  %v5533_v49 = vld [vmem:[%s7911_s15 + $0x88] sm:$0xff] }
 0xbc2   :  { %4177 = vmatpush.bf16.msrb.mxu3 %v4141_v25  ;;  %v5532_v25 = vld [vmem:[%s7911_s15 + $0x80] sm:$0xff] }
 0xbc5   :  { %v4218_v20 = vpop.permute.xlu0 %4217  ;;  %5322 = vmatmul.msk.bf16.gmra.mxu2 %vm1266_vm8, %v5529_v63  ;;  %v5538_v63 = vld [vmem:[%s7911_s15 + $0xb0] sm:$0xff] }
 0xbc6   :  { %v4121_v37 = vpop.permute.xlu1 %4120  ;;  %v4226_v43 = vmul.f32 %v5634_v34, %v4218_v20  ;;  %4178 = vmatpush.bf16.msrb.mxu3 %v4140_v11  ;;  %v4206_v53 = vpop.permute.xlu2 %4205 }
 0xbc7   :  { %v4133_v48 = vmul.f32 %v5633_v0, %v4121_v37  ;;  %v4220_v3 = vmul.f32 %v5634_v34, %v4206_v53  ;;  %v5539_v34 = vld [vmem:[%s7911_s15 + $0xb8] sm:$0xff] }
 0xbc8   :  { %v4230_v10 = vpack.c.bf16 %v4226_v43, %v4225_v22 }
 0xbc9   :  { %v4139_v14 = vpack.c.bf16 %v4133_v48, %v4132_v12  ;;  %v4227_v4 = vpack.c.bf16 %v4220_v3, %v4219_v28 }
 0xbca   :  { %4266 = vmatpush.bf16.msra.mxu0 %v4230_v10 }
 0xbcb   :  { %4179 = vmatpush.bf16.msrb.mxu3 %v4139_v14 }
 0xbcd   :  { %5301 = vmatmul.msk.bf16.gmra.mxu1 %vm1266_vm8, %v5526_v44  ;;  %v4117_v60 = vpop.permute.xlu0 %4116 }
 0xbce   :  { %v4392_v38 = vpop.permute.xlu1 %4391  ;;  %v4131_v8 = vmul.f32 %v5633_v0, %v4117_v60  ;;  %4267 = vmatpush.bf16.msra.mxu0 %v4229_v59 }
 0xbcf   :  { %v4402_v39 = vmul.f32 %v7732_v23, %v4392_v38 }
 0xbd0   :  { %v4138_v2 = vpack.c.bf16 %v4131_v8, %v4130_v17 }
 0xbd1   :  { %v4407_v35 = vpack.c.bf16 %v4402_v39, %v4401_v61  ;;  %5281 = vmatmul.msk.bf16.gmra.mxu3 %vm1266_vm8, %v5524_v6 }
 0xbd2   :  { %4180 = vmatpush.bf16.msrb.mxu3 %v4138_v2  ;;  %4268 = vmatpush.bf16.msra.mxu0 %v4228_v26 }
 0xbd3   :  { %4445 = vmatpush.bf16.msrb.mxu2 %v4407_v35 }
 0xbd5   :  { %v4388_v54 = vpop.permute.xlu0 %4387  ;;  %5323 = vmatmul.msk.bf16.gmra.mxu2 %vm1266_vm8, %v5530_v47 }
 0xbd6   :  { %v4303_v50 = vpop.permute.xlu1 %4302  ;;  %v4400_v21 = vmul.f32 %v7732_v23, %v4388_v54  ;;  %4269 = vmatpush.bf16.msra.mxu0 %v4227_v4 }
 0xbd7   :  { %v4313_v42 = vmul.f32 %v7754_v46, %v4303_v50 }
 0xbd8   :  { %v4406_v33 = vpack.c.bf16 %v4400_v21, %v4399_v7 }
 0xbd9   :  { %v4318_v16 = vpack.c.bf16 %v4313_v42, %v4312_v30  ;;  %5363 = vmatmul.msk.bf16.vlgmr.msra.gmra.mxu0 %vm1266_vm8, %v5534_v31 }
 0xbda   :  { %4446 = vmatpush.bf16.msrb.mxu2 %v4406_v33 }
 0xbdb   :  { %4356 = vmatpush.bf16.msrb.mxu1 %v4318_v16 }
 0xbdd   :  { %5302 = vmatmul.msk.bf16.gmra.mxu1 %vm1266_vm8, %v5527_v55  ;;  %v4384_v45 = vpop.permute.xlu0 %4383 }
 0xbde   :  { %v4299_v36 = vpop.permute.xlu1 %4298  ;;  %v4398_v52 = vmul.f32 %v7732_v23, %v4384_v45 }
 0xbdf   :  { %v4311_v29 = vmul.f32 %v7754_v46, %v4299_v36 }
 0xbe0   :  { %v4405_v13 = vpack.c.bf16 %v4398_v52, %v4397_v1 }
 0xbe1   :  { %v4317_v58 = vpack.c.bf16 %v4311_v29, %v4310_v57  ;;  %5342 = vmatmul.msk.bf16.vlgmr.msrb.gmra.mxu3 %vm1266_vm8, %v5531_v9 }
 0xbe2   :  { %4447 = vmatpush.bf16.msrb.mxu2 %v4405_v13 }
 0xbe3   :  { %4357 = vmatpush.bf16.msrb.mxu1 %v4317_v58 }
 0xbe5   :  { %v4293_v56 = vpop.permute.xlu0 %4292  ;;  %5405 = vmatmul.msk.bf16.vlgmr.msrb.gmra.mxu2 %vm1266_vm8, %v5540_v40 }
 0xbe6   :  { %v4295_v23 = vpop.permute.xlu1 %4294  ;;  %v4308_v5 = vmul.f32 %v7754_v46, %v4293_v56 }
 0xbe7   :  { %v4309_v0 = vmul.f32 %v7754_v46, %v4295_v23  ;;  %v5541_v46 = vld [vmem:[%s7911_s15 + $0xc8] sm:$0xff] }
 0xbe9   :  { %v4316_v19 = vpack.c.bf16 %v4309_v0, %v4308_v5  ;;  %5364 = vmatmul.msk.bf16.gmra.mxu0 %vm1266_vm8, %v5535_v18 }
 0xbeb   :  { %4358 = vmatpush.bf16.msrb.mxu1 %v4316_v19 }
 0xbee   :  { %5384 = vmatmul.msk.bf16.vlgmr.msrb.gmra.mxu1 %vm1266_vm8, %v5537_v51 }
 0xbf1   :  { %5343 = vmatmul.msk.bf16.gmra.mxu3 %vm1266_vm8, %v5532_v25 }
 0xbf5   :  { %5406 = vmatmul.msk.bf16.gmra.mxu2 %vm1266_vm8, %v5541_v46 }
 0xbf9   :  { %5365 = vmatmul.msk.bf16.gmra.mxu0 %vm1266_vm8, %v5536_v62 }
 0xbfe   :  { %5385 = vmatmul.msk.bf16.gmra.mxu1 %vm1266_vm8, %v5538_v63 }
 0xc01   :  { %5344 = vmatmul.msk.bf16.gmra.mxu3 %vm1266_vm8, %v5533_v49 }
 0xc05   :  { %5407 = vmatmul.msk.bf16.gmra.mxu2 %vm1266_vm8, %v5542_v27 }
 0xc08   :  { %v3856_v11 = vpop.f32.mrf.mxu2 }
 0xc0a   :  { %v3808_v20 = vpop.f32.mrf.mxu1 }
 0xc0b   :  { %v3857_v22 = vadd.f32 %v3856_v11, %v3808_v20 }
 0xc0e   :  { %5386 = vmatmul.msk.bf16.gmra.mxu1 %vm1266_vm8, %v5539_v34 }
 0xc10   :  { %v3858_v37 = vpop.f32.mrf.mxu2 }
 0xc12   :  { %v3810_v43 = vpop.f32.mrf.mxu1 }
 0xc13   :  { %v3859_v12 = vadd.f32 %v3858_v37, %v3810_v43 }
 0xc18   :  { %v3861_v48 = vpop.f32.mrf.mxu2 }
 0xc1a   :  { %v3813_v24 = vpop.f32.mrf.mxu1 }
 0xc1b   :  { %v3862_v10 = vadd.f32 %v3861_v48, %v3813_v24 }
 0xc20   :  { %v3863_v14 = vpop.f32.mrf.mxu2 }
 0xc22   :  { %v3815_v44 = vpop.f32.mrf.mxu1 }
 0xc23   :  { %v3864_v32 = vadd.f32 %v3863_v14, %v3815_v44 }
 0xc28   :  { %v3866_v59 = vpop.f32.mrf.mxu2 }
 0xc2a   :  { %v3818_v15 = vpop.f32.mrf.mxu1 }
 0xc2b   :  { %v7869_v53 = vadd.f32 %v3866_v59, %v3818_v15 }
 0xc30   :  { %v3868_v60 = vpop.f32.mrf.mxu2 }
 0xc32   :  { %v3820_v6 = vpop.f32.mrf.mxu1 }
 0xc33   :  { %v7871_v17 = vadd.f32 %v3868_v60, %v3820_v6 }
 0xc34   :  { %v3939_v41 = vpop.f32.mrf.mxu3 }
 0xc35   :  { %v3954_v21 = vadd.f32 %v3939_v41, %v3857_v22 }
 0xc38   :  { %v4093_v38 = vpop.f32.mrf.mxu2 }
 0xc3a   :  { %v4028_v8 = vpop.f32.mrf.mxu1 }
 0xc3b   :  { %v4043_v42 = vadd.f32 %v4028_v8, %v3954_v21 }
 0xc3c   :  { %v3941_v61 = vpop.f32.mrf.mxu3 }
 0xc3d   :  { %v4108_v55 = vadd.f32 %v4093_v38, %v4043_v42  ;;  %v3955_v9 = vadd.f32 %v3941_v61, %v3859_v12 }
 0xc40   :  { %v4095_v39 = vpop.f32.mrf.mxu2 }
 0xc42   :  { %v4030_v26 = vpop.f32.mrf.mxu1 }
 0xc43   :  { %v4044_v36 = vadd.f32 %v4030_v26, %v3955_v9 }
 0xc44   :  { %v3944_v3 = vpop.f32.mrf.mxu3 }
 0xc45   :  { %v4109_v58 = vadd.f32 %v4095_v39, %v4044_v36  ;;  %v3956_v18 = vadd.f32 %v3944_v3, %v3862_v10 }
 0xc48   :  { %v4098_v2 = vpop.f32.mrf.mxu2 }
 0xc4a   :  { %v4033_v35 = vpop.f32.mrf.mxu1 }
 0xc4b   :  { %v4045_v0 = vadd.f32 %v4033_v35, %v3956_v18 }
 0xc4c   :  { %v3946_v47 = vpop.f32.mrf.mxu3 }
 0xc4d   :  { %v4110_v62 = vadd.f32 %v4098_v2, %v4045_v0  ;;  %v3957_v11 = vadd.f32 %v3946_v47, %v3864_v32 }
 0xc50   :  { %v4100_v28 = vpop.f32.mrf.mxu2 }
 0xc52   :  { %v4035_v4 = vpop.f32.mrf.mxu1 }
 0xc53   :  { %v4046_v22 = vadd.f32 %v4035_v4, %v3957_v11 }
 0xc54   :  { %v3949_v54 = vpop.f32.mrf.mxu3 }
 0xc55   :  { %v4111_v48 = vadd.f32 %v4100_v28, %v4046_v22  ;;  %v3958_v59 = vadd.f32 %v3949_v54, %v7869_v53 }
 0xc56   :  { %v4271_v30 = vpop.f32.mrf.mxu0 }
 0xc58   :  { %v4103_v31 = vpop.f32.mrf.mxu2 }
 0xc5a   :  { %v4038_v7 = vpop.f32.mrf.mxu1 }
 0xc5b   :  { %v4047_v60 = vadd.f32 %v4038_v7, %v3958_v59 }
 0xc5c   :  { %v3951_v50 = vpop.f32.mrf.mxu3 }
 0xc5d   :  { %v4112_v8 = vadd.f32 %v4103_v31, %v4047_v60  ;;  %v3959_v3 = vadd.f32 %v3951_v50, %v7871_v17 }
 0xc5e   :  { %v4273_v57 = vpop.f32.mrf.mxu0 }
 0xc60   :  { %v7873_v33 = vpop.f32.mrf.mxu2 }
 0xc62   :  { %v4040_v16 = vpop.f32.mrf.mxu1 }
 0xc63   :  { %v4048_v47 = vadd.f32 %v4040_v16, %v3959_v3 }
 0xc64   :  { %v4182_v45 = vpop.f32.mrf.mxu3 }
 0xc65   :  { %v4197_v1 = vadd.f32 %v4182_v45, %v4108_v55  ;;  %v4113_v7 = vadd.f32 %v7873_v33, %v4048_v47 }
 0xc66   :  { %v4276_v46 = vpop.f32.mrf.mxu0 }
 0xc67   :  { %v4286_v29 = vadd.f32 %v4271_v30, %v4197_v1 }
 0xc68   :  { %v4449_v52 = vpop.f32.mrf.mxu2 }
 0xc6b   :  { %v4360_v13 = vpop.f32.mrf.mxu1 }
 0xc6c   :  { %v4375_v40 = vadd.f32 %v4360_v13, %v4286_v29  ;;  %v4184_v56 = vpop.f32.mrf.mxu3 }
 0xc6d   :  { %v4198_v23 = vadd.f32 %v4184_v56, %v4109_v58 }
 0xc6e   :  { %v4464_v5 = vadd.f32 %v4449_v52, %v4375_v40  ;;  %v4278_v14 = vpop.f32.mrf.mxu0 }
 0xc6f   :  { %v4287_v51 = vadd.f32 %v4273_v57, %v4198_v23 }
 0xc70   :  { %5599 = vtanh.f32 %v4464_v5  ;;  %v4451_v19 = vpop.f32.mrf.mxu2 }
 0xc73   :  { %v4362_v25 = vpop.f32.mrf.mxu1 }
 0xc74   :  { %v4376_v63 = vadd.f32 %v4362_v25, %v4287_v51  ;;  %v4187_v49 = vpop.f32.mrf.mxu3 }
 0xc75   :  { %v4199_v20 = vadd.f32 %v4187_v49, %v4110_v62 }
 0xc76   :  { %v5600_v27 = vpop.eup %5599  ;;  %v4465_v34 = vadd.f32 %v4451_v19, %v4376_v63  ;;  %v4281_v53 = vpop.f32.mrf.mxu0 }
 0xc77   :  { %4476 = vst [vmem:[%s7912_s16] sm:$0xff] %v5600_v27  ;;  %v4288_v43 = vadd.f32 %v4276_v46, %v4199_v20 }
 0xc78   :  { %5601 = vtanh.f32 %v4465_v34  ;;  %v4454_v37 = vpop.f32.mrf.mxu2 }
 0xc7b   :  { %v4365_v12 = vpop.f32.mrf.mxu1 }
 0xc7c   :  { %v4377_v24 = vadd.f32 %v4365_v12, %v4288_v43  ;;  %v4189_v10 = vpop.f32.mrf.mxu3 }
 0xc7d   :  { %v4200_v15 = vadd.f32 %v4189_v10, %v4111_v48 }
 0xc7e   :  { %v5602_v44 = vpop.eup %5601  ;;  %v4466_v32 = vadd.f32 %v4454_v37, %v4377_v24  ;;  %v4283_v17 = vpop.f32.mrf.mxu0 }
 0xc7f   :  { %4477 = vst [vmem:[%s7912_s16 + $0x8] sm:$0xff] %v5602_v44  ;;  %v4289_v41 = vadd.f32 %v4278_v14, %v4200_v15 }
 0xc80   :  { %5603 = vtanh.f32 %v4466_v32  ;;  %v4456_v6 = vpop.f32.mrf.mxu2 }
 0xc83   :  { %v4367_v38 = vpop.f32.mrf.mxu1 }
 0xc84   :  { %v4378_v61 = vadd.f32 %v4367_v38, %v4289_v41  ;;  %v4192_v39 = vpop.f32.mrf.mxu3 }
 0xc85   :  { %v4201_v2 = vadd.f32 %v4192_v39, %v4112_v8 }
 0xc86   :  { %v5604_v26 = vpop.eup %5603  ;;  %v4467_v35 = vadd.f32 %v4456_v6, %v4378_v61 }
 0xc87   :  { %4478 = vst [vmem:[%s7912_s16 + $0x10] sm:$0xff] %v5604_v26  ;;  %v4290_v28 = vadd.f32 %v4281_v53, %v4201_v2 }
 0xc88   :  { %5605 = vtanh.f32 %v4467_v35  ;;  %v4459_v54 = vpop.f32.mrf.mxu2 }
 0xc8b   :  { %v4370_v4 = vpop.f32.mrf.mxu1 }
 0xc8c   :  { %v4379_v31 = vadd.f32 %v4370_v4, %v4290_v28  ;;  %v4194_v21 = vpop.f32.mrf.mxu3 }
 0xc8d   :  { %v4202_v42 = vadd.f32 %v4194_v21, %v4113_v7 }
 0xc8e   :  { %v5606_v30 = vpop.eup %5605  ;;  %v4468_v55 = vadd.f32 %v4459_v54, %v4379_v31 }
 0xc8f   :  { %4479 = vst [vmem:[%s7912_s16 + $0x18] sm:$0xff] %v5606_v30  ;;  %v4291_v50 = vadd.f32 %v4283_v17, %v4202_v42 }
 0xc90   :  { %5607 = vtanh.f32 %v4468_v55  ;;  %v4461_v9 = vpop.f32.mrf.mxu2 }
 0xc93   :  { %v4372_v45 = vpop.f32.mrf.mxu1 }
 0xc94   :  { %v4380_v16 = vadd.f32 %v4372_v45, %v4291_v50 }
 0xc96   :  { %v5608_v1 = vpop.eup %5607  ;;  %v4469_v36 = vadd.f32 %v4461_v9, %v4380_v16 }
 0xc97   :  { %4480 = vst [vmem:[%s7912_s16 + $0x20] sm:$0xff] %v5608_v1 }
 0xc98   :  { %5609 = vtanh.f32 %v4469_v36 }
 0xc9e   :  { %v5610_v33 = vpop.eup %5609 }
 0xc9f   :  { %4481 = vst [vmem:[%s7912_s16 + $0x28] sm:$0xff] %v5610_v33 }

</bundles_post_ra>
